<compile_context>
chip_gen: v7x
topology: tpu7x:2x2x1
jax: 0.10.0
libtpu: 0.0.40
codegen_flags: <defaults>
</compile_context>

<pallas_src>
import functools
import math

import jax
import jax.numpy as jnp
from jax import lax
from jax.experimental import pallas as pl
from jax.experimental.pallas import tpu as pltpu


# ---------------------------------------------------------------------------
# Kernel 1: LayerNorm over the channel axis.
# ---------------------------------------------------------------------------
def _layernorm_kernel(x_ref, g_ref, b_ref, o_ref, *, eps):
    x = x_ref[...].astype(jnp.float32)                       # (tm, C)
    mean = jnp.mean(x, axis=-1, keepdims=True)
    xc = x - mean
    var = jnp.mean(xc * xc, axis=-1, keepdims=True)
    inv = lax.rsqrt(var + eps)
    o_ref[...] = (xc * inv * g_ref[...] + b_ref[...]).astype(o_ref.dtype)


def pallas_layernorm(x, gamma, beta, *, eps=1e-5, tm_cap=256):
    M, C = x.shape
    tm = M if M <= tm_cap else tm_cap
    assert M % tm == 0, "pad rows to a multiple of the row tile"
    gamma = gamma.reshape(1, C).astype(jnp.float32)
    beta = beta.reshape(1, C).astype(jnp.float32)
    return pl.pallas_call(
        functools.partial(_layernorm_kernel, eps=eps),
        out_shape=jax.ShapeDtypeStruct((M, C), jnp.float32),
        grid_spec=pltpu.PrefetchScalarGridSpec(
            num_scalar_prefetch=0,
            grid=(M // tm,),
            in_specs=[
                pl.BlockSpec((tm, C), lambda i: (i, 0)),
                pl.BlockSpec((1, C), lambda i: (0, 0)),
                pl.BlockSpec((1, C), lambda i: (0, 0)),
            ],
            out_specs=pl.BlockSpec((tm, C), lambda i: (i, 0)),
        ),
        compiler_params=pltpu.CompilerParams(dimension_semantics=("parallel",)),
    )(x, gamma, beta)


# ---------------------------------------------------------------------------
# Kernel 2: tiled linear layer  y = act(x @ W + b), bf16 MXU / f32 accumulate.
# ---------------------------------------------------------------------------
def _linear_kernel(x_ref, w_ref, b_ref, o_ref, acc_ref, *, activation):
    @pl.when(pl.program_id(2) == 0)
    def _init():
        acc_ref[...] = jnp.zeros_like(acc_ref)

    acc_ref[...] += jnp.dot(
        x_ref[...].astype(jnp.bfloat16),          # bf16 MXU operands
        w_ref[...].astype(jnp.bfloat16),
        preferred_element_type=jnp.float32)       # f32 accumulation

    @pl.when(pl.program_id(2) == pl.num_programs(2) - 1)
    def _finalize():
        y = acc_ref[...] + b_ref[...]
        if activation == "relu":
            y = jnp.maximum(y, 0.0)
        o_ref[...] = y.astype(o_ref.dtype)


def pallas_linear(x, w, b=None, *, activation=None,
                  tm_cap=256, tn_cap=512, tk_cap=512):
    M, K = x.shape
    Kw, N = w.shape
    assert K == Kw
    b2 = (jnp.zeros((1, N), jnp.float32) if b is None
          else b.reshape(1, N).astype(jnp.float32))
    tm = M if M <= tm_cap else tm_cap
    tn = N if N <= tn_cap else tn_cap
    tk = K if K <= tk_cap else tk_cap
    assert M % tm == 0 and N % tn == 0 and K % tk == 0, "pad to tile multiples"
    grid = (M // tm, N // tn, K // tk)
    return pl.pallas_call(
        functools.partial(_linear_kernel, activation=activation),
        out_shape=jax.ShapeDtypeStruct((M, N), jnp.float32),
        grid_spec=pltpu.PrefetchScalarGridSpec(
            num_scalar_prefetch=0,
            grid=grid,
            in_specs=[
                pl.BlockSpec((tm, tk), lambda i, j, k: (i, k)),
                pl.BlockSpec((tk, tn), lambda i, j, k: (k, j)),
                pl.BlockSpec((1, tn), lambda i, j, k: (0, j)),
            ],
            out_specs=pl.BlockSpec((tm, tn), lambda i, j, k: (i, j)),
            scratch_shapes=[pltpu.VMEM((tm, tn), jnp.float32)],
        ),
        compiler_params=pltpu.CompilerParams(
            dimension_semantics=("parallel", "parallel", "arbitrary")),
    )(x, w, b2)


# ---------------------------------------------------------------------------
# Kernel 3: flash-style causal multi-head attention (heads batched per block).
#   q, k, v are (B, H, T, hs) bf16 with the 1/sqrt(hs) scale already folded
#   into q.  grid = (B, T//tq, T//tk), KV axis is the innermost reduction.
# ---------------------------------------------------------------------------
def _flash_attn_kernel(q_ref, k_ref, v_ref, o_ref, m_sc, l_sc, acc_sc, *, tq, tk):
    qi = pl.program_id(1)
    ki = pl.program_id(2)

    @pl.when(ki == 0)
    def _init():
        m_sc[...] = jnp.full_like(m_sc, -1e30)
        l_sc[...] = jnp.zeros_like(l_sc)
        acc_sc[...] = jnp.zeros_like(acc_sc)

    # Skip KV blocks that lie strictly above the causal diagonal.
    @pl.when(ki * tk <= qi * tq + tq - 1)
    def _compute():
        q = q_ref[0]                                   # (H, tq, hs) bf16
        k = k_ref[0]                                   # (H, tk, hs) bf16
        v = v_ref[0]                                   # (H, tk, hs) bf16

        # Scores for all heads in one batched matmul; contract hs of q with hs
        # of k directly (no explicit transpose of k).
        s = lax.dot_general(q, k, (((2,), (2,)), ((0,), (0,))),
                            preferred_element_type=jnp.float32)  # (H, tq, tk) f32

        row = qi * tq + lax.broadcasted_iota(jnp.int32, s.shape, 1)
        col = ki * tk + lax.broadcasted_iota(jnp.int32, s.shape, 2)
        s = jnp.where(col <= row, s, -1e30)            # finite mask, no inf-inf

        m_prev = m_sc[...]                             # (H, tq, 1)
        m_new = jnp.maximum(m_prev, jnp.max(s, axis=-1, keepdims=True))
        alpha = jnp.exp(m_prev - m_new)
        p = jnp.exp(s - m_new)                         # f32 softmax math

        l_sc[...] = alpha * l_sc[...] + jnp.sum(p, axis=-1, keepdims=True)
        acc_sc[...] = alpha * acc_sc[...] + lax.dot_general(
            p.astype(v.dtype), v, (((2,), (1,)), ((0,), (0,))),
            preferred_element_type=jnp.float32)        # (H, tq, hs)
        m_sc[...] = m_new

    @pl.when(ki == pl.num_programs(2) - 1)
    def _finalize():
        inv_l = pl.reciprocal(l_sc[...], approx=True)  # EUP slot, ~free
        o_ref[0] = (acc_sc[...] * inv_l).astype(o_ref.dtype)
    # TODO(synk): attention dropout omitted — nn.Dropout is identity in eval mode.


def pallas_flash_mha(q, k, v, *, tq=None, tk=None):
    B, H, T, hs = q.shape
    if tq is None:
        tq = min(T, 128)
    if tk is None:
        tk = min(T, 128)
    assert T % tq == 0 and T % tk == 0
    return pl.pallas_call(
        functools.partial(_flash_attn_kernel, tq=tq, tk=tk),
        out_shape=jax.ShapeDtypeStruct((B, H, T, hs), q.dtype),
        grid_spec=pltpu.PrefetchScalarGridSpec(
            num_scalar_prefetch=0,
            grid=(B, T // tq, T // tk),
            in_specs=[
                pl.BlockSpec((1, H, tq, hs), lambda b, qi, ki: (b, 0, qi, 0)),
                pl.BlockSpec((1, H, tk, hs), lambda b, qi, ki: (b, 0, ki, 0)),
                pl.BlockSpec((1, H, tk, hs), lambda b, qi, ki: (b, 0, ki, 0)),
            ],
            out_specs=pl.BlockSpec((1, H, tq, hs), lambda b, qi, ki: (b, 0, qi, 0)),
            scratch_shapes=[
                pltpu.VMEM((H, tq, 1), jnp.float32),    # running max
                pltpu.VMEM((H, tq, 1), jnp.float32),    # running denom
                pltpu.VMEM((H, tq, hs), jnp.float32),   # running output
            ],
        ),
        compiler_params=pltpu.CompilerParams(
            dimension_semantics=("parallel", "parallel", "arbitrary")),
    )(q, k, v)


# ---------------------------------------------------------------------------
# GPT forward (eval mode) wired from the kernels above.
# ---------------------------------------------------------------------------
def gpt_forward(params, idx, targets=None, *, cfg, attn_tq=None, attn_tk=None):
    B, T = idx.shape
    C, H = cfg["n_embd"], cfg["n_head"]
    hs = C // H
    assert T <= cfg["context_len"]

    # TODO(synk): embedding gather has no clean Pallas equivalent; jnp.take used.
    x = jnp.take(params["wte"], idx, axis=0) + params["wpe"][:T][None]
    # TODO(synk): dropout layers are identity in eval mode and are omitted.

    for layer in params["layers"]:
        # ----- attention sublayer (pre-LN) -----
        h = pallas_layernorm(x.reshape(B * T, C), layer["ln1_g"], layer["ln1_b"])
        qkv = pallas_linear(h, layer["wqkv"], layer["bqkv"])        # (B*T, 3C) f32
        qkv = qkv.reshape(B, T, 3, H, hs).transpose(2, 0, 3, 1, 4)  # (3,B,H,T,hs)
        scale = hs ** (-0.5)
        q = (qkv[0] * scale).astype(jnp.bfloat16)   # fold softmax scale into q
        k = qkv[1].astype(jnp.bfloat16)
        v = qkv[2].astype(jnp.bfloat16)
        attn = pallas_flash_mha(q, k, v, tq=attn_tq, tk=attn_tk)    # (B,H,T,hs) bf16
        attn = attn.transpose(0, 2, 1, 3).reshape(B * T, C)
        proj = pallas_linear(attn, layer["wproj"], layer["bproj"])  # (B*T, C) f32
        x = x + proj.reshape(B, T, C)

        # ----- feed-forward sublayer (pre-LN) -----
        h = pallas_layernorm(x.reshape(B * T, C), layer["ln2_g"], layer["ln2_b"])
        h = pallas_linear(h, layer["w_fc"], layer["b_fc"], activation="relu")
        h = pallas_linear(h, layer["w_fproj"], layer["b_fproj"])
        x = x + h.reshape(B, T, C)

    xf = pallas_layernorm(x.reshape(B * T, C), params["lnf_g"], params["lnf_b"])

    if targets is not None:
        logits = pallas_linear(xf, params["w_lm"], None).reshape(B, T, -1)
        V = logits.shape[-1]
        lt = targets.reshape(-1)
        valid = lt != -1
        logp = jax.nn.log_softmax(logits.reshape(-1, V).astype(jnp.float32), axis=-1)
        picked = jnp.take_along_axis(logp, jnp.maximum(lt, 0)[:, None], axis=1)[:, 0]
        loss = -jnp.sum(jnp.where(valid, picked, 0.0)) / jnp.maximum(jnp.sum(valid), 1)
        return logits, loss
    logits = pallas_linear(xf.reshape(B, T, C)[:, -1, :], params["w_lm"], None)
    return logits[:, None, :], None


# ---------------------------------------------------------------------------
# Parameter construction (GPT-2 style init; linear weights stored (in, out)).
# ---------------------------------------------------------------------------
def init_gpt_params(key, cfg):
    C, V, L = cfg["n_embd"], cfg["vocab_size"], cfg["n_layer"]
    Tc, Hd = cfg["context_len"], cfg["n_embd"] * cfg["ffw_widen"]
    std, proj_std = 0.02, 0.02 / math.sqrt(2 * L)
    keys = iter(jax.random.split(key, 2 + 8 * L))

    def nrm(shape, s):
        return jax.random.normal(next(keys), shape, jnp.float32) * s

    params = {
        "wte": nrm((V, C), std),
        "wpe": nrm((Tc, C), std),
        "lnf_g": jnp.ones((C,), jnp.float32),
        "lnf_b": jnp.zeros((C,), jnp.float32),
        "layers": [],
    }
    for _ in range(L):
        params["layers"].append({
            "ln1_g": jnp.ones((C,), jnp.float32), "ln1_b": jnp.zeros((C,), jnp.float32),
            "wqkv": nrm((C, 3 * C), std), "bqkv": nrm((3 * C,), std),
            "wproj": nrm((C, C), proj_std), "bproj": nrm((C,), std),
            "ln2_g": jnp.ones((C,), jnp.float32), "ln2_b": jnp.zeros((C,), jnp.float32),
            "w_fc": nrm((C, Hd), std), "b_fc": nrm((Hd,), std),
            "w_fproj": nrm((Hd, C), proj_std), "b_fproj": nrm((C,), std),
        })
    return params


def prepare_kernel_params(p):
    """bf16-cast the matmul weights (halves VMEM/HBM traffic); biases/LN stay f32."""
    kp = {"wte": p["wte"], "wpe": p["wpe"],
          "w_lm": p["wte"].T.astype(jnp.bfloat16),     # weight-tied lm_head
          "lnf_g": p["lnf_g"], "lnf_b": p["lnf_b"], "layers": []}
    for l in p["layers"]:
        kp["layers"].append({
            "ln1_g": l["ln1_g"], "ln1_b": l["ln1_b"],
            "wqkv": l["wqkv"].astype(jnp.bfloat16), "bqkv": l["bqkv"],
            "wproj": l["wproj"].astype(jnp.bfloat16), "bproj": l["bproj"],
            "ln2_g": l["ln2_g"], "ln2_b": l["ln2_b"],
            "w_fc": l["w_fc"].astype(jnp.bfloat16), "b_fc": l["b_fc"],
            "w_fproj": l["w_fproj"].astype(jnp.bfloat16), "b_fproj": l["b_fproj"],
        })
    return kp


# ---------------------------------------------------------------------------
# Plain-JAX f32 reference mirroring the PyTorch forward (eval mode).
# ---------------------------------------------------------------------------
def gpt_reference(params, idx, cfg, targets=None):
    B, T = idx.shape
    C, H = cfg["n_embd"], cfg["n_head"]
    hs = C // H

    def ln(x, g, b, eps=1e-5):
        m = jnp.mean(x, -1, keepdims=True)
        v = jnp.mean((x - m) ** 2, -1, keepdims=True)
        return (x - m) / jnp.sqrt(v + eps) * g + b

    x = jnp.take(params["wte"], idx, axis=0) + params["wpe"][:T][None]
    mask = jnp.tril(jnp.ones((T, T), bool))
    for l in params["layers"]:
        h = ln(x, l["ln1_g"], l["ln1_b"])
        qkv = (h @ l["wqkv"] + l["bqkv"]).reshape(B, T, 3, H, hs).transpose(2, 0, 3, 1, 4)
        q, k, v = qkv[0], qkv[1], qkv[2]
        att = jnp.einsum('bhqd,bhkd->bhqk', q, k) * hs ** (-0.5)
        att = jax.nn.softmax(jnp.where(mask, att, -jnp.inf), axis=-1)
        out = jnp.einsum('bhqk,bhkd->bhqd', att, v).transpose(0, 2, 1, 3).reshape(B, T, C)
        x = x + out @ l["wproj"] + l["bproj"]
        h = ln(x, l["ln2_g"], l["ln2_b"])
        h = jnp.maximum(h @ l["w_fc"] + l["b_fc"], 0.0)
        x = x + h @ l["w_fproj"] + l["b_fproj"]
    xf = ln(x, params["lnf_g"], params["lnf_b"])
    if targets is not None:
        logits = xf @ params["wte"].T
        V = logits.shape[-1]
        lt = targets.reshape(-1)
        valid = lt != -1
        logp = jax.nn.log_softmax(logits.reshape(-1, V), axis=-1)
        picked = jnp.take_along_axis(logp, jnp.maximum(lt, 0)[:, None], axis=1)[:, 0]
        loss = -jnp.sum(jnp.where(valid, picked, 0.0)) / jnp.maximum(jnp.sum(valid), 1)
        return logits, loss
    return xf[:, -1:, :] @ params["wte"].T, None


if __name__ == "__main__":
    # Small config consistent with GPTconfig (scaled down): vocab=61, n_embd=128,
    # n_head=4 (head_size=32), n_layer=2, context_len=32, ffw_widen=4.
    cfg = dict(context_len=32, vocab_size=61, n_embd=128, n_head=4,
               n_layer=2, ffw_widen=4)
    B, T = 2, 32

    key = jax.random.PRNGKey(0)
    kparam, kidx, ktgt = jax.random.split(key, 3)
    params_f32 = init_gpt_params(kparam, cfg)
    params_krn = prepare_kernel_params(params_f32)

    idx = jax.random.randint(kidx, (B, T), 0, cfg["vocab_size"], dtype=jnp.int32)
    targets = jax.random.randint(ktgt, (B, T), 0, cfg["vocab_size"], dtype=jnp.int32)

    fwd = jax.jit(functools.partial(gpt_forward, cfg=cfg, attn_tq=16, attn_tk=16))

    # Training-style call (full logits + cross-entropy loss).
    logits, loss = jax.block_until_ready(fwd(params_krn, idx, targets))
    # Inference-style call (last-position logits only).
    logits_last, _ = jax.block_until_ready(fwd(params_krn, idx))

    ref_logits, ref_loss = gpt_reference(params_f32, idx, cfg, targets)
    ref_last, _ = gpt_reference(params_f32, idx, cfg, None)

    assert logits.shape == (B, T, cfg["vocab_size"])
    assert logits_last.shape == (B, 1, cfg["vocab_size"])
    assert jnp.allclose(logits, ref_logits, atol=5e-2, rtol=5e-2), "logits mismatch"
    assert jnp.allclose(logits_last, ref_last, atol=5e-2, rtol=5e-2), "last-token mismatch"
    assert abs(float(loss) - float(ref_loss)) < 5e-2, "loss mismatch"

    print("KERNEL_OK")
</pallas_src>

<mosaic_0001>
module attributes {stable_mosaic.version = 11 : i64} {
  func.func @_layernorm_kernel(%arg0: i32, %arg1: memref<64x128xf32, #tpu.memory_space<vmem>>, %arg2: memref<1x128xf32, #tpu.memory_space<vmem>>, %arg3: memref<1x128xf32, #tpu.memory_space<vmem>>, %arg4: memref<64x128xf32, #tpu.memory_space<vmem>>) attributes {dimension_semantics = [#tpu.dimension_semantics<parallel>], iteration_bounds = array<i64: 1>, scalar_prefetch = 0 : i64, scratch_operands = 0 : i64, tpu.core_type = #tpu.core_type<tc>, window_params = [{transform_indices = @transform_0, window_bounds = array<i64: 64, 128>}, {pipeline_mode = #tpu.pipeline_mode<synchronous>, transform_indices = @transform_1, window_bounds = array<i64: 1, 128>}, {pipeline_mode = #tpu.pipeline_mode<synchronous>, transform_indices = @transform_2, window_bounds = array<i64: 1, 128>}, {transform_indices = @transform_3, window_bounds = array<i64: 64, 128>}]} {
    %c0 = arith.constant 0 : index
    %c0_0 = arith.constant 0 : index
    %0 = vector.load %arg1[%c0, %c0_0] : memref<64x128xf32, #tpu.memory_space<vmem>>, vector<64x128xf32>
    %cst = arith.constant dense<0.000000e+00> : vector<64xf32>
    %1 = vector.multi_reduction <add>, %0, %cst [1] : vector<64x128xf32> to vector<64xf32>
    %2 = vector.shape_cast %1 : vector<64xf32> to vector<64x1xf32>
    %cst_1 = arith.constant 1.280000e+02 : f32
    %3 = vector.broadcast %cst_1 : f32 to vector<64x1xf32>
    %4 = arith.divf %2, %3 : vector<64x1xf32>
    %5 = vector.broadcast %4 : vector<64x1xf32> to vector<64x128xf32>
    %6 = arith.subf %0, %5 : vector<64x128xf32>
    %7 = arith.mulf %6, %6 : vector<64x128xf32>
    %cst_2 = arith.constant dense<0.000000e+00> : vector<64xf32>
    %8 = vector.multi_reduction <add>, %7, %cst_2 [1] : vector<64x128xf32> to vector<64xf32>
    %9 = vector.shape_cast %8 : vector<64xf32> to vector<64x1xf32>
    %cst_3 = arith.constant 1.280000e+02 : f32
    %10 = vector.broadcast %cst_3 : f32 to vector<64x1xf32>
    %11 = arith.divf %9, %10 : vector<64x1xf32>
    %cst_4 = arith.constant 9.99999974E-6 : f32
    %12 = vector.broadcast %cst_4 : f32 to vector<64x1xf32>
    %13 = arith.addf %11, %12 : vector<64x1xf32>
    %14 = math.rsqrt %13 : vector<64x1xf32>
    %15 = vector.broadcast %14 : vector<64x1xf32> to vector<64x128xf32>
    %16 = arith.mulf %6, %15 : vector<64x128xf32>
    %c0_5 = arith.constant 0 : index
    %c0_6 = arith.constant 0 : index
    %17 = vector.load %arg2[%c0_5, %c0_6] : memref<1x128xf32, #tpu.memory_space<vmem>>, vector<1x128xf32>
    %18 = vector.broadcast %17 : vector<1x128xf32> to vector<64x128xf32>
    %19 = arith.mulf %16, %18 : vector<64x128xf32>
    %c0_7 = arith.constant 0 : index
    %c0_8 = arith.constant 0 : index
    %20 = vector.load %arg3[%c0_7, %c0_8] : memref<1x128xf32, #tpu.memory_space<vmem>>, vector<1x128xf32>
    %21 = vector.broadcast %20 : vector<1x128xf32> to vector<64x128xf32>
    %22 = arith.addf %19, %21 : vector<64x128xf32>
    %c0_9 = arith.constant 0 : index
    %c0_10 = arith.constant 0 : index
    %23 = vector.load %arg4[%c0_9, %c0_10] : memref<64x128xf32, #tpu.memory_space<vmem>>, vector<64x128xf32>
    tpu.vector_store %arg4[%c0_9, %c0_10], %22 {strides = array<i32>} : memref<64x128xf32, #tpu.memory_space<vmem>>, vector<64x128xf32>,
    return
  }
  func.func @transform_0(%arg0: i32) -> (i32, i32) {
    %c0_i32 = arith.constant 0 : i32
    %c0_i32_0 = arith.constant 0 : i32
    return %arg0, %c0_i32 : i32, i32
  }
  func.func @transform_1(%arg0: i32) -> (i32, i32) {
    %c0_i32 = arith.constant 0 : i32
    %c0_i32_0 = arith.constant 0 : i32
    %c0_i32_1 = arith.constant 0 : i32
    return %c0_i32, %c0_i32_0 : i32, i32
  }
  func.func @transform_2(%arg0: i32) -> (i32, i32) {
    %c0_i32 = arith.constant 0 : i32
    %c0_i32_0 = arith.constant 0 : i32
    %c0_i32_1 = arith.constant 0 : i32
    return %c0_i32, %c0_i32_0 : i32, i32
  }
  func.func @transform_3(%arg0: i32) -> (i32, i32) {
    %c0_i32 = arith.constant 0 : i32
    %c0_i32_0 = arith.constant 0 : i32
    return %arg0, %c0_i32 : i32, i32
  }
}

module attributes {stable_mosaic.version = 11 : i64} {
  func.func @_linear_kernel(%arg0: i32, %arg1: i32, %arg2: i32, %arg3: memref<64x128xf32, #tpu.memory_space<vmem>>, %arg4: memref<128x384xbf16, #tpu.memory_space<vmem>>, %arg5: memref<1x384xf32, #tpu.memory_space<vmem>>, %arg6: memref<64x384xf32, #tpu.memory_space<vmem>>, %arg7: memref<64x384xf32, #tpu.memory_space<vmem>>) attributes {dimension_semantics = [#tpu.dimension_semantics<parallel>, #tpu.dimension_semantics<parallel>, #tpu.dimension_semantics<arbitrary>], iteration_bounds = array<i64: 1, 1, 1>, scalar_prefetch = 0 : i64, scratch_operands = 1 : i64, tpu.core_type = #tpu.core_type<tc>, window_params = [{transform_indices = @transform_0, window_bounds = array<i64: 64, 128>}, {transform_indices = @transform_1, window_bounds = array<i64: 128, 384>}, {transform_indices = @transform_2, window_bounds = array<i64: 1, 384>}, {transform_indices = @transform_3, window_bounds = array<i64: 64, 384>}]} {
    %c0_i32 = arith.constant 0 : i32
    %0 = arith.cmpi eq, %arg2, %c0_i32 : i32
    %1 = arith.extui %0 : i1 to i32
    %c0_i32_0 = arith.constant 0 : i32
    %2 = arith.cmpi ne, %1, %c0_i32_0 : i32
    scf.if %2 {
      %cst_10 = arith.constant 0.000000e+00 : f32
      %13 = vector.broadcast %cst_10 : f32 to vector<64x384xf32>
      %c0_11 = arith.constant 0 : index
      %c0_12 = arith.constant 0 : index
      %14 = vector.load %arg7[%c0_11, %c0_12] : memref<64x384xf32, #tpu.memory_space<vmem>>, vector<64x384xf32>
      tpu.vector_store %arg7[%c0_11, %c0_12], %13 {strides = array<i32>} : memref<64x384xf32, #tpu.memory_space<vmem>>, vector<64x384xf32>,
    } else {
    }
    %c0 = arith.constant 0 : index
    %c0_1 = arith.constant 0 : index
    %3 = vector.load %arg7[%c0, %c0_1] : memref<64x384xf32, #tpu.memory_space<vmem>>, vector<64x384xf32>
    %c0_2 = arith.constant 0 : index
    %c0_3 = arith.constant 0 : index
    %4 = vector.load %arg3[%c0_2, %c0_3] : memref<64x128xf32, #tpu.memory_space<vmem>>, vector<64x128xf32>
    %5 = arith.truncf %4 : vector<64x128xf32> to vector<64x128xbf16>
    %c0_4 = arith.constant 0 : index
    %c0_5 = arith.constant 0 : index
    %6 = vector.load %arg4[%c0_4, %c0_5] : memref<128x384xbf16, #tpu.memory_space<vmem>>, vector<128x384xbf16>
    %cst = arith.constant dense<0.000000e+00> : vector<64x384xf32>
    %7 = tpu.matmul %5, %6, %cst {dimension_numbers = #tpu.dot_dimension_numbers<[1], [0], [0], [1], [0, 0, 1, 1], [], []>} : vector<64x128xbf16>, vector<128x384xbf16>, vector<64x384xf32> -> vector<64x384xf32>
    %8 = arith.addf %3, %7 : vector<64x384xf32>
    %c0_6 = arith.constant 0 : index
    %c0_7 = arith.constant 0 : index
    %9 = vector.load %arg7[%c0_6, %c0_7] : memref<64x384xf32, #tpu.memory_space<vmem>>, vector<64x384xf32>
    tpu.vector_store %arg7[%c0_6, %c0_7], %8 {strides = array<i32>} : memref<64x384xf32, #tpu.memory_space<vmem>>, vector<64x384xf32>,
    %c0_i32_8 = arith.constant 0 : i32
    %10 = arith.cmpi eq, %arg2, %c0_i32_8 : i32
    %11 = arith.extui %10 : i1 to i32
    %c0_i32_9 = arith.constant 0 : i32
    %12 = arith.cmpi ne, %11, %c0_i32_9 : i32
    scf.if %12 {
      %c0_10 = arith.constant 0 : index
      %c0_11 = arith.constant 0 : index
      %13 = vector.load %arg7[%c0_10, %c0_11] : memref<64x384xf32, #tpu.memory_space<vmem>>, vector<64x384xf32>
      %c0_12 = arith.constant 0 : index
      %c0_13 = arith.constant 0 : index
      %14 = vector.load %arg5[%c0_12, %c0_13] : memref<1x384xf32, #tpu.memory_space<vmem>>, vector<1x384xf32>
      %15 = vector.broadcast %14 : vector<1x384xf32> to vector<64x384xf32>
      %16 = arith.addf %13, %15 : vector<64x384xf32>
      %c0_14 = arith.constant 0 : index
      %c0_15 = arith.constant 0 : index
      %17 = vector.load %arg6[%c0_14, %c0_15] : memref<64x384xf32, #tpu.memory_space<vmem>>, vector<64x384xf32>
      tpu.vector_store %arg6[%c0_14, %c0_15], %16 {strides = array<i32>} : memref<64x384xf32, #tpu.memory_space<vmem>>, vector<64x384xf32>,
    } else {
    }
    return
  }
  func.func @transform_0(%arg0: i32, %arg1: i32, %arg2: i32) -> (i32, i32) {
    %c0_i32 = arith.constant 0 : i32
    return %arg0, %arg2 : i32, i32
  }
  func.func @transform_1(%arg0: i32, %arg1: i32, %arg2: i32) -> (i32, i32) {
    %c0_i32 = arith.constant 0 : i32
    return %arg2, %arg1 : i32, i32
  }
  func.func @transform_2(%arg0: i32, %arg1: i32, %arg2: i32) -> (i32, i32) {
    %c0_i32 = arith.constant 0 : i32
    %c0_i32_0 = arith.constant 0 : i32
    return %c0_i32, %arg1 : i32, i32
  }
  func.func @transform_3(%arg0: i32, %arg1: i32, %arg2: i32) -> (i32, i32) {
    %c0_i32 = arith.constant 0 : i32
    return %arg0, %arg1 : i32, i32
  }
}

module attributes {stable_mosaic.version = 11 : i64} {
  func.func @_flash_attn_kernel(%arg0: i32, %arg1: i32, %arg2: i32, %arg3: memref<1x4x16x32xbf16, #tpu.memory_space<vmem>>, %arg4: memref<1x4x16x32xbf16, #tpu.memory_space<vmem>>, %arg5: memref<1x4x16x32xbf16, #tpu.memory_space<vmem>>, %arg6: memref<1x4x16x32xbf16, #tpu.memory_space<vmem>>, %arg7: memref<4x16x1xf32, #tpu.memory_space<vmem>>, %arg8: memref<4x16x1xf32, #tpu.memory_space<vmem>>, %arg9: memref<4x16x32xf32, #tpu.memory_space<vmem>>) attributes {dimension_semantics = [#tpu.dimension_semantics<parallel>, #tpu.dimension_semantics<parallel>, #tpu.dimension_semantics<arbitrary>], iteration_bounds = array<i64: 2, 2, 2>, scalar_prefetch = 0 : i64, scratch_operands = 3 : i64, tpu.core_type = #tpu.core_type<tc>, window_params = [{transform_indices = @transform_0, window_bounds = array<i64: 1, 4, 16, 32>}, {transform_indices = @transform_1, window_bounds = array<i64: 1, 4, 16, 32>}, {transform_indices = @transform_2, window_bounds = array<i64: 1, 4, 16, 32>}, {transform_indices = @transform_3, window_bounds = array<i64: 1, 4, 16, 32>}]} {
    %c0_i32 = arith.constant 0 : i32
    %0 = arith.cmpi eq, %arg2, %c0_i32 : i32
    %1 = arith.extui %0 : i1 to i32
    %c0_i32_0 = arith.constant 0 : i32
    %2 = arith.cmpi ne, %1, %c0_i32_0 : i32
    scf.if %2 {
      %cst = arith.constant -1.000000e+30 : f32
      %13 = vector.broadcast %cst : f32 to vector<4x16x1xf32>
      %c0 = arith.constant 0 : index
      %c0_6 = arith.constant 0 : index
      %c0_7 = arith.constant 0 : index
      %14 = vector.load %arg7[%c0, %c0_6, %c0_7] : memref<4x16x1xf32, #tpu.memory_space<vmem>>, vector<4x16x1xf32>
      tpu.vector_store %arg7[%c0, %c0_6, %c0_7], %13 {strides = array<i32>} : memref<4x16x1xf32, #tpu.memory_space<vmem>>, vector<4x16x1xf32>,
      %cst_8 = arith.constant 0.000000e+00 : f32
      %15 = vector.broadcast %cst_8 : f32 to vector<4x16x1xf32>
      %c0_9 = arith.constant 0 : index
      %c0_10 = arith.constant 0 : index
      %c0_11 = arith.constant 0 : index
      %16 = vector.load %arg8[%c0_9, %c0_10, %c0_11] : memref<4x16x1xf32, #tpu.memory_space<vmem>>, vector<4x16x1xf32>
      tpu.vector_store %arg8[%c0_9, %c0_10, %c0_11], %15 {strides = array<i32>} : memref<4x16x1xf32, #tpu.memory_space<vmem>>, vector<4x16x1xf32>,
      %cst_12 = arith.constant 0.000000e+00 : f32
      %17 = vector.broadcast %cst_12 : f32 to vector<4x16x32xf32>
      %c0_13 = arith.constant 0 : index
      %c0_14 = arith.constant 0 : index
      %c0_15 = arith.constant 0 : index
      %18 = vector.load %arg9[%c0_13, %c0_14, %c0_15] : memref<4x16x32xf32, #tpu.memory_space<vmem>>, vector<4x16x32xf32>
      tpu.vector_store %arg9[%c0_13, %c0_14, %c0_15], %17 {strides = array<i32>} : memref<4x16x32xf32, #tpu.memory_space<vmem>>, vector<4x16x32xf32>,
    } else {
    }
    %c16_i32 = arith.constant 16 : i32
    %3 = arith.muli %arg2, %c16_i32 : i32
    %c16_i32_1 = arith.constant 16 : i32
    %4 = arith.muli %arg1, %c16_i32_1 : i32
    %c16_i32_2 = arith.constant 16 : i32
    %5 = arith.addi %4, %c16_i32_2 : i32
    %c1_i32 = arith.constant 1 : i32
    %6 = arith.subi %5, %c1_i32 : i32
    %7 = arith.cmpi sle, %3, %6 : i32
    %8 = arith.extui %7 : i1 to i32
    %c0_i32_3 = arith.constant 0 : i32
    %9 = arith.cmpi ne, %8, %c0_i32_3 : i32
    scf.if %9 {
      %c0 = arith.constant 0 : index
      %c0_6 = arith.constant 0 : index
      %c0_7 = arith.constant 0 : index
      %c0_8 = arith.constant 0 : index
      %13 = vector.load %arg3[%c0, %c0_6, %c0_7, %c0_8] : memref<1x4x16x32xbf16, #tpu.memory_space<vmem>>, vector<1x4x16x32xbf16>
      %14 = vector.shape_cast %13 : vector<1x4x16x32xbf16> to vector<4x16x32xbf16>
      %c0_9 = arith.constant 0 : index
      %c0_10 = arith.constant 0 : index
      %c0_11 = arith.constant 0 : index
      %c0_12 = arith.constant 0 : index
      %15 = vector.load %arg4[%c0_9, %c0_10, %c0_11, %c0_12] : memref<1x4x16x32xbf16, #tpu.memory_space<vmem>>, vector<1x4x16x32xbf16>
      %16 = vector.shape_cast %15 : vector<1x4x16x32xbf16> to vector<4x16x32xbf16>
      %c0_13 = arith.constant 0 : index
      %c0_14 = arith.constant 0 : index
      %c0_15 = arith.constant 0 : index
      %c0_16 = arith.constant 0 : index
      %17 = vector.load %arg5[%c0_13, %c0_14, %c0_15, %c0_16] : memref<1x4x16x32xbf16, #tpu.memory_space<vmem>>, vector<1x4x16x32xbf16>
      %18 = vector.shape_cast %17 : vector<1x4x16x32xbf16> to vector<4x16x32xbf16>
      %cst = arith.constant dense<0.000000e+00> : vector<4x16x16xf32>
      %19 = tpu.matmul %14, %16, %cst {dimension_numbers = #tpu.dot_dimension_numbers<[2], [2], [1], [1], [0, 0, 0, 1, 1, 1], [0], [0]>} : vector<4x16x32xbf16>, vector<4x16x32xbf16>, vector<4x16x16xf32> -> vector<4x16x16xf32>
      %c16_i32_17 = arith.constant 16 : i32
      %20 = arith.muli %arg1, %c16_i32_17 : i32
      %21 = tpu.iota {dimensions = array<i32: 1>} : vector<4x16x16xi32>
      %22 = vector.broadcast %20 : i32 to vector<4x16x16xi32>
      %23 = arith.addi %22, %21 : vector<4x16x16xi32>
      %c16_i32_18 = arith.constant 16 : i32
      %24 = arith.muli %arg2, %c16_i32_18 : i32
      %25 = tpu.iota {dimensions = array<i32: 2>} : vector<4x16x16xi32>
      %26 = vector.broadcast %24 : i32 to vector<4x16x16xi32>
      %27 = arith.addi %26, %25 : vector<4x16x16xi32>
      %28 = arith.cmpi sle, %27, %23 : vector<4x16x16xi32>
      %cst_19 = arith.constant -1.000000e+30 : f32
      %29 = vector.broadcast %cst_19 : f32 to vector<4x16x16xf32>
      %30 = arith.select %28, %19, %29 : vector<4x16x16xi1>, vector<4x16x16xf32>
      %c0_20 = arith.constant 0 : index
      %c0_21 = arith.constant 0 : index
      %c0_22 = arith.constant 0 : index
      %31 = vector.load %arg7[%c0_20, %c0_21, %c0_22] : memref<4x16x1xf32, #tpu.memory_space<vmem>>, vector<4x16x1xf32>
      %cst_23 = arith.constant dense<0xFF800000> : vector<4x16xf32>
      %32 = vector.multi_reduction <maximumf>, %30, %cst_23 [2] : vector<4x16x16xf32> to vector<4x16xf32>
      %33 = vector.shape_cast %32 : vector<4x16xf32> to vector<4x16x1xf32>
      %34 = arith.maximumf %31, %33 : vector<4x16x1xf32>
      %35 = arith.subf %31, %34 : vector<4x16x1xf32>
      %36 = math.exp %35 : vector<4x16x1xf32>
      %37 = vector.broadcast %34 : vector<4x16x1xf32> to vector<4x16x16xf32>
      %38 = arith.subf %30, %37 : vector<4x16x16xf32>
      %39 = math.exp %38 : vector<4x16x16xf32>
      %c0_24 = arith.constant 0 : index
      %c0_25 = arith.constant 0 : index
      %c0_26 = arith.constant 0 : index
      %40 = vector.load %arg8[%c0_24, %c0_25, %c0_26] : memref<4x16x1xf32, #tpu.memory_space<vmem>>, vector<4x16x1xf32>
      %41 = arith.mulf %36, %40 : vector<4x16x1xf32>
      %cst_27 = arith.constant dense<0.000000e+00> : vector<4x16xf32>
      %42 = vector.multi_reduction <add>, %39, %cst_27 [2] : vector<4x16x16xf32> to vector<4x16xf32>
      %43 = vector.shape_cast %42 : vector<4x16xf32> to vector<4x16x1xf32>
      %44 = arith.addf %41, %43 : vector<4x16x1xf32>
      %c0_28 = arith.constant 0 : index
      %c0_29 = arith.constant 0 : index
      %c0_30 = arith.constant 0 : index
      %45 = vector.load %arg8[%c0_28, %c0_29, %c0_30] : memref<4x16x1xf32, #tpu.memory_space<vmem>>, vector<4x16x1xf32>
      tpu.vector_store %arg8[%c0_28, %c0_29, %c0_30], %44 {strides = array<i32>} : memref<4x16x1xf32, #tpu.memory_space<vmem>>, vector<4x16x1xf32>,
      %c0_31 = arith.constant 0 : index
      %c0_32 = arith.constant 0 : index
      %c0_33 = arith.constant 0 : index
      %46 = vector.load %arg9[%c0_31, %c0_32, %c0_33] : memref<4x16x32xf32, #tpu.memory_space<vmem>>, vector<4x16x32xf32>
      %47 = vector.broadcast %36 : vector<4x16x1xf32> to vector<4x16x32xf32>
      %48 = arith.mulf %47, %46 : vector<4x16x32xf32>
      %49 = arith.truncf %39 : vector<4x16x16xf32> to vector<4x16x16xbf16>
      %cst_34 = arith.constant dense<0.000000e+00> : vector<4x16x32xf32>
      %50 = tpu.matmul %49, %18, %cst_34 {dimension_numbers = #tpu.dot_dimension_numbers<[2], [1], [1], [2], [0, 0, 0, 1, 1, 2], [0], [0]>} : vector<4x16x16xbf16>, vector<4x16x32xbf16>, vector<4x16x32xf32> -> vector<4x16x32xf32>
      %51 = arith.addf %48, %50 : vector<4x16x32xf32>
      %c0_35 = arith.constant 0 : index
      %c0_36 = arith.constant 0 : index
      %c0_37 = arith.constant 0 : index
      %52 = vector.load %arg9[%c0_35, %c0_36, %c0_37] : memref<4x16x32xf32, #tpu.memory_space<vmem>>, vector<4x16x32xf32>
      tpu.vector_store %arg9[%c0_35, %c0_36, %c0_37], %51 {strides = array<i32>} : memref<4x16x32xf32, #tpu.memory_space<vmem>>, vector<4x16x32xf32>,
      %c0_38 = arith.constant 0 : index
      %c0_39 = arith.constant 0 : index
      %c0_40 = arith.constant 0 : index
      %53 = vector.load %arg7[%c0_38, %c0_39, %c0_40] : memref<4x16x1xf32, #tpu.memory_space<vmem>>, vector<4x16x1xf32>
      tpu.vector_store %arg7[%c0_38, %c0_39, %c0_40], %34 {strides = array<i32>} : memref<4x16x1xf32, #tpu.memory_space<vmem>>, vector<4x16x1xf32>,
    } else {
    }
    %c1_i32_4 = arith.constant 1 : i32
    %10 = arith.cmpi eq, %arg2, %c1_i32_4 : i32
    %11 = arith.extui %10 : i1 to i32
    %c0_i32_5 = arith.constant 0 : i32
    %12 = arith.cmpi ne, %11, %c0_i32_5 : i32
    scf.if %12 {
      %c0 = arith.constant 0 : index
      %c0_6 = arith.constant 0 : index
      %c0_7 = arith.constant 0 : index
      %13 = vector.load %arg8[%c0, %c0_6, %c0_7] : memref<4x16x1xf32, #tpu.memory_space<vmem>>, vector<4x16x1xf32>
      %14 = tpu.reciprocal %13 {approx = true} : vector<4x16x1xf32> -> vector<4x16x1xf32>
      %c0_8 = arith.constant 0 : index
      %c0_9 = arith.constant 0 : index
      %c0_10 = arith.constant 0 : index
      %15 = vector.load %arg9[%c0_8, %c0_9, %c0_10] : memref<4x16x32xf32, #tpu.memory_space<vmem>>, vector<4x16x32xf32>
      %16 = vector.broadcast %14 : vector<4x16x1xf32> to vector<4x16x32xf32>
      %17 = arith.mulf %15, %16 : vector<4x16x32xf32>
      %18 = arith.truncf %17 : vector<4x16x32xf32> to vector<4x16x32xbf16>
      %c0_11 = arith.constant 0 : index
      %c0_12 = arith.constant 0 : index
      %c0_13 = arith.constant 0 : index
      %c0_14 = arith.constant 0 : index
      %19 = vector.load %arg6[%c0_11, %c0_12, %c0_13, %c0_14] : memref<1x4x16x32xbf16, #tpu.memory_space<vmem>>, vector<1x4x16x32xbf16>
      %20 = vector.shape_cast %19 : vector<1x4x16x32xbf16> to vector<4x16x32xbf16>
      %21 = vector.shape_cast %18 : vector<4x16x32xbf16> to vector<1x4x16x32xbf16>
      tpu.vector_store %arg6[%c0_11, %c0_12, %c0_13, %c0_14], %21 {strides = array<i32>} : memref<1x4x16x32xbf16, #tpu.memory_space<vmem>>, vector<1x4x16x32xbf16>,
    } else {
    }
    return
  }
  func.func @transform_0(%arg0: i32, %arg1: i32, %arg2: i32) -> (i32, i32, i32, i32) {
    %c0_i32 = arith.constant 0 : i32
    %c0_i32_0 = arith.constant 0 : i32
    %c0_i32_1 = arith.constant 0 : i32
    return %arg0, %c0_i32, %arg1, %c0_i32_0 : i32, i32, i32, i32
  }
  func.func @transform_1(%arg0: i32, %arg1: i32, %arg2: i32) -> (i32, i32, i32, i32) {
    %c0_i32 = arith.constant 0 : i32
    %c0_i32_0 = arith.constant 0 : i32
    %c0_i32_1 = arith.constant 0 : i32
    return %arg0, %c0_i32, %arg2, %c0_i32_0 : i32, i32, i32, i32
  }
  func.func @transform_2(%arg0: i32, %arg1: i32, %arg2: i32) -> (i32, i32, i32, i32) {
    %c0_i32 = arith.constant 0 : i32
    %c0_i32_0 = arith.constant 0 : i32
    %c0_i32_1 = arith.constant 0 : i32
    return %arg0, %c0_i32, %arg2, %c0_i32_0 : i32, i32, i32, i32
  }
  func.func @transform_3(%arg0: i32, %arg1: i32, %arg2: i32) -> (i32, i32, i32, i32) {
    %c0_i32 = arith.constant 0 : i32
    %c0_i32_0 = arith.constant 0 : i32
    %c0_i32_1 = arith.constant 0 : i32
    return %arg0, %c0_i32, %arg1, %c0_i32_0 : i32, i32, i32, i32
  }
}

module attributes {stable_mosaic.version = 11 : i64} {
  func.func @_linear_kernel(%arg0: i32, %arg1: i32, %arg2: i32, %arg3: memref<64x128xf32, #tpu.memory_space<vmem>>, %arg4: memref<128x512xbf16, #tpu.memory_space<vmem>>, %arg5: memref<1x512xf32, #tpu.memory_space<vmem>>, %arg6: memref<64x512xf32, #tpu.memory_space<vmem>>, %arg7: memref<64x512xf32, #tpu.memory_space<vmem>>) attributes {dimension_semantics = [#tpu.dimension_semantics<parallel>, #tpu.dimension_semantics<parallel>, #tpu.dimension_semantics<arbitrary>], iteration_bounds = array<i64: 1, 1, 1>, scalar_prefetch = 0 : i64, scratch_operands = 1 : i64, tpu.core_type = #tpu.core_type<tc>, window_params = [{transform_indices = @transform_0, window_bounds = array<i64: 64, 128>}, {transform_indices = @transform_1, window_bounds = array<i64: 128, 512>}, {transform_indices = @transform_2, window_bounds = array<i64: 1, 512>}, {transform_indices = @transform_3, window_bounds = array<i64: 64, 512>}]} {
    %c0_i32 = arith.constant 0 : i32
    %0 = arith.cmpi eq, %arg2, %c0_i32 : i32
    %1 = arith.extui %0 : i1 to i32
    %c0_i32_0 = arith.constant 0 : i32
    %2 = arith.cmpi ne, %1, %c0_i32_0 : i32
    scf.if %2 {
      %cst_10 = arith.constant 0.000000e+00 : f32
      %13 = vector.broadcast %cst_10 : f32 to vector<64x512xf32>
      %c0_11 = arith.constant 0 : index
      %c0_12 = arith.constant 0 : index
      %14 = vector.load %arg7[%c0_11, %c0_12] : memref<64x512xf32, #tpu.memory_space<vmem>>, vector<64x512xf32>
      tpu.vector_store %arg7[%c0_11, %c0_12], %13 {strides = array<i32>} : memref<64x512xf32, #tpu.memory_space<vmem>>, vector<64x512xf32>,
    } else {
    }
    %c0 = arith.constant 0 : index
    %c0_1 = arith.constant 0 : index
    %3 = vector.load %arg7[%c0, %c0_1] : memref<64x512xf32, #tpu.memory_space<vmem>>, vector<64x512xf32>
    %c0_2 = arith.constant 0 : index
    %c0_3 = arith.constant 0 : index
    %4 = vector.load %arg3[%c0_2, %c0_3] : memref<64x128xf32, #tpu.memory_space<vmem>>, vector<64x128xf32>
    %5 = arith.truncf %4 : vector<64x128xf32> to vector<64x128xbf16>
    %c0_4 = arith.constant 0 : index
    %c0_5 = arith.constant 0 : index
    %6 = vector.load %arg4[%c0_4, %c0_5] : memref<128x512xbf16, #tpu.memory_space<vmem>>, vector<128x512xbf16>
    %cst = arith.constant dense<0.000000e+00> : vector<64x512xf32>
    %7 = tpu.matmul %5, %6, %cst {dimension_numbers = #tpu.dot_dimension_numbers<[1], [0], [0], [1], [0, 0, 1, 1], [], []>} : vector<64x128xbf16>, vector<128x512xbf16>, vector<64x512xf32> -> vector<64x512xf32>
    %8 = arith.addf %3, %7 : vector<64x512xf32>
    %c0_6 = arith.constant 0 : index
    %c0_7 = arith.constant 0 : index
    %9 = vector.load %arg7[%c0_6, %c0_7] : memref<64x512xf32, #tpu.memory_space<vmem>>, vector<64x512xf32>
    tpu.vector_store %arg7[%c0_6, %c0_7], %8 {strides = array<i32>} : memref<64x512xf32, #tpu.memory_space<vmem>>, vector<64x512xf32>,
    %c0_i32_8 = arith.constant 0 : i32
    %10 = arith.cmpi eq, %arg2, %c0_i32_8 : i32
    %11 = arith.extui %10 : i1 to i32
    %c0_i32_9 = arith.constant 0 : i32
    %12 = arith.cmpi ne, %11, %c0_i32_9 : i32
    scf.if %12 {
      %c0_10 = arith.constant 0 : index
      %c0_11 = arith.constant 0 : index
      %13 = vector.load %arg7[%c0_10, %c0_11] : memref<64x512xf32, #tpu.memory_space<vmem>>, vector<64x512xf32>
      %c0_12 = arith.constant 0 : index
      %c0_13 = arith.constant 0 : index
      %14 = vector.load %arg5[%c0_12, %c0_13] : memref<1x512xf32, #tpu.memory_space<vmem>>, vector<1x512xf32>
      %15 = vector.broadcast %14 : vector<1x512xf32> to vector<64x512xf32>
      %16 = arith.addf %13, %15 : vector<64x512xf32>
      %cst_14 = arith.constant 0.000000e+00 : f32
      %17 = vector.broadcast %cst_14 : f32 to vector<64x512xf32>
      %18 = arith.maximumf %16, %17 : vector<64x512xf32>
      %c0_15 = arith.constant 0 : index
      %c0_16 = arith.constant 0 : index
      %19 = vector.load %arg6[%c0_15, %c0_16] : memref<64x512xf32, #tpu.memory_space<vmem>>, vector<64x512xf32>
      tpu.vector_store %arg6[%c0_15, %c0_16], %18 {strides = array<i32>} : memref<64x512xf32, #tpu.memory_space<vmem>>, vector<64x512xf32>,
    } else {
    }
    return
  }
  func.func @transform_0(%arg0: i32, %arg1: i32, %arg2: i32) -> (i32, i32) {
    %c0_i32 = arith.constant 0 : i32
    return %arg0, %arg2 : i32, i32
  }
  func.func @transform_1(%arg0: i32, %arg1: i32, %arg2: i32) -> (i32, i32) {
    %c0_i32 = arith.constant 0 : i32
    return %arg2, %arg1 : i32, i32
  }
  func.func @transform_2(%arg0: i32, %arg1: i32, %arg2: i32) -> (i32, i32) {
    %c0_i32 = arith.constant 0 : i32
    %c0_i32_0 = arith.constant 0 : i32
    return %c0_i32, %arg1 : i32, i32
  }
  func.func @transform_3(%arg0: i32, %arg1: i32, %arg2: i32) -> (i32, i32) {
    %c0_i32 = arith.constant 0 : i32
    return %arg0, %arg1 : i32, i32
  }
}

module attributes {stable_mosaic.version = 11 : i64} {
  func.func @_linear_kernel(%arg0: i32, %arg1: i32, %arg2: i32, %arg3: memref<64x128xbf16, #tpu.memory_space<vmem>>, %arg4: memref<128x128xbf16, #tpu.memory_space<vmem>>, %arg5: memref<1x128xf32, #tpu.memory_space<vmem>>, %arg6: memref<64x128xf32, #tpu.memory_space<vmem>>, %arg7: memref<64x128xf32, #tpu.memory_space<vmem>>) attributes {dimension_semantics = [#tpu.dimension_semantics<parallel>, #tpu.dimension_semantics<parallel>, #tpu.dimension_semantics<arbitrary>], iteration_bounds = array<i64: 1, 1, 1>, scalar_prefetch = 0 : i64, scratch_operands = 1 : i64, tpu.core_type = #tpu.core_type<tc>, window_params = [{transform_indices = @transform_0, window_bounds = array<i64: 64, 128>}, {transform_indices = @transform_1, window_bounds = array<i64: 128, 128>}, {transform_indices = @transform_2, window_bounds = array<i64: 1, 128>}, {transform_indices = @transform_3, window_bounds = array<i64: 64, 128>}]} {
    %c0_i32 = arith.constant 0 : i32
    %0 = arith.cmpi eq, %arg2, %c0_i32 : i32
    %1 = arith.extui %0 : i1 to i32
    %c0_i32_0 = arith.constant 0 : i32
    %2 = arith.cmpi ne, %1, %c0_i32_0 : i32
    scf.if %2 {
      %cst_10 = arith.constant 0.000000e+00 : f32
      %12 = vector.broadcast %cst_10 : f32 to vector<64x128xf32>
      %c0_11 = arith.constant 0 : index
      %c0_12 = arith.constant 0 : index
      %13 = vector.load %arg7[%c0_11, %c0_12] : memref<64x128xf32, #tpu.memory_space<vmem>>, vector<64x128xf32>
      tpu.vector_store %arg7[%c0_11, %c0_12], %12 {strides = array<i32>} : memref<64x128xf32, #tpu.memory_space<vmem>>, vector<64x128xf32>,
    } else {
    }
    %c0 = arith.constant 0 : index
    %c0_1 = arith.constant 0 : index
    %3 = vector.load %arg7[%c0, %c0_1] : memref<64x128xf32, #tpu.memory_space<vmem>>, vector<64x128xf32>
    %c0_2 = arith.constant 0 : index
    %c0_3 = arith.constant 0 : index
    %4 = vector.load %arg3[%c0_2, %c0_3] : memref<64x128xbf16, #tpu.memory_space<vmem>>, vector<64x128xbf16>
    %c0_4 = arith.constant 0 : index
    %c0_5 = arith.constant 0 : index
    %5 = vector.load %arg4[%c0_4, %c0_5] : memref<128x128xbf16, #tpu.memory_space<vmem>>, vector<128x128xbf16>
    %cst = arith.constant dense<0.000000e+00> : vector<64x128xf32>
    %6 = tpu.matmul %4, %5, %cst {dimension_numbers = #tpu.dot_dimension_numbers<[1], [0], [0], [1], [0, 0, 1, 1], [], []>} : vector<64x128xbf16>, vector<128x128xbf16>, vector<64x128xf32> -> vector<64x128xf32>
    %7 = arith.addf %3, %6 : vector<64x128xf32>
    %c0_6 = arith.constant 0 : index
    %c0_7 = arith.constant 0 : index
    %8 = vector.load %arg7[%c0_6, %c0_7] : memref<64x128xf32, #tpu.memory_space<vmem>>, vector<64x128xf32>
    tpu.vector_store %arg7[%c0_6, %c0_7], %7 {strides = array<i32>} : memref<64x128xf32, #tpu.memory_space<vmem>>, vector<64x128xf32>,
    %c0_i32_8 = arith.constant 0 : i32
    %9 = arith.cmpi eq, %arg2, %c0_i32_8 : i32
    %10 = arith.extui %9 : i1 to i32
    %c0_i32_9 = arith.constant 0 : i32
    %11 = arith.cmpi ne, %10, %c0_i32_9 : i32
    scf.if %11 {
      %c0_10 = arith.constant 0 : index
      %c0_11 = arith.constant 0 : index
      %12 = vector.load %arg7[%c0_10, %c0_11] : memref<64x128xf32, #tpu.memory_space<vmem>>, vector<64x128xf32>
      %c0_12 = arith.constant 0 : index
      %c0_13 = arith.constant 0 : index
      %13 = vector.load %arg5[%c0_12, %c0_13] : memref<1x128xf32, #tpu.memory_space<vmem>>, vector<1x128xf32>
      %14 = vector.broadcast %13 : vector<1x128xf32> to vector<64x128xf32>
      %15 = arith.addf %12, %14 : vector<64x128xf32>
      %c0_14 = arith.constant 0 : index
      %c0_15 = arith.constant 0 : index
      %16 = vector.load %arg6[%c0_14, %c0_15] : memref<64x128xf32, #tpu.memory_space<vmem>>, vector<64x128xf32>
      tpu.vector_store %arg6[%c0_14, %c0_15], %15 {strides = array<i32>} : memref<64x128xf32, #tpu.memory_space<vmem>>, vector<64x128xf32>,
    } else {
    }
    return
  }
  func.func @transform_0(%arg0: i32, %arg1: i32, %arg2: i32) -> (i32, i32) {
    %c0_i32 = arith.constant 0 : i32
    return %arg0, %arg2 : i32, i32
  }
  func.func @transform_1(%arg0: i32, %arg1: i32, %arg2: i32) -> (i32, i32) {
    %c0_i32 = arith.constant 0 : i32
    return %arg2, %arg1 : i32, i32
  }
  func.func @transform_2(%arg0: i32, %arg1: i32, %arg2: i32) -> (i32, i32) {
    %c0_i32 = arith.constant 0 : i32
    %c0_i32_0 = arith.constant 0 : i32
    return %c0_i32, %arg1 : i32, i32
  }
  func.func @transform_3(%arg0: i32, %arg1: i32, %arg2: i32) -> (i32, i32) {
    %c0_i32 = arith.constant 0 : i32
    return %arg0, %arg1 : i32, i32
  }
}

module attributes {stable_mosaic.version = 11 : i64} {
  func.func @_linear_kernel(%arg0: i32, %arg1: i32, %arg2: i32, %arg3: memref<64x128xf32, #tpu.memory_space<vmem>>, %arg4: memref<128x61xbf16, #tpu.memory_space<vmem>>, %arg5: memref<1x61xf32, #tpu.memory_space<vmem>>, %arg6: memref<64x61xf32, #tpu.memory_space<vmem>>, %arg7: memref<64x61xf32, #tpu.memory_space<vmem>>) attributes {dimension_semantics = [#tpu.dimension_semantics<parallel>, #tpu.dimension_semantics<parallel>, #tpu.dimension_semantics<arbitrary>], iteration_bounds = array<i64: 1, 1, 1>, scalar_prefetch = 0 : i64, scratch_operands = 1 : i64, tpu.core_type = #tpu.core_type<tc>, window_params = [{transform_indices = @transform_0, window_bounds = array<i64: 64, 128>}, {transform_indices = @transform_1, window_bounds = array<i64: 128, 61>}, {transform_indices = @transform_2, window_bounds = array<i64: 1, 61>}, {transform_indices = @transform_3, window_bounds = array<i64: 64, 61>}]} {
    %c0_i32 = arith.constant 0 : i32
    %0 = arith.cmpi eq, %arg2, %c0_i32 : i32
    %1 = arith.extui %0 : i1 to i32
    %c0_i32_0 = arith.constant 0 : i32
    %2 = arith.cmpi ne, %1, %c0_i32_0 : i32
    scf.if %2 {
      %cst_10 = arith.constant 0.000000e+00 : f32
      %13 = vector.broadcast %cst_10 : f32 to vector<64x61xf32>
      %c0_11 = arith.constant 0 : index
      %c0_12 = arith.constant 0 : index
      %14 = vector.load %arg7[%c0_11, %c0_12] : memref<64x61xf32, #tpu.memory_space<vmem>>, vector<64x61xf32>
      tpu.vector_store %arg7[%c0_11, %c0_12], %13 {strides = array<i32>} : memref<64x61xf32, #tpu.memory_space<vmem>>, vector<64x61xf32>,
    } else {
    }
    %c0 = arith.constant 0 : index
    %c0_1 = arith.constant 0 : index
    %3 = vector.load %arg7[%c0, %c0_1] : memref<64x61xf32, #tpu.memory_space<vmem>>, vector<64x61xf32>
    %c0_2 = arith.constant 0 : index
    %c0_3 = arith.constant 0 : index
    %4 = vector.load %arg3[%c0_2, %c0_3] : memref<64x128xf32, #tpu.memory_space<vmem>>, vector<64x128xf32>
    %5 = arith.truncf %4 : vector<64x128xf32> to vector<64x128xbf16>
    %c0_4 = arith.constant 0 : index
    %c0_5 = arith.constant 0 : index
    %6 = vector.load %arg4[%c0_4, %c0_5] : memref<128x61xbf16, #tpu.memory_space<vmem>>, vector<128x61xbf16>
    %cst = arith.constant dense<0.000000e+00> : vector<64x61xf32>
    %7 = tpu.matmul %5, %6, %cst {dimension_numbers = #tpu.dot_dimension_numbers<[1], [0], [0], [1], [0, 0, 1, 1], [], []>} : vector<64x128xbf16>, vector<128x61xbf16>, vector<64x61xf32> -> vector<64x61xf32>
    %8 = arith.addf %3, %7 : vector<64x61xf32>
    %c0_6 = arith.constant 0 : index
    %c0_7 = arith.constant 0 : index
    %9 = vector.load %arg7[%c0_6, %c0_7] : memref<64x61xf32, #tpu.memory_space<vmem>>, vector<64x61xf32>
    tpu.vector_store %arg7[%c0_6, %c0_7], %8 {strides = array<i32>} : memref<64x61xf32, #tpu.memory_space<vmem>>, vector<64x61xf32>,
    %c0_i32_8 = arith.constant 0 : i32
    %10 = arith.cmpi eq, %arg2, %c0_i32_8 : i32
    %11 = arith.extui %10 : i1 to i32
    %c0_i32_9 = arith.constant 0 : i32
    %12 = arith.cmpi ne, %11, %c0_i32_9 : i32
    scf.if %12 {
      %c0_10 = arith.constant 0 : index
      %c0_11 = arith.constant 0 : index
      %13 = vector.load %arg7[%c0_10, %c0_11] : memref<64x61xf32, #tpu.memory_space<vmem>>, vector<64x61xf32>
      %c0_12 = arith.constant 0 : index
      %c0_13 = arith.constant 0 : index
      %14 = vector.load %arg5[%c0_12, %c0_13] : memref<1x61xf32, #tpu.memory_space<vmem>>, vector<1x61xf32>
      %15 = vector.broadcast %14 : vector<1x61xf32> to vector<64x61xf32>
      %16 = arith.addf %13, %15 : vector<64x61xf32>
      %c0_14 = arith.constant 0 : index
      %c0_15 = arith.constant 0 : index
      %17 = vector.load %arg6[%c0_14, %c0_15] : memref<64x61xf32, #tpu.memory_space<vmem>>, vector<64x61xf32>
      tpu.vector_store %arg6[%c0_14, %c0_15], %16 {strides = array<i32>} : memref<64x61xf32, #tpu.memory_space<vmem>>, vector<64x61xf32>,
    } else {
    }
    return
  }
  func.func @transform_0(%arg0: i32, %arg1: i32, %arg2: i32) -> (i32, i32) {
    %c0_i32 = arith.constant 0 : i32
    return %arg0, %arg2 : i32, i32
  }
  func.func @transform_1(%arg0: i32, %arg1: i32, %arg2: i32) -> (i32, i32) {
    %c0_i32 = arith.constant 0 : i32
    return %arg2, %arg1 : i32, i32
  }
  func.func @transform_2(%arg0: i32, %arg1: i32, %arg2: i32) -> (i32, i32) {
    %c0_i32 = arith.constant 0 : i32
    %c0_i32_0 = arith.constant 0 : i32
    return %c0_i32, %arg1 : i32, i32
  }
  func.func @transform_3(%arg0: i32, %arg1: i32, %arg2: i32) -> (i32, i32) {
    %c0_i32 = arith.constant 0 : i32
    return %arg0, %arg1 : i32, i32
  }
}

module attributes {stable_mosaic.version = 11 : i64} {
  func.func @_linear_kernel(%arg0: i32, %arg1: i32, %arg2: i32, %arg3: memref<64x512xf32, #tpu.memory_space<vmem>>, %arg4: memref<512x128xbf16, #tpu.memory_space<vmem>>, %arg5: memref<1x128xf32, #tpu.memory_space<vmem>>, %arg6: memref<64x128xf32, #tpu.memory_space<vmem>>, %arg7: memref<64x128xf32, #tpu.memory_space<vmem>>) attributes {dimension_semantics = [#tpu.dimension_semantics<parallel>, #tpu.dimension_semantics<parallel>, #tpu.dimension_semantics<arbitrary>], iteration_bounds = array<i64: 1, 1, 1>, scalar_prefetch = 0 : i64, scratch_operands = 1 : i64, tpu.core_type = #tpu.core_type<tc>, window_params = [{transform_indices = @transform_0, window_bounds = array<i64: 64, 512>}, {transform_indices = @transform_1, window_bounds = array<i64: 512, 128>}, {transform_indices = @transform_2, window_bounds = array<i64: 1, 128>}, {transform_indices = @transform_3, window_bounds = array<i64: 64, 128>}]} {
    %c0_i32 = arith.constant 0 : i32
    %0 = arith.cmpi eq, %arg2, %c0_i32 : i32
    %1 = arith.extui %0 : i1 to i32
    %c0_i32_0 = arith.constant 0 : i32
    %2 = arith.cmpi ne, %1, %c0_i32_0 : i32
    scf.if %2 {
      %cst_10 = arith.constant 0.000000e+00 : f32
      %13 = vector.broadcast %cst_10 : f32 to vector<64x128xf32>
      %c0_11 = arith.constant 0 : index
      %c0_12 = arith.constant 0 : index
      %14 = vector.load %arg7[%c0_11, %c0_12] : memref<64x128xf32, #tpu.memory_space<vmem>>, vector<64x128xf32>
      tpu.vector_store %arg7[%c0_11, %c0_12], %13 {strides = array<i32>} : memref<64x128xf32, #tpu.memory_space<vmem>>, vector<64x128xf32>,
    } else {
    }
    %c0 = arith.constant 0 : index
    %c0_1 = arith.constant 0 : index
    %3 = vector.load %arg7[%c0, %c0_1] : memref<64x128xf32, #tpu.memory_space<vmem>>, vector<64x128xf32>
    %c0_2 = arith.constant 0 : index
    %c0_3 = arith.constant 0 : index
    %4 = vector.load %arg3[%c0_2, %c0_3] : memref<64x512xf32, #tpu.memory_space<vmem>>, vector<64x512xf32>
    %5 = arith.truncf %4 : vector<64x512xf32> to vector<64x512xbf16>
    %c0_4 = arith.constant 0 : index
    %c0_5 = arith.constant 0 : index
    %6 = vector.load %arg4[%c0_4, %c0_5] : memref<512x128xbf16, #tpu.memory_space<vmem>>, vector<512x128xbf16>
    %cst = arith.constant dense<0.000000e+00> : vector<64x128xf32>
    %7 = tpu.matmul %5, %6, %cst {dimension_numbers = #tpu.dot_dimension_numbers<[1], [0], [0], [1], [0, 0, 1, 1], [], []>} : vector<64x512xbf16>, vector<512x128xbf16>, vector<64x128xf32> -> vector<64x128xf32>
    %8 = arith.addf %3, %7 : vector<64x128xf32>
    %c0_6 = arith.constant 0 : index
    %c0_7 = arith.constant 0 : index
    %9 = vector.load %arg7[%c0_6, %c0_7] : memref<64x128xf32, #tpu.memory_space<vmem>>, vector<64x128xf32>
    tpu.vector_store %arg7[%c0_6, %c0_7], %8 {strides = array<i32>} : memref<64x128xf32, #tpu.memory_space<vmem>>, vector<64x128xf32>,
    %c0_i32_8 = arith.constant 0 : i32
    %10 = arith.cmpi eq, %arg2, %c0_i32_8 : i32
    %11 = arith.extui %10 : i1 to i32
    %c0_i32_9 = arith.constant 0 : i32
    %12 = arith.cmpi ne, %11, %c0_i32_9 : i32
    scf.if %12 {
      %c0_10 = arith.constant 0 : index
      %c0_11 = arith.constant 0 : index
      %13 = vector.load %arg7[%c0_10, %c0_11] : memref<64x128xf32, #tpu.memory_space<vmem>>, vector<64x128xf32>
      %c0_12 = arith.constant 0 : index
      %c0_13 = arith.constant 0 : index
      %14 = vector.load %arg5[%c0_12, %c0_13] : memref<1x128xf32, #tpu.memory_space<vmem>>, vector<1x128xf32>
      %15 = vector.broadcast %14 : vector<1x128xf32> to vector<64x128xf32>
      %16 = arith.addf %13, %15 : vector<64x128xf32>
      %c0_14 = arith.constant 0 : index
      %c0_15 = arith.constant 0 : index
      %17 = vector.load %arg6[%c0_14, %c0_15] : memref<64x128xf32, #tpu.memory_space<vmem>>, vector<64x128xf32>
      tpu.vector_store %arg6[%c0_14, %c0_15], %16 {strides = array<i32>} : memref<64x128xf32, #tpu.memory_space<vmem>>, vector<64x128xf32>,
    } else {
    }
    return
  }
  func.func @transform_0(%arg0: i32, %arg1: i32, %arg2: i32) -> (i32, i32) {
    %c0_i32 = arith.constant 0 : i32
    return %arg0, %arg2 : i32, i32
  }
  func.func @transform_1(%arg0: i32, %arg1: i32, %arg2: i32) -> (i32, i32) {
    %c0_i32 = arith.constant 0 : i32
    return %arg2, %arg1 : i32, i32
  }
  func.func @transform_2(%arg0: i32, %arg1: i32, %arg2: i32) -> (i32, i32) {
    %c0_i32 = arith.constant 0 : i32
    %c0_i32_0 = arith.constant 0 : i32
    return %c0_i32, %arg1 : i32, i32
  }
  func.func @transform_3(%arg0: i32, %arg1: i32, %arg2: i32) -> (i32, i32) {
    %c0_i32 = arith.constant 0 : i32
    return %arg0, %arg1 : i32, i32
  }
}

</mosaic_0001>

<bundles_post_ra>
// kernel: gpt_forward.16
= control target key start
LH: loop header
LB: loop body
LE: loop exit
PB: predicated region body
PF: predicated region fallthrough
CT: control target
= control target key end

     0   :  { %s285_s0 = inlined_call_operand.vmem [shape: f32[64,128], index: 0, kind: input, shape index: {}]   ;;  %s286_s1 = inlined_call_operand.vmem [shape: f32[1,128], index: 1, kind: input, shape index: {}]   ;;  %s287_s2 = inlined_call_operand.vmem [shape: f32[1,128], index: 2, kind: input, shape index: {}]   ;;  %s288_s3 = inlined_call_operand.vmem [shape: f32[64,128], index: 3, kind: output, shape index: {}]  }
   0x1   :  { %v14_v0 = vld [vmem:[%s285_s0] sm:$0xff]  ;;  %v16_v1 = vld [vmem:[%s285_s0 + $0x10] sm:$0xff]  ;;  %v15_v2 = vld [vmem:[%s285_s0 + $0x8] sm:$0xff] }
   0x2   :  { %22 = vadd.xlane.f32.xlu0 %v14_v0  ;;  %26 = vadd.xlane.f32.xlu1 %v16_v1  ;;  %v17_v3 = vld [vmem:[%s285_s0 + $0x18] sm:$0xff]  ;;  %v18_v4 = vld [vmem:[%s285_s0 + $0x20] sm:$0xff]  ;;  %v19_v5 = vld [vmem:[%s285_s0 + $0x28] sm:$0xff] }
   0x3   :  { %v20_v6 = vld [vmem:[%s285_s0 + $0x30] sm:$0xff]  ;;  %v21_v7 = vld [vmem:[%s285_s0 + $0x38] sm:$0xff]  ;;  %v153_v60 = vld [vmem:[%s286_s1] ss:$0 sm:$0xff] }
   0x6   :  { %24 = vadd.xlane.f32.xlu0 %v15_v2  ;;  %28 = vadd.xlane.f32.xlu1 %v17_v3 }
   0xa   :  { %30 = vadd.xlane.f32.xlu0 %v18_v4  ;;  %32 = vadd.xlane.f32.xlu1 %v19_v5 }
   0xe   :  { %34 = vadd.xlane.f32.xlu0 %v20_v6  ;;  %36 = vadd.xlane.f32.xlu1 %v21_v7 }
  0x8f   :  { %v23_v8 = vpop.xlane.xlu0 %22  ;;  %v27_v9 = vpop.xlane.xlu1 %26 }
  0x90   :  { %v39_v10 = vmul.f32 0.0078125, %v23_v8  ;;  %v41_v11 = vmul.f32 0.0078125, %v27_v9 }
  0x92   :  { %v215_v12 = vsub.f32 %v14_v0, %v39_v10  ;;  %v217_v13 = vsub.f32 %v16_v1, %v41_v11  ;;  %v154_v1 = vld [vmem:[%s287_s2] ss:$0 sm:$0xff] }
  0x93   :  { %v25_v14 = vpop.xlane.xlu0 %24  ;;  %v29_v15 = vpop.xlane.xlu1 %28 }
  0x94   :  { %v40_v16 = vmul.f32 0.0078125, %v25_v14  ;;  %v55_v17 = vmul.f32 %v215_v12, %v215_v12  ;;  %v42_v18 = vmul.f32 0.0078125, %v29_v15  ;;  %v57_v21 = vmul.f32 %v217_v13, %v217_v13 }
  0x96   :  { %v221_v19 = vsub.f32 %v15_v2, %v40_v16  ;;  %63 = vadd.xlane.f32.xlu0 %v55_v17  ;;  %v223_v20 = vsub.f32 %v17_v3, %v42_v18 }
  0x97   :  { %v31_v22 = vpop.xlane.xlu0 %30  ;;  %v33_v23 = vpop.xlane.xlu1 %32 }
  0x98   :  { %v43_v24 = vmul.f32 0.0078125, %v31_v22  ;;  %v56_v25 = vmul.f32 %v221_v19, %v221_v19  ;;  %v44_v26 = vmul.f32 0.0078125, %v33_v23  ;;  %v58_v29 = vmul.f32 %v223_v20, %v223_v20 }
  0x9a   :  { %v229_v27 = vsub.f32 %v18_v4, %v43_v24  ;;  %67 = vadd.xlane.f32.xlu0 %v57_v21  ;;  %65 = vadd.xlane.f32.xlu1 %v56_v25  ;;  %v231_v28 = vsub.f32 %v19_v5, %v44_v26 }
  0x9b   :  { %v35_v30 = vpop.xlane.xlu0 %34  ;;  %v37_v31 = vpop.xlane.xlu1 %36 }
  0x9c   :  { %v45_v32 = vmul.f32 0.0078125, %v35_v30  ;;  %v59_v33 = vmul.f32 %v229_v27, %v229_v27  ;;  %v46_v34 = vmul.f32 0.0078125, %v37_v31  ;;  %v60_v37 = vmul.f32 %v231_v28, %v231_v28 }
  0x9e   :  { %v237_v35 = vsub.f32 %v20_v6, %v45_v32  ;;  %69 = vadd.xlane.f32.xlu1 %v58_v29  ;;  %71 = vadd.xlane.f32.xlu0 %v59_v33  ;;  %v239_v36 = vsub.f32 %v21_v7, %v46_v34 }
  0xa0   :  { %v61_v38 = vmul.f32 %v237_v35, %v237_v35  ;;  %v62_v39 = vmul.f32 %v239_v36, %v239_v36 }
  0xa2   :  { %73 = vadd.xlane.f32.xlu1 %v60_v37  ;;  %75 = vadd.xlane.f32.xlu0 %v61_v38 }
  0xa6   :  { %77 = vadd.xlane.f32.xlu1 %v62_v39 }
 0x123   :  { %v64_v40 = vpop.xlane.xlu0 %63 }
 0x124   :  { %v79_v41 = vmul.f32 0.0078125, %v64_v40 }
 0x126   :  { %v87_v42 = vadd.f32 1e-05, %v79_v41 }
 0x127   :  { %v66_v43 = vpop.xlane.xlu1 %65  ;;  %v68_v44 = vpop.xlane.xlu0 %67 }
 0x128   :  { %155 = vrsqrt.f32 %v87_v42  ;;  %v80_v45 = vmul.f32 0.0078125, %v66_v43  ;;  %v81_v46 = vmul.f32 0.0078125, %v68_v44 }
 0x12a   :  { %v88_v47 = vadd.f32 1e-05, %v80_v45  ;;  %v89_v48 = vadd.f32 1e-05, %v81_v46 }
 0x12b   :  { %v70_v49 = vpop.xlane.xlu1 %69  ;;  %v72_v50 = vpop.xlane.xlu0 %71 }
 0x12c   :  { %157 = vrsqrt.f32 %v88_v47  ;;  %v82_v51 = vmul.f32 0.0078125, %v70_v49  ;;  %v83_v52 = vmul.f32 0.0078125, %v72_v50 }
 0x12d   :  { %159 = vrsqrt.f32 %v89_v48 }
 0x12e   :  { %v90_v53 = vadd.f32 1e-05, %v82_v51  ;;  %v91_v54 = vadd.f32 1e-05, %v83_v52 }
 0x12f   :  { %v74_v55 = vpop.xlane.xlu1 %73  ;;  %v76_v56 = vpop.xlane.xlu0 %75 }
 0x130   :  { %161 = vrsqrt.f32 %v90_v53  ;;  %v84_v57 = vmul.f32 0.0078125, %v74_v55  ;;  %v85_v58 = vmul.f32 0.0078125, %v76_v56 }
 0x131   :  { %163 = vrsqrt.f32 %v91_v54 }
 0x132   :  { %v156_v59 = vpop.eup %155  ;;  %v92_v61 = vadd.f32 1e-05, %v84_v57  ;;  %v93_v62 = vadd.f32 1e-05, %v85_v58 }
 0x133   :  { %v103_v63 = vmul.f32 %v156_v59, %v215_v12  ;;  %v78_v0 = vpop.xlane.xlu1 %77 }
 0x134   :  { %165 = vrsqrt.f32 %v92_v61  ;;  %v86_v2 = vmul.f32 0.0078125, %v78_v0 }
 0x135   :  { %v118_v3 = vmul.f32 %v153_v60, %v103_v63  ;;  %167 = vrsqrt.f32 %v93_v62 }
 0x136   :  { %v158_v4 = vpop.eup %157  ;;  %v94_v5 = vadd.f32 1e-05, %v86_v2 }
 0x137   :  { %v160_v6 = vpop.eup %159  ;;  %v133_v7 = vadd.f32 %v154_v1, %v118_v3  ;;  %v104_v8 = vmul.f32 %v158_v4, %v221_v19 }
 0x138   :  { %v105_v9 = vmul.f32 %v160_v6, %v217_v13  ;;  %169 = vrsqrt.f32 %v94_v5 }
 0x139   :  { %141 = vst [vmem:[%s288_s3] sm:$0xff] %v133_v7  ;;  %v119_v10 = vmul.f32 %v153_v60, %v104_v8 }
 0x13a   :  { %v162_v11 = vpop.eup %161  ;;  %v120_v12 = vmul.f32 %v153_v60, %v105_v9 }
 0x13b   :  { %v164_v14 = vpop.eup %163  ;;  %v134_v15 = vadd.f32 %v154_v1, %v119_v10  ;;  %v106_v16 = vmul.f32 %v162_v11, %v223_v20 }
 0x13c   :  { %v135_v17 = vadd.f32 %v154_v1, %v120_v12  ;;  %v107_v18 = vmul.f32 %v164_v14, %v229_v27 }
 0x13d   :  { %142 = vst [vmem:[%s288_s3 + $0x8] sm:$0xff] %v134_v15  ;;  %v121_v13 = vmul.f32 %v153_v60, %v106_v16 }
 0x13e   :  { %v166_v19 = vpop.eup %165  ;;  %143 = vst [vmem:[%s288_s3 + $0x10] sm:$0xff] %v135_v17  ;;  %v122_v21 = vmul.f32 %v153_v60, %v107_v18 }
 0x13f   :  { %v168_v22 = vpop.eup %167  ;;  %v136_v23 = vadd.f32 %v154_v1, %v121_v13  ;;  %v108_v24 = vmul.f32 %v166_v19, %v231_v28 }
 0x140   :  { %v137_v25 = vadd.f32 %v154_v1, %v122_v21  ;;  %v109_v20 = vmul.f32 %v168_v22, %v237_v35 }
 0x141   :  { %144 = vst [vmem:[%s288_s3 + $0x18] sm:$0xff] %v136_v23  ;;  %v123_v26 = vmul.f32 %v153_v60, %v108_v24 }
 0x142   :  { %v170_v27 = vpop.eup %169  ;;  %145 = vst [vmem:[%s288_s3 + $0x20] sm:$0xff] %v137_v25  ;;  %v124_v29 = vmul.f32 %v153_v60, %v109_v20 }
 0x143   :  { %v138_v30 = vadd.f32 %v154_v1, %v123_v26  ;;  %v110_v31 = vmul.f32 %v170_v27, %v239_v36 }
 0x144   :  { %v139_v32 = vadd.f32 %v154_v1, %v124_v29 }
 0x145   :  { %146 = vst [vmem:[%s288_s3 + $0x28] sm:$0xff] %v138_v30  ;;  %v125_v28 = vmul.f32 %v153_v60, %v110_v31 }
 0x146   :  { %147 = vst [vmem:[%s288_s3 + $0x30] sm:$0xff] %v139_v32 }
 0x147   :  { %v140_v33 = vadd.f32 %v154_v1, %v125_v28 }
 0x149   :  { %148 = vst [vmem:[%s288_s3 + $0x38] sm:$0xff] %v140_v33 }

// kernel: gpt_forward.17
= control target key start
LH: loop header
LB: loop body
LE: loop exit
PB: predicated region body
PF: predicated region fallthrough
CT: control target
= control target key end

     0   :  { %v614_v1 = vmov 0   ;;  %v454_v37 = vlaneseq  ;;  %s830_s1 = inlined_call_operand.vmem [shape: bf16[128,384], index: 1, kind: input, shape index: {}]   ;;  %s831_s0 = inlined_call_operand.vmem [shape: f32[64,128], index: 0, kind: input, shape index: {}]   ;;  %s832_s2 = inlined_call_operand.vmem [shape: f32[1,384], index: 2, kind: input, shape index: {}]   ;;  %s833_s3 = inlined_call_operand.vmem [shape: f32[64,384], index: 3, kind: output, shape index: {}]  }
   0x1   :  { %v582_v0 = vld [vmem:[%s830_s1 + $0x4] ss:$12 sps:$4 sm:$0xff]   ;;  %271 = vmatprep.mubr.bf16.mxu0 %v614_v1  ;;  %v584_v2 = vld [vmem:[%s830_s1] ss:$12 sps:$4 sm:$0xff]   ;;  %v585_v3 = vld [vmem:[%s830_s1 + $0x1c] ss:$12 sps:$4 sm:$0xff]  }
   0x2   :  { %239 = vmatprep.subr.bf16.mxu0 %v582_v0  ;;  %v587_v4 = vld [vmem:[%s830_s1 + $0x18] ss:$12 sps:$4 sm:$0xff]   ;;  %v588_v5 = vld [vmem:[%s830_s1 + $0x34] ss:$12 sps:$4 sm:$0xff]   ;;  %v590_v7 = vld [vmem:[%s830_s1 + $0x30] ss:$12 sps:$4 sm:$0xff]  }
   0x3   :  { %240 = vmatpush1.bf16.msra.mxu0 %v584_v2  ;;  %v594_v6 = vld [vmem:[%s830_s1 + $0x8] ss:$12 sps:$4 sm:$0xff]   ;;  %v591_v8 = vld [vmem:[%s830_s1 + $0x4c] ss:$12 sps:$4 sm:$0xff]   ;;  %v595_v12 = vld [vmem:[%s830_s1 + $0x64] ss:$12 sps:$4 sm:$0xff]  }
   0x4   :  { %241 = vmatprep.subr.bf16.mxu0 %v585_v3  ;;  %557 = vmatprep.subr.bf16.mxu1 %v594_v6  ;;  %v598_v9 = vld [vmem:[%s830_s1 + $0x20] ss:$12 sps:$4 sm:$0xff]   ;;  %v602_v10 = vld [vmem:[%s830_s1 + $0x38] ss:$12 sps:$4 sm:$0xff]   ;;  %v593_v11 = vld [vmem:[%s830_s1 + $0x48] ss:$12 sps:$4 sm:$0xff]  }
   0x5   :  { %558 = vmatpush3.bf16.msra.mxu1 %v594_v6  ;;  %v597_v13 = vld [vmem:[%s830_s1 + $0x60] ss:$12 sps:$4 sm:$0xff]   ;;  %v606_v14 = vld [vmem:[%s830_s1 + $0x50] ss:$12 sps:$4 sm:$0xff]   ;;  %v610_v19 = vld [vmem:[%s830_s1 + $0x68] ss:$12 sps:$4 sm:$0xff]  }
   0x6   :  { %559 = vmatprep.subr.bf16.mxu1 %v598_v9  ;;  %v599_v15 = vld [vmem:[%s830_s1 + $0x7c] ss:$12 sps:$4 sm:$0xff]   ;;  %v67_v16 = vld [vmem:[%s831_s0] sm:$0xff]  ;;  %v607_v24 = vld [vmem:[%s830_s1 + $0xac] ss:$12 sps:$4 sm:$0xff]   ;;  %v455_v38 = vshrl.u32 %v454_v37, 7 }
   0x7   :  { %242 = vmatpush1.bf16.msra.mxu0 %v587_v4  ;;  %v68_v17 = vld [vmem:[%s831_s0 + $0x8] sm:$0xff]  ;;  %v601_v20 = vld [vmem:[%s830_s1 + $0x78] ss:$12 sps:$4 sm:$0xff]   ;;  %v603_v21 = vld [vmem:[%s830_s1 + $0x94] ss:$12 sps:$4 sm:$0xff]  }
   0x8   :  { %243 = vmatprep.subr.bf16.mxu0 %v588_v5  ;;  %v75_v18 = vpack.c.bf16 %v68_v17, %v67_v16  ;;  %v611_v22 = vld [vmem:[%s830_s1 + $0x80] ss:$12 sps:$4 sm:$0xff]   ;;  %v605_v23 = vld [vmem:[%s830_s1 + $0x90] ss:$12 sps:$4 sm:$0xff]   ;;  %v612_v25 = vld [vmem:[%s830_s1 + $0x98] ss:$12 sps:$4 sm:$0xff]  }
   0x9   :  { %560 = vmatpush3.bf16.msra.mxu1 %v598_v9  ;;  %v609_v26 = vld [vmem:[%s830_s1 + $0xa8] ss:$12 sps:$4 sm:$0xff]   ;;  %v613_v27 = vld [vmem:[%s830_s1 + $0xb0] ss:$12 sps:$4 sm:$0xff]   ;;  %v71_v30 = vld [vmem:[%s831_s0 + $0x20] sm:$0xff]  ;;  %v456_v39 = vsub.s32 0, %v455_v38 }
   0xa   :  { %561 = vmatprep.subr.bf16.mxu1 %v602_v10  ;;  %573 = vmatprep.mubr.bf16.mxu1 %v75_v18  ;;  %v69_v28 = vld [vmem:[%s831_s0 + $0x10] sm:$0xff]  ;;  %v70_v29 = vld [vmem:[%s831_s0 + $0x18] sm:$0xff]  ;;  %v72_v31 = vld [vmem:[%s831_s0 + $0x28] sm:$0xff]  ;;  %v460_v41 = vsub.s32 1, %v455_v38  ;;  %v464_v44 = vsub.s32 2, %v455_v38 }
   0xb   :  { %244 = vmatpush1.bf16.msra.mxu0 %v590_v7  ;;  %v76_v32 = vpack.c.bf16 %v70_v29, %v69_v28  ;;  %v77_v33 = vpack.c.bf16 %v72_v31, %v71_v30  ;;  %v73_v34 = vld [vmem:[%s831_s0 + $0x30] sm:$0xff]  ;;  %v74_v35 = vld [vmem:[%s831_s0 + $0x38] sm:$0xff]  ;;  %v452_v40 = vld [vmem:[%s832_s2] sm:$0x7] }
   0xc   :  { %245 = vmatprep.subr.bf16.mxu0 %v591_v8  ;;  %v78_v36 = vpack.c.bf16 %v74_v35, %v73_v34  ;;  %v738_v42 = vrot.slane %v452_v40, %v456_v39  ;;  %v740_v43 = vrot.slane %v452_v40, %v460_v41  ;;  %v465_v52 = vrot.slane %v452_v40, %v464_v44 }
   0xd   :  { %562 = vmatpush3.bf16.msra.mxu1 %v602_v10 }
   0xe   :  { %563 = vmatprep.subr.bf16.mxu1 %v606_v14 }
   0xf   :  { %246 = vmatpush1.bf16.msra.mxu0 %v593_v11 }
  0x10   :  { %247 = vmatprep.subr.bf16.mxu0 %v595_v12 }
  0x11   :  { %564 = vmatpush3.bf16.msra.mxu1 %v606_v14 }
  0x12   :  { %565 = vmatprep.subr.bf16.mxu1 %v610_v19 }
  0x13   :  { %248 = vmatpush1.bf16.msra.mxu0 %v597_v13 }
  0x14   :  { %249 = vmatprep.subr.bf16.mxu0 %v599_v15 }
  0x15   :  { %566 = vmatpush3.bf16.msra.mxu1 %v610_v19 }
  0x16   :  { %567 = vmatprep.subr.bf16.mxu1 %v611_v22 }
  0x17   :  { %250 = vmatpush1.bf16.msra.mxu0 %v601_v20 }
  0x18   :  { %251 = vmatprep.subr.bf16.mxu0 %v603_v21 }
  0x19   :  { %568 = vmatpush3.bf16.msra.mxu1 %v611_v22 }
  0x1a   :  { %569 = vmatprep.subr.bf16.mxu1 %v612_v25 }
  0x1b   :  { %252 = vmatpush1.bf16.msra.mxu0 %v605_v23 }
  0x1c   :  { %253 = vmatprep.subr.bf16.mxu0 %v607_v24 }
  0x1d   :  { %570 = vmatpush3.bf16.msra.mxu1 %v612_v25 }
  0x1e   :  { %571 = vmatprep.subr.bf16.mxu1 %v613_v27 }
  0x1f   :  { %254 = vmatpush1.bf16.msra.mxu0 %v609_v26 }
  0x21   :  { %572 = vmatpush3.bf16.msra.mxu1 %v613_v27 }
  0x22   :  { %272 = vmatmul.mubr.bf16.vlgmr.msra.gmra.mrb[0].mxu0 %v75_v18 }
  0x23   :  { %281 = vmatprep.mubr.bf16.mxu0 %v614_v1 }
  0x24   :  { %574 = vmatmul.mubr.bf16.vlgmr.msra.gmra.mrb[0].mxu1 %v76_v32 }
  0x25   :  { %577 = vmatprep.mubr.bf16.mxu1 %v77_v33 }
  0x2a   :  { %282 = vmatmul.mubr.bf16.gmra.mrb[4].mxu0 %v76_v32 }
  0x2b   :  { %291 = vmatprep.mubr.bf16.mxu0 %v614_v1 }
  0x2c   :  { %578 = vmatmul.mubr.bf16.gmra.mrb[4].mxu1 %v78_v36 }
  0x32   :  { %292 = vmatmul.mubr.bf16.gmra.mrb[8].mxu0 %v77_v33 }
  0x33   :  { %301 = vmatprep.mubr.bf16.mxu0 %v614_v1 }
  0x3a   :  { %302 = vmatmul.mubr.bf16.gmra.mrb[12].mxu0 %v78_v36 }
  0xf5   :  { %v273_v45 = vpop.f32.mrb[0].mxu0 }
  0xf6   :  { %v469_v46 = vadd.f32 %v738_v42, %v273_v45  ;;  %v275_v47 = vpop.f32.mrb[1].mxu0 }
  0xf7   :  { %v470_v48 = vadd.f32 %v740_v43, %v275_v47  ;;  %v277_v49 = vpop.f32.mrb[2].mxu0  ;;  %v575_v54 = vpop.f32.mrb[0].mxu1 }
  0xf8   :  { %493 = vst [vmem:[%s833_s3] sm:$0xff] %v469_v46  ;;  %v472_v50 = vadd.f32 %v738_v42, %v277_v49  ;;  %v279_v51 = vpop.f32.mrb[3].mxu0  ;;  %v477_v55 = vadd.f32 %v575_v54, %v465_v52  ;;  %v346_v56 = vpop.f32.mrb[1].mxu1 }
  0xf9   :  { %494 = vst [vmem:[%s833_s3 + $0x8] sm:$0xff] %v470_v48  ;;  %v473_v53 = vadd.f32 %v740_v43, %v279_v51  ;;  %v471_v58 = vadd.f32 %v465_v52, %v346_v56  ;;  %v576_v59 = vpop.f32.mrb[2].mxu1 }
  0xfa   :  { %496 = vst [vmem:[%s833_s3 + $0x18] sm:$0xff] %v472_v50  ;;  %501 = vst [vmem:[%s833_s3 + $0x40] sm:$0xff] %v477_v55  ;;  %v480_v62 = vadd.f32 %v576_v59, %v465_v52  ;;  %v349_v63 = vpop.f32.mrb[3].mxu1 }
  0xfb   :  { %497 = vst [vmem:[%s833_s3 + $0x20] sm:$0xff] %v473_v53  ;;  %495 = vst [vmem:[%s833_s3 + $0x10] sm:$0xff] %v471_v58  ;;  %v474_v2 = vadd.f32 %v465_v52, %v349_v63 }
  0xfc   :  { %504 = vst [vmem:[%s833_s3 + $0x58] sm:$0xff] %v480_v62 }
  0xfd   :  { %v283_v57 = vpop.f32.mrb[4].mxu0  ;;  %498 = vst [vmem:[%s833_s3 + $0x28] sm:$0xff] %v474_v2 }
  0xfe   :  { %v475_v60 = vadd.f32 %v738_v42, %v283_v57  ;;  %v285_v61 = vpop.f32.mrb[5].mxu0 }
  0xff   :  { %v476_v0 = vadd.f32 %v740_v43, %v285_v61  ;;  %v287_v1 = vpop.f32.mrb[6].mxu0  ;;  %v579_v6 = vpop.f32.mrb[4].mxu1 }
 0x100   :  { %499 = vst [vmem:[%s833_s3 + $0x30] sm:$0xff] %v475_v60  ;;  %v478_v3 = vadd.f32 %v738_v42, %v287_v1  ;;  %v289_v4 = vpop.f32.mrb[7].mxu0  ;;  %v489_v7 = vadd.f32 %v579_v6, %v465_v52  ;;  %v362_v8 = vpop.f32.mrb[5].mxu1 }
 0x101   :  { %500 = vst [vmem:[%s833_s3 + $0x38] sm:$0xff] %v476_v0  ;;  %v479_v5 = vadd.f32 %v740_v43, %v289_v4  ;;  %v483_v10 = vadd.f32 %v465_v52, %v362_v8  ;;  %v580_v11 = vpop.f32.mrb[6].mxu1 }
 0x102   :  { %502 = vst [vmem:[%s833_s3 + $0x48] sm:$0xff] %v478_v3  ;;  %513 = vst [vmem:[%s833_s3 + $0xa0] sm:$0xff] %v489_v7  ;;  %v492_v14 = vadd.f32 %v580_v11, %v465_v52  ;;  %v365_v15 = vpop.f32.mrb[7].mxu1 }
 0x103   :  { %503 = vst [vmem:[%s833_s3 + $0x50] sm:$0xff] %v479_v5  ;;  %507 = vst [vmem:[%s833_s3 + $0x70] sm:$0xff] %v483_v10  ;;  %v486_v18 = vadd.f32 %v465_v52, %v365_v15 }
 0x104   :  { %516 = vst [vmem:[%s833_s3 + $0xb8] sm:$0xff] %v492_v14 }
 0x105   :  { %v293_v9 = vpop.f32.mrb[8].mxu0  ;;  %510 = vst [vmem:[%s833_s3 + $0x88] sm:$0xff] %v486_v18 }
 0x106   :  { %v481_v12 = vadd.f32 %v738_v42, %v293_v9  ;;  %v295_v13 = vpop.f32.mrb[9].mxu0 }
 0x107   :  { %v482_v16 = vadd.f32 %v740_v43, %v295_v13  ;;  %v297_v17 = vpop.f32.mrb[10].mxu0 }
 0x108   :  { %505 = vst [vmem:[%s833_s3 + $0x60] sm:$0xff] %v481_v12  ;;  %v484_v19 = vadd.f32 %v738_v42, %v297_v17  ;;  %v299_v20 = vpop.f32.mrb[11].mxu0 }
 0x109   :  { %506 = vst [vmem:[%s833_s3 + $0x68] sm:$0xff] %v482_v16  ;;  %v485_v21 = vadd.f32 %v740_v43, %v299_v20 }
 0x10a   :  { %508 = vst [vmem:[%s833_s3 + $0x78] sm:$0xff] %v484_v19 }
 0x10b   :  { %509 = vst [vmem:[%s833_s3 + $0x80] sm:$0xff] %v485_v21 }
 0x10d   :  { %v303_v22 = vpop.f32.mrb[12].mxu0 }
 0x10e   :  { %v487_v23 = vadd.f32 %v738_v42, %v303_v22  ;;  %v305_v24 = vpop.f32.mrb[13].mxu0 }
 0x10f   :  { %v488_v25 = vadd.f32 %v740_v43, %v305_v24  ;;  %v307_v26 = vpop.f32.mrb[14].mxu0 }
 0x110   :  { %511 = vst [vmem:[%s833_s3 + $0x90] sm:$0xff] %v487_v23  ;;  %v490_v27 = vadd.f32 %v738_v42, %v307_v26  ;;  %v309_v28 = vpop.f32.mrb[15].mxu0 }
 0x111   :  { %512 = vst [vmem:[%s833_s3 + $0x98] sm:$0xff] %v488_v25  ;;  %v491_v29 = vadd.f32 %v740_v43, %v309_v28 }
 0x112   :  { %514 = vst [vmem:[%s833_s3 + $0xa8] sm:$0xff] %v490_v27 }
 0x113   :  { %515 = vst [vmem:[%s833_s3 + $0xb0] sm:$0xff] %v491_v29 }

// kernel: gpt_forward.19
= control target key start
LH: loop header
LB: loop body
LE: loop exit
PB: predicated region body
PF: predicated region fallthrough
CT: control target
= control target key end

     0   :  { %s410_s1 = inlined_call_operand.vmem [shape: bf16[128,128], index: 1, kind: input, shape index: {}]   ;;  %s411_s0 = inlined_call_operand.vmem [shape: bf16[64,128], index: 0, kind: input, shape index: {}]   ;;  %s412_s2 = inlined_call_operand.vmem [shape: f32[1,128], index: 2, kind: input, shape index: {}]   ;;  %s413_s3 = inlined_call_operand.vmem [shape: f32[64,128], index: 3, kind: output, shape index: {}]  }
   0x1   :  { %v315_v0 = vld [vmem:[%s410_s1] sm:$0xff]   ;;  %v316_v1 = vld [vmem:[%s410_s1 + $0x8] sm:$0xff]   ;;  %v317_v2 = vld [vmem:[%s410_s1 + $0x10] sm:$0xff]  }
   0x2   :  { %275 = vmatprep.subr.bf16.mxu0 %v315_v0  ;;  %299 = vmatprep.subr.bf16.mxu1 %v315_v0  ;;  %v318_v3 = vld [vmem:[%s410_s1 + $0x18] sm:$0xff]   ;;  %v323_v4 = vld [vmem:[%s411_s0] sm:$0xff]   ;;  %v324_v5 = vld [vmem:[%s411_s0 + $0x10] sm:$0xff]  }
   0x3   :  { %276 = vmatpush3.bf16.msra.mxu0 %v315_v0  ;;  %307 = vmatpush3.bf16.msra.mxu1 %v315_v0  ;;  %v319_v6 = vld [vmem:[%s410_s1 + $0x20] sm:$0xff]   ;;  %v320_v7 = vld [vmem:[%s410_s1 + $0x28] sm:$0xff]   ;;  %v321_v8 = vld [vmem:[%s410_s1 + $0x30] sm:$0xff]  }
   0x4   :  { %277 = vmatprep.subr.bf16.mxu0 %v316_v1  ;;  %300 = vmatprep.subr.bf16.mxu1 %v316_v1  ;;  %v322_v9 = vld [vmem:[%s410_s1 + $0x38] sm:$0xff]   ;;  %v325_v10 = vld [vmem:[%s411_s0 + $0x8] sm:$0xff]   ;;  %v262_v12 = vld [vmem:[%s412_s2] ss:$0 sm:$0xff] }
   0x5   :  { %291 = vmatprep.mubr.bf16.mxu0 %v323_v4  ;;  %295 = vmatprep.mubr.bf16.mxu1 %v324_v5  ;;  %v326_v11 = vld [vmem:[%s411_s0 + $0x18] sm:$0xff]  }
   0x7   :  { %278 = vmatpush3.bf16.msra.mxu0 %v316_v1  ;;  %308 = vmatpush3.bf16.msra.mxu1 %v316_v1 }
   0x8   :  { %279 = vmatprep.subr.bf16.mxu0 %v317_v2  ;;  %301 = vmatprep.subr.bf16.mxu1 %v317_v2 }
   0xb   :  { %280 = vmatpush3.bf16.msra.mxu0 %v317_v2  ;;  %309 = vmatpush3.bf16.msra.mxu1 %v317_v2 }
   0xc   :  { %281 = vmatprep.subr.bf16.mxu0 %v318_v3  ;;  %302 = vmatprep.subr.bf16.mxu1 %v318_v3 }
   0xf   :  { %282 = vmatpush3.bf16.msra.mxu0 %v318_v3  ;;  %310 = vmatpush3.bf16.msra.mxu1 %v318_v3 }
  0x10   :  { %283 = vmatprep.subr.bf16.mxu0 %v319_v6  ;;  %303 = vmatprep.subr.bf16.mxu1 %v319_v6 }
  0x13   :  { %284 = vmatpush3.bf16.msra.mxu0 %v319_v6  ;;  %311 = vmatpush3.bf16.msra.mxu1 %v319_v6 }
  0x14   :  { %285 = vmatprep.subr.bf16.mxu0 %v320_v7  ;;  %304 = vmatprep.subr.bf16.mxu1 %v320_v7 }
  0x17   :  { %286 = vmatpush3.bf16.msra.mxu0 %v320_v7  ;;  %312 = vmatpush3.bf16.msra.mxu1 %v320_v7 }
  0x18   :  { %287 = vmatprep.subr.bf16.mxu0 %v321_v8  ;;  %305 = vmatprep.subr.bf16.mxu1 %v321_v8 }
  0x1b   :  { %288 = vmatpush3.bf16.msra.mxu0 %v321_v8  ;;  %313 = vmatpush3.bf16.msra.mxu1 %v321_v8 }
  0x1c   :  { %289 = vmatprep.subr.bf16.mxu0 %v322_v9  ;;  %306 = vmatprep.subr.bf16.mxu1 %v322_v9 }
  0x1f   :  { %290 = vmatpush3.bf16.msra.mxu0 %v322_v9  ;;  %314 = vmatpush3.bf16.msra.mxu1 %v322_v9 }
  0x22   :  { %292 = vmatmul.mubr.bf16.vlgmr.msra.gmra.mrb[0].mxu0 %v325_v10  ;;  %296 = vmatmul.mubr.bf16.vlgmr.msra.gmra.mrb[0].mxu1 %v326_v11 }
  0xf5   :  { %v293_v13 = vpop.f32.mrb[0].mxu0  ;;  %v297_v14 = vpop.f32.mrb[0].mxu1 }
  0xf6   :  { %v232_v15 = vadd.f32 %v293_v13, %v262_v12  ;;  %v236_v16 = vadd.f32 %v297_v14, %v262_v12  ;;  %v165_v17 = vpop.f32.mrb[1].mxu0  ;;  %v181_v18 = vpop.f32.mrb[1].mxu1 }
  0xf7   :  { %v230_v19 = vadd.f32 %v262_v12, %v165_v17  ;;  %v234_v20 = vadd.f32 %v262_v12, %v181_v18  ;;  %v294_v21 = vpop.f32.mrb[2].mxu0  ;;  %v298_v22 = vpop.f32.mrb[2].mxu1 }
  0xf8   :  { %240 = vst [vmem:[%s413_s3 + $0x10] sm:$0xff] %v232_v15  ;;  %244 = vst [vmem:[%s413_s3 + $0x30] sm:$0xff] %v236_v16  ;;  %v233_v23 = vadd.f32 %v294_v21, %v262_v12  ;;  %v237_v24 = vadd.f32 %v298_v22, %v262_v12  ;;  %v168_v25 = vpop.f32.mrb[3].mxu0  ;;  %v184_v26 = vpop.f32.mrb[3].mxu1 }
  0xf9   :  { %238 = vst [vmem:[%s413_s3] sm:$0xff] %v230_v19  ;;  %242 = vst [vmem:[%s413_s3 + $0x20] sm:$0xff] %v234_v20  ;;  %v231_v27 = vadd.f32 %v262_v12, %v168_v25  ;;  %v235_v28 = vadd.f32 %v262_v12, %v184_v26 }
  0xfa   :  { %241 = vst [vmem:[%s413_s3 + $0x18] sm:$0xff] %v233_v23  ;;  %245 = vst [vmem:[%s413_s3 + $0x38] sm:$0xff] %v237_v24 }
  0xfb   :  { %239 = vst [vmem:[%s413_s3 + $0x8] sm:$0xff] %v231_v27  ;;  %243 = vst [vmem:[%s413_s3 + $0x28] sm:$0xff] %v235_v28 }

// kernel: gpt_forward.21
= control target key start
LH: loop header
LB: loop body
LE: loop exit
PB: predicated region body
PF: predicated region fallthrough
CT: control target
= control target key end

     0   :  { %v735_v1 = vmov 0   ;;  %v534_v45 = vlaneseq  ;;  %s1023_s1 = inlined_call_operand.vmem [shape: bf16[128,512], index: 1, kind: input, shape index: {}]   ;;  %s1024_s0 = inlined_call_operand.vmem [shape: f32[64,128], index: 0, kind: input, shape index: {}]   ;;  %s1025_s2 = inlined_call_operand.vmem [shape: f32[1,512], index: 2, kind: input, shape index: {}]   ;;  %s1026_s3 = inlined_call_operand.vmem [shape: f32[64,512], index: 3, kind: output, shape index: {}]  }
   0x1   :  { %v687_v0 = vld [vmem:[%s1023_s1 + $0x4] ss:$16 sps:$4 sm:$0xff]   ;;  %319 = vmatprep.mubr.bf16.mxu0 %v735_v1  ;;  %392 = vmatprep.mubr.bf16.mxu1 %v735_v1  ;;  %v689_v2 = vld [vmem:[%s1023_s1 + $0xc] ss:$16 sps:$4 sm:$0xff]   ;;  %v691_v3 = vld [vmem:[%s1023_s1] ss:$16 sps:$4 sm:$0xff]  }
   0x2   :  { %287 = vmatprep.subr.bf16.mxu0 %v687_v0  ;;  %v692_v4 = vld [vmem:[%s1023_s1 + $0x8] ss:$16 sps:$4 sm:$0xff]   ;;  %360 = vmatprep.subr.bf16.mxu1 %v689_v2  ;;  %v693_v5 = vld [vmem:[%s1023_s1 + $0x24] ss:$16 sps:$4 sm:$0xff]   ;;  %v695_v6 = vld [vmem:[%s1023_s1 + $0x2c] ss:$16 sps:$4 sm:$0xff]  }
   0x3   :  { %288 = vmatpush1.bf16.msra.mxu0 %v691_v3  ;;  %361 = vmatpush1.bf16.msra.mxu1 %v692_v4  ;;  %v697_v7 = vld [vmem:[%s1023_s1 + $0x20] ss:$16 sps:$4 sm:$0xff]   ;;  %v698_v8 = vld [vmem:[%s1023_s1 + $0x28] ss:$16 sps:$4 sm:$0xff]   ;;  %v699_v9 = vld [vmem:[%s1023_s1 + $0x44] ss:$16 sps:$4 sm:$0xff]  }
   0x4   :  { %289 = vmatprep.subr.bf16.mxu0 %v693_v5  ;;  %362 = vmatprep.subr.bf16.mxu1 %v695_v6  ;;  %v701_v10 = vld [vmem:[%s1023_s1 + $0x4c] ss:$16 sps:$4 sm:$0xff]   ;;  %v703_v11 = vld [vmem:[%s1023_s1 + $0x40] ss:$16 sps:$4 sm:$0xff]   ;;  %v704_v12 = vld [vmem:[%s1023_s1 + $0x48] ss:$16 sps:$4 sm:$0xff]  }
   0x5   :  { %v705_v13 = vld [vmem:[%s1023_s1 + $0x64] ss:$16 sps:$4 sm:$0xff]   ;;  %v707_v14 = vld [vmem:[%s1023_s1 + $0x6c] ss:$16 sps:$4 sm:$0xff]   ;;  %v709_v15 = vld [vmem:[%s1023_s1 + $0x60] ss:$16 sps:$4 sm:$0xff]  }
   0x6   :  { %v710_v16 = vld [vmem:[%s1023_s1 + $0x68] ss:$16 sps:$4 sm:$0xff]   ;;  %v711_v17 = vld [vmem:[%s1023_s1 + $0x84] ss:$16 sps:$4 sm:$0xff]   ;;  %v713_v18 = vld [vmem:[%s1023_s1 + $0x8c] ss:$16 sps:$4 sm:$0xff]  }
   0x7   :  { %290 = vmatpush1.bf16.msra.mxu0 %v697_v7  ;;  %363 = vmatpush1.bf16.msra.mxu1 %v698_v8  ;;  %v715_v19 = vld [vmem:[%s1023_s1 + $0x80] ss:$16 sps:$4 sm:$0xff]   ;;  %v716_v20 = vld [vmem:[%s1023_s1 + $0x88] ss:$16 sps:$4 sm:$0xff]   ;;  %v717_v21 = vld [vmem:[%s1023_s1 + $0xa4] ss:$16 sps:$4 sm:$0xff]  }
   0x8   :  { %291 = vmatprep.subr.bf16.mxu0 %v699_v9  ;;  %364 = vmatprep.subr.bf16.mxu1 %v701_v10  ;;  %v719_v22 = vld [vmem:[%s1023_s1 + $0xac] ss:$16 sps:$4 sm:$0xff]   ;;  %v721_v23 = vld [vmem:[%s1023_s1 + $0xa0] ss:$16 sps:$4 sm:$0xff]   ;;  %v722_v24 = vld [vmem:[%s1023_s1 + $0xa8] ss:$16 sps:$4 sm:$0xff]  }
   0x9   :  { %v723_v25 = vld [vmem:[%s1023_s1 + $0xc4] ss:$16 sps:$4 sm:$0xff]   ;;  %v725_v26 = vld [vmem:[%s1023_s1 + $0xcc] ss:$16 sps:$4 sm:$0xff]   ;;  %v727_v27 = vld [vmem:[%s1023_s1 + $0xc0] ss:$16 sps:$4 sm:$0xff]  }
   0xa   :  { %v728_v28 = vld [vmem:[%s1023_s1 + $0xc8] ss:$16 sps:$4 sm:$0xff]   ;;  %v729_v29 = vld [vmem:[%s1023_s1 + $0xe4] ss:$16 sps:$4 sm:$0xff]   ;;  %v731_v30 = vld [vmem:[%s1023_s1 + $0xec] ss:$16 sps:$4 sm:$0xff]  }
   0xb   :  { %292 = vmatpush1.bf16.msra.mxu0 %v703_v11  ;;  %365 = vmatpush1.bf16.msra.mxu1 %v704_v12  ;;  %v733_v31 = vld [vmem:[%s1023_s1 + $0xe0] ss:$16 sps:$4 sm:$0xff]   ;;  %v734_v32 = vld [vmem:[%s1023_s1 + $0xe8] ss:$16 sps:$4 sm:$0xff]   ;;  %v535_v46 = vshrl.u32 %v534_v45, 7 }
   0xc   :  { %293 = vmatprep.subr.bf16.mxu0 %v705_v13  ;;  %366 = vmatprep.subr.bf16.mxu1 %v707_v14  ;;  %v83_v33 = vld [vmem:[%s1024_s0] sm:$0xff]  ;;  %v84_v34 = vld [vmem:[%s1024_s0 + $0x8] sm:$0xff]  ;;  %v85_v36 = vld [vmem:[%s1024_s0 + $0x10] sm:$0xff] }
   0xd   :  { %v91_v35 = vpack.c.bf16 %v84_v34, %v83_v33  ;;  %v86_v37 = vld [vmem:[%s1024_s0 + $0x18] sm:$0xff]  ;;  %v87_v39 = vld [vmem:[%s1024_s0 + $0x20] sm:$0xff]  ;;  %v88_v40 = vld [vmem:[%s1024_s0 + $0x28] sm:$0xff]  ;;  %v536_v47 = vsub.s32 0, %v535_v46  ;;  %v544_v48 = vsub.s32 2, %v535_v46  ;;  %v540_v50 = vsub.s32 1, %v535_v46 }
   0xe   :  { %v92_v38 = vpack.c.bf16 %v86_v37, %v85_v36  ;;  %v93_v41 = vpack.c.bf16 %v88_v40, %v87_v39  ;;  %v89_v42 = vld [vmem:[%s1024_s0 + $0x30] sm:$0xff]  ;;  %v90_v43 = vld [vmem:[%s1024_s0 + $0x38] sm:$0xff]  ;;  %v532_v49 = vld [vmem:[%s1025_s2] sm:$0xf]  ;;  %v548_v51 = vsub.s32 3, %v535_v46 }
   0xf   :  { %294 = vmatpush1.bf16.msra.mxu0 %v709_v15  ;;  %367 = vmatpush1.bf16.msra.mxu1 %v710_v16  ;;  %v94_v44 = vpack.c.bf16 %v90_v43, %v89_v42  ;;  %v887_v52 = vrot.slane %v532_v49, %v536_v47  ;;  %v889_v53 = vrot.slane %v532_v49, %v544_v48 }
  0x10   :  { %295 = vmatprep.subr.bf16.mxu0 %v711_v17  ;;  %368 = vmatprep.subr.bf16.mxu1 %v713_v18  ;;  %v891_v54 = vrot.slane %v532_v49, %v540_v50  ;;  %v893_v55 = vrot.slane %v532_v49, %v548_v51 }
  0x13   :  { %296 = vmatpush1.bf16.msra.mxu0 %v715_v19  ;;  %369 = vmatpush1.bf16.msra.mxu1 %v716_v20 }
  0x14   :  { %297 = vmatprep.subr.bf16.mxu0 %v717_v21  ;;  %370 = vmatprep.subr.bf16.mxu1 %v719_v22 }
  0x17   :  { %298 = vmatpush1.bf16.msra.mxu0 %v721_v23  ;;  %371 = vmatpush1.bf16.msra.mxu1 %v722_v24 }
  0x18   :  { %299 = vmatprep.subr.bf16.mxu0 %v723_v25  ;;  %372 = vmatprep.subr.bf16.mxu1 %v725_v26 }
  0x1b   :  { %300 = vmatpush1.bf16.msra.mxu0 %v727_v27  ;;  %373 = vmatpush1.bf16.msra.mxu1 %v728_v28 }
  0x1c   :  { %301 = vmatprep.subr.bf16.mxu0 %v729_v29  ;;  %374 = vmatprep.subr.bf16.mxu1 %v731_v30 }
  0x1f   :  { %302 = vmatpush1.bf16.msra.mxu0 %v733_v31  ;;  %375 = vmatpush1.bf16.msra.mxu1 %v734_v32 }
  0x22   :  { %320 = vmatmul.mubr.bf16.vlgmr.msra.gmra.mrb[0].mxu0 %v91_v35  ;;  %393 = vmatmul.mubr.bf16.vlgmr.msra.gmra.mrb[0].mxu1 %v91_v35 }
  0x23   :  { %329 = vmatprep.mubr.bf16.mxu0 %v735_v1  ;;  %402 = vmatprep.mubr.bf16.mxu1 %v735_v1 }
  0x2a   :  { %330 = vmatmul.mubr.bf16.gmra.mrb[4].mxu0 %v92_v38  ;;  %403 = vmatmul.mubr.bf16.gmra.mrb[4].mxu1 %v92_v38 }
  0x2b   :  { %339 = vmatprep.mubr.bf16.mxu0 %v735_v1  ;;  %412 = vmatprep.mubr.bf16.mxu1 %v735_v1 }
  0x32   :  { %340 = vmatmul.mubr.bf16.gmra.mrb[8].mxu0 %v93_v41  ;;  %413 = vmatmul.mubr.bf16.gmra.mrb[8].mxu1 %v93_v41 }
  0x33   :  { %349 = vmatprep.mubr.bf16.mxu0 %v735_v1  ;;  %422 = vmatprep.mubr.bf16.mxu1 %v735_v1 }
  0x3a   :  { %350 = vmatmul.mubr.bf16.gmra.mrb[12].mxu0 %v94_v44  ;;  %423 = vmatmul.mubr.bf16.gmra.mrb[12].mxu1 %v94_v44 }
  0xf5   :  { %v321_v56 = vpop.f32.mrb[0].mxu0  ;;  %v394_v57 = vpop.f32.mrb[0].mxu1 }
  0xf6   :  { %v554_v58 = vadd.f32 %v887_v52, %v321_v56  ;;  %v556_v59 = vadd.f32 %v889_v53, %v394_v57  ;;  %v323_v60 = vpop.f32.mrb[1].mxu0  ;;  %v396_v61 = vpop.f32.mrb[1].mxu1 }
  0xf7   :  { %v555_v62 = vadd.f32 %v891_v54, %v323_v60  ;;  %v557_v63 = vadd.f32 %v893_v55, %v396_v61  ;;  %v325_v0 = vpop.f32.mrb[2].mxu0  ;;  %v398_v1 = vpop.f32.mrb[2].mxu1 }
  0xf8   :  { %v586_v2 = vmax.f32 %v554_v58, 0.0  ;;  %v588_v3 = vmax.f32 %v556_v59, 0.0  ;;  %v558_v4 = vadd.f32 %v887_v52, %v325_v0  ;;  %v560_v5 = vadd.f32 %v889_v53, %v398_v1  ;;  %v327_v6 = vpop.f32.mrb[3].mxu0  ;;  %v400_v7 = vpop.f32.mrb[3].mxu1 }
  0xf9   :  { %v587_v8 = vmax.f32 %v555_v62, 0.0  ;;  %v589_v9 = vmax.f32 %v557_v63, 0.0  ;;  %v559_v10 = vadd.f32 %v891_v54, %v327_v6  ;;  %v561_v11 = vadd.f32 %v893_v55, %v400_v7 }
  0xfa   :  { %618 = vst [vmem:[%s1026_s3] sm:$0xff] %v586_v2  ;;  %620 = vst [vmem:[%s1026_s3 + $0x10] sm:$0xff] %v588_v3  ;;  %v590_v12 = vmax.f32 %v558_v4, 0.0  ;;  %v592_v13 = vmax.f32 %v560_v5, 0.0 }
  0xfb   :  { %619 = vst [vmem:[%s1026_s3 + $0x8] sm:$0xff] %v587_v8  ;;  %621 = vst [vmem:[%s1026_s3 + $0x18] sm:$0xff] %v589_v9  ;;  %v591_v14 = vmax.f32 %v559_v10, 0.0  ;;  %v593_v15 = vmax.f32 %v561_v11, 0.0 }
  0xfc   :  { %622 = vst [vmem:[%s1026_s3 + $0x20] sm:$0xff] %v590_v12  ;;  %624 = vst [vmem:[%s1026_s3 + $0x30] sm:$0xff] %v592_v13 }
  0xfd   :  { %623 = vst [vmem:[%s1026_s3 + $0x28] sm:$0xff] %v591_v14  ;;  %625 = vst [vmem:[%s1026_s3 + $0x38] sm:$0xff] %v593_v15  ;;  %v331_v16 = vpop.f32.mrb[4].mxu0  ;;  %v404_v17 = vpop.f32.mrb[4].mxu1 }
  0xfe   :  { %v562_v18 = vadd.f32 %v887_v52, %v331_v16  ;;  %v564_v19 = vadd.f32 %v889_v53, %v404_v17  ;;  %v333_v20 = vpop.f32.mrb[5].mxu0  ;;  %v406_v21 = vpop.f32.mrb[5].mxu1 }
  0xff   :  { %v563_v22 = vadd.f32 %v891_v54, %v333_v20  ;;  %v565_v23 = vadd.f32 %v893_v55, %v406_v21  ;;  %v335_v24 = vpop.f32.mrb[6].mxu0  ;;  %v408_v25 = vpop.f32.mrb[6].mxu1 }
 0x100   :  { %v594_v26 = vmax.f32 %v562_v18, 0.0  ;;  %v596_v27 = vmax.f32 %v564_v19, 0.0  ;;  %v566_v28 = vadd.f32 %v887_v52, %v335_v24  ;;  %v568_v29 = vadd.f32 %v889_v53, %v408_v25  ;;  %v337_v30 = vpop.f32.mrb[7].mxu0  ;;  %v410_v31 = vpop.f32.mrb[7].mxu1 }
 0x101   :  { %v595_v32 = vmax.f32 %v563_v22, 0.0  ;;  %v597_v33 = vmax.f32 %v565_v23, 0.0  ;;  %v567_v34 = vadd.f32 %v891_v54, %v337_v30  ;;  %v569_v35 = vadd.f32 %v893_v55, %v410_v31 }
 0x102   :  { %626 = vst [vmem:[%s1026_s3 + $0x40] sm:$0xff] %v594_v26  ;;  %628 = vst [vmem:[%s1026_s3 + $0x50] sm:$0xff] %v596_v27  ;;  %v598_v36 = vmax.f32 %v566_v28, 0.0  ;;  %v600_v37 = vmax.f32 %v568_v29, 0.0 }
 0x103   :  { %627 = vst [vmem:[%s1026_s3 + $0x48] sm:$0xff] %v595_v32  ;;  %629 = vst [vmem:[%s1026_s3 + $0x58] sm:$0xff] %v597_v33  ;;  %v599_v38 = vmax.f32 %v567_v34, 0.0  ;;  %v601_v39 = vmax.f32 %v569_v35, 0.0 }
 0x104   :  { %630 = vst [vmem:[%s1026_s3 + $0x60] sm:$0xff] %v598_v36  ;;  %632 = vst [vmem:[%s1026_s3 + $0x70] sm:$0xff] %v600_v37 }
 0x105   :  { %631 = vst [vmem:[%s1026_s3 + $0x68] sm:$0xff] %v599_v38  ;;  %633 = vst [vmem:[%s1026_s3 + $0x78] sm:$0xff] %v601_v39  ;;  %v341_v40 = vpop.f32.mrb[8].mxu0  ;;  %v414_v41 = vpop.f32.mrb[8].mxu1 }
 0x106   :  { %v570_v42 = vadd.f32 %v887_v52, %v341_v40  ;;  %v572_v43 = vadd.f32 %v889_v53, %v414_v41  ;;  %v343_v44 = vpop.f32.mrb[9].mxu0  ;;  %v416_v45 = vpop.f32.mrb[9].mxu1 }
 0x107   :  { %v571_v46 = vadd.f32 %v891_v54, %v343_v44  ;;  %v573_v47 = vadd.f32 %v893_v55, %v416_v45  ;;  %v345_v48 = vpop.f32.mrb[10].mxu0  ;;  %v418_v49 = vpop.f32.mrb[10].mxu1 }
 0x108   :  { %v602_v50 = vmax.f32 %v570_v42, 0.0  ;;  %v604_v51 = vmax.f32 %v572_v43, 0.0  ;;  %v574_v56 = vadd.f32 %v887_v52, %v345_v48  ;;  %v576_v57 = vadd.f32 %v889_v53, %v418_v49  ;;  %v347_v58 = vpop.f32.mrb[11].mxu0  ;;  %v420_v59 = vpop.f32.mrb[11].mxu1 }
 0x109   :  { %v603_v60 = vmax.f32 %v571_v46, 0.0  ;;  %v605_v61 = vmax.f32 %v573_v47, 0.0  ;;  %v575_v62 = vadd.f32 %v891_v54, %v347_v58  ;;  %v577_v63 = vadd.f32 %v893_v55, %v420_v59 }
 0x10a   :  { %634 = vst [vmem:[%s1026_s3 + $0x80] sm:$0xff] %v602_v50  ;;  %636 = vst [vmem:[%s1026_s3 + $0x90] sm:$0xff] %v604_v51  ;;  %v606_v0 = vmax.f32 %v574_v56, 0.0  ;;  %v608_v1 = vmax.f32 %v576_v57, 0.0 }
 0x10b   :  { %635 = vst [vmem:[%s1026_s3 + $0x88] sm:$0xff] %v603_v60  ;;  %637 = vst [vmem:[%s1026_s3 + $0x98] sm:$0xff] %v605_v61  ;;  %v607_v2 = vmax.f32 %v575_v62, 0.0  ;;  %v609_v3 = vmax.f32 %v577_v63, 0.0 }
 0x10c   :  { %638 = vst [vmem:[%s1026_s3 + $0xa0] sm:$0xff] %v606_v0  ;;  %640 = vst [vmem:[%s1026_s3 + $0xb0] sm:$0xff] %v608_v1 }
 0x10d   :  { %639 = vst [vmem:[%s1026_s3 + $0xa8] sm:$0xff] %v607_v2  ;;  %641 = vst [vmem:[%s1026_s3 + $0xb8] sm:$0xff] %v609_v3  ;;  %v351_v4 = vpop.f32.mrb[12].mxu0  ;;  %v424_v5 = vpop.f32.mrb[12].mxu1 }
 0x10e   :  { %v578_v6 = vadd.f32 %v887_v52, %v351_v4  ;;  %v580_v7 = vadd.f32 %v889_v53, %v424_v5  ;;  %v353_v8 = vpop.f32.mrb[13].mxu0  ;;  %v426_v9 = vpop.f32.mrb[13].mxu1 }
 0x10f   :  { %v579_v10 = vadd.f32 %v891_v54, %v353_v8  ;;  %v581_v11 = vadd.f32 %v893_v55, %v426_v9  ;;  %v355_v12 = vpop.f32.mrb[14].mxu0  ;;  %v428_v13 = vpop.f32.mrb[14].mxu1 }
 0x110   :  { %v610_v14 = vmax.f32 %v578_v6, 0.0  ;;  %v612_v15 = vmax.f32 %v580_v7, 0.0  ;;  %v582_v16 = vadd.f32 %v887_v52, %v355_v12  ;;  %v584_v17 = vadd.f32 %v889_v53, %v428_v13  ;;  %v357_v18 = vpop.f32.mrb[15].mxu0  ;;  %v430_v19 = vpop.f32.mrb[15].mxu1 }
 0x111   :  { %v611_v20 = vmax.f32 %v579_v10, 0.0  ;;  %v613_v21 = vmax.f32 %v581_v11, 0.0  ;;  %v583_v22 = vadd.f32 %v891_v54, %v357_v18  ;;  %v585_v23 = vadd.f32 %v893_v55, %v430_v19 }
 0x112   :  { %642 = vst [vmem:[%s1026_s3 + $0xc0] sm:$0xff] %v610_v14  ;;  %644 = vst [vmem:[%s1026_s3 + $0xd0] sm:$0xff] %v612_v15  ;;  %v614_v24 = vmax.f32 %v582_v16, 0.0  ;;  %v616_v52 = vmax.f32 %v584_v17, 0.0 }
 0x113   :  { %643 = vst [vmem:[%s1026_s3 + $0xc8] sm:$0xff] %v611_v20  ;;  %645 = vst [vmem:[%s1026_s3 + $0xd8] sm:$0xff] %v613_v21  ;;  %v615_v53 = vmax.f32 %v583_v22, 0.0  ;;  %v617_v54 = vmax.f32 %v585_v23, 0.0 }
 0x114   :  { %646 = vst [vmem:[%s1026_s3 + $0xe0] sm:$0xff] %v614_v24  ;;  %648 = vst [vmem:[%s1026_s3 + $0xf0] sm:$0xff] %v616_v52 }
 0x115   :  { %647 = vst [vmem:[%s1026_s3 + $0xe8] sm:$0xff] %v615_v53  ;;  %649 = vst [vmem:[%s1026_s3 + $0xf8] sm:$0xff] %v617_v54 }

// kernel: gpt_forward.31
= control target key start
LH: loop header
LB: loop body
LE: loop exit
PB: predicated region body
PF: predicated region fallthrough
CT: control target
= control target key end

     0   :  { %vm19_vm0 = vcmask 498688   ;;  %v302_v1 = vmov 0.0   ;;  %s422_s1 = inlined_call_operand.vmem [shape: bf16[128,61], index: 1, kind: input, shape index: {}]   ;;  %s423_s0 = inlined_call_operand.vmem [shape: f32[64,128], index: 0, kind: input, shape index: {}]   ;;  %s424_s2 = inlined_call_operand.vmem [shape: f32[1,61], index: 2, kind: input, shape index: {}]   ;;  %s425_s3 = inlined_call_operand.vmem [shape: f32[64,61], index: 3, kind: output, shape index: {}]  }
   0x1   :  { %v294_v0 = vld [vmem:[%s422_s1] sm:$0xff]   ;;  %22 = vst.msk [vmem:[#allocation2 + $0x10] sm:$0xff] %vm19_vm0, %v302_v1  ;;  %20 = vst.msk [vmem:[#allocation2] sm:$0xff] %vm19_vm0, %v302_v1  ;;  %v295_v2 = vld [vmem:[%s422_s1 + $0x8] sm:$0xff]  }
   0x2   :  { %21 = vst.msk [vmem:[#allocation2 + $0x8] sm:$0xff] %vm19_vm0, %v302_v1  ;;  %23 = vst.msk [vmem:[#allocation2 + $0x18] sm:$0xff] %vm19_vm0, %v302_v1  ;;  %253 = vmatprep.subr.bf16.mxu0 %v294_v0  ;;  %277 = vmatprep.subr.bf16.mxu1 %v294_v0  ;;  %v296_v3 = vld [vmem:[%s422_s1 + $0x10] sm:$0xff]   ;;  %v297_v4 = vld [vmem:[%s422_s1 + $0x18] sm:$0xff]  }
   0x3   :  { %24 = vst.msk [vmem:[#allocation2 + $0x20] sm:$0xff] %vm19_vm0, %v302_v1  ;;  %25 = vst.msk [vmem:[#allocation2 + $0x28] sm:$0xff] %vm19_vm0, %v302_v1  ;;  %254 = vmatpush3.bf16.msra.mxu0 %v294_v0  ;;  %285 = vmatpush3.bf16.msra.mxu1 %v294_v0  ;;  %v36_v5 = vld [vmem:[%s423_s0] sm:$0xff]  ;;  %v37_v6 = vld [vmem:[%s423_s0 + $0x8] sm:$0xff] }
   0x4   :  { %26 = vst.msk [vmem:[#allocation2 + $0x30] sm:$0xff] %vm19_vm0, %v302_v1  ;;  %27 = vst.msk [vmem:[#allocation2 + $0x38] sm:$0xff] %vm19_vm0, %v302_v1  ;;  %255 = vmatprep.subr.bf16.mxu0 %v295_v2  ;;  %278 = vmatprep.subr.bf16.mxu1 %v295_v2  ;;  %v40_v7 = vld [vmem:[%s423_s0 + $0x20] sm:$0xff]  ;;  %v44_v8 = vpack.c.bf16 %v37_v6, %v36_v5  ;;  %v41_v9 = vld [vmem:[%s423_s0 + $0x28] sm:$0xff] }
   0x5   :  { %v46_v10 = vpack.c.bf16 %v41_v9, %v40_v7  ;;  %v298_v11 = vld [vmem:[%s422_s1 + $0x20] sm:$0xff]   ;;  %v299_v12 = vld [vmem:[%s422_s1 + $0x28] sm:$0xff]   ;;  %v300_v13 = vld [vmem:[%s422_s1 + $0x30] sm:$0xff]  }
   0x6   :  { %269 = vmatprep.mubr.bf16.mxu0 %v44_v8  ;;  %v301_v14 = vld [vmem:[%s422_s1 + $0x38] sm:$0xff]   ;;  %v38_v15 = vld [vmem:[%s423_s0 + $0x10] sm:$0xff]  ;;  %v240_v45 = vld [vmem:[%s424_s2] ss:$0 sm:$0xff] }
   0x7   :  { %256 = vmatpush3.bf16.msra.mxu0 %v295_v2  ;;  %286 = vmatpush3.bf16.msra.mxu1 %v295_v2  ;;  %v39_v16 = vld [vmem:[%s423_s0 + $0x18] sm:$0xff]  ;;  %v42_v17 = vld [vmem:[%s423_s0 + $0x30] sm:$0xff] }
   0x8   :  { %257 = vmatprep.subr.bf16.mxu0 %v296_v3  ;;  %279 = vmatprep.subr.bf16.mxu1 %v296_v3  ;;  %v43_v18 = vld [vmem:[%s423_s0 + $0x38] sm:$0xff]  ;;  %v45_v19 = vpack.c.bf16 %v39_v16, %v38_v15  ;;  %v30_v21 = vld [vmem:[#allocation2 + $0x10] sm:$0xff]  ;;  %v28_v23 = vld [vmem:[#allocation2] sm:$0xff] }
   0x9   :  { %273 = vmatprep.mubr.bf16.mxu1 %v46_v10  ;;  %v47_v20 = vpack.c.bf16 %v43_v18, %v42_v17  ;;  %v31_v27 = vld [vmem:[#allocation2 + $0x18] sm:$0xff]  ;;  %v29_v33 = vld [vmem:[#allocation2 + $0x8] sm:$0xff] }
   0xa   :  { %v32_v24 = vld [vmem:[#allocation2 + $0x20] sm:$0xff]  ;;  %v33_v34 = vld [vmem:[#allocation2 + $0x28] sm:$0xff] }
   0xb   :  { %258 = vmatpush3.bf16.msra.mxu0 %v296_v3  ;;  %287 = vmatpush3.bf16.msra.mxu1 %v296_v3  ;;  %v34_v22 = vld [vmem:[#allocation2 + $0x30] sm:$0xff]  ;;  %v35_v28 = vld [vmem:[#allocation2 + $0x38] sm:$0xff] }
   0xc   :  { %259 = vmatprep.subr.bf16.mxu0 %v297_v4  ;;  %280 = vmatprep.subr.bf16.mxu1 %v297_v4 }
   0xf   :  { %260 = vmatpush3.bf16.msra.mxu0 %v297_v4  ;;  %288 = vmatpush3.bf16.msra.mxu1 %v297_v4 }
  0x10   :  { %261 = vmatprep.subr.bf16.mxu0 %v298_v11  ;;  %281 = vmatprep.subr.bf16.mxu1 %v298_v11 }
  0x13   :  { %262 = vmatpush3.bf16.msra.mxu0 %v298_v11  ;;  %289 = vmatpush3.bf16.msra.mxu1 %v298_v11 }
  0x14   :  { %263 = vmatprep.subr.bf16.mxu0 %v299_v12  ;;  %282 = vmatprep.subr.bf16.mxu1 %v299_v12 }
  0x17   :  { %264 = vmatpush3.bf16.msra.mxu0 %v299_v12  ;;  %290 = vmatpush3.bf16.msra.mxu1 %v299_v12 }
  0x18   :  { %265 = vmatprep.subr.bf16.mxu0 %v300_v13  ;;  %283 = vmatprep.subr.bf16.mxu1 %v300_v13 }
  0x1b   :  { %266 = vmatpush3.bf16.msra.mxu0 %v300_v13  ;;  %291 = vmatpush3.bf16.msra.mxu1 %v300_v13 }
  0x1c   :  { %267 = vmatprep.subr.bf16.mxu0 %v301_v14  ;;  %284 = vmatprep.subr.bf16.mxu1 %v301_v14 }
  0x1f   :  { %268 = vmatpush3.bf16.msra.mxu0 %v301_v14  ;;  %292 = vmatpush3.bf16.msra.mxu1 %v301_v14 }
  0x22   :  { %270 = vmatmul.mubr.bf16.vlgmr.msra.gmra.mrb[0].mxu0 %v45_v19  ;;  %274 = vmatmul.mubr.bf16.vlgmr.msra.gmra.mrb[0].mxu1 %v47_v20 }
  0xf5   :  { %v271_v25 = vpop.f32.mrb[0].mxu0  ;;  %v275_v26 = vpop.f32.mrb[0].mxu1 }
  0xf6   :  { %v179_v29 = vadd.f32 %v271_v25, %v30_v21  ;;  %v183_v30 = vadd.f32 %v275_v26, %v34_v22  ;;  %v146_v31 = vpop.f32.mrb[1].mxu0  ;;  %v162_v32 = vpop.f32.mrb[1].mxu1 }
  0xf7   :  { %v177_v35 = vadd.f32 %v146_v31, %v28_v23  ;;  %v181_v36 = vadd.f32 %v162_v32, %v32_v24  ;;  %v272_v37 = vpop.f32.mrb[2].mxu0  ;;  %v276_v38 = vpop.f32.mrb[2].mxu1 }
  0xf8   :  { %188 = vst.msk [vmem:[#allocation2 + $0x10] sm:$0xff] %vm19_vm0, %v179_v29  ;;  %192 = vst.msk [vmem:[#allocation2 + $0x30] sm:$0xff] %vm19_vm0, %v183_v30  ;;  %v180_v39 = vadd.f32 %v272_v37, %v31_v27  ;;  %v184_v40 = vadd.f32 %v276_v38, %v35_v28  ;;  %v149_v41 = vpop.f32.mrb[3].mxu0  ;;  %v165_v42 = vpop.f32.mrb[3].mxu1 }
  0xf9   :  { %186 = vst.msk [vmem:[#allocation2] sm:$0xff] %vm19_vm0, %v177_v35  ;;  %190 = vst.msk [vmem:[#allocation2 + $0x20] sm:$0xff] %vm19_vm0, %v181_v36  ;;  %v178_v43 = vadd.f32 %v149_v41, %v29_v33  ;;  %v182_v44 = vadd.f32 %v165_v42, %v33_v34 }
  0xfa   :  { %189 = vst.msk [vmem:[#allocation2 + $0x18] sm:$0xff] %vm19_vm0, %v180_v39  ;;  %193 = vst.msk [vmem:[#allocation2 + $0x38] sm:$0xff] %vm19_vm0, %v184_v40 }
  0xfb   :  { %187 = vst.msk [vmem:[#allocation2 + $0x8] sm:$0xff] %vm19_vm0, %v178_v43  ;;  %191 = vst.msk [vmem:[#allocation2 + $0x28] sm:$0xff] %vm19_vm0, %v182_v44 }
  0xff   :  { %v199_v46 = vld [vmem:[#allocation2 + $0x10] sm:$0xff] }
 0x100   :  { %v203_v47 = vld [vmem:[#allocation2 + $0x30] sm:$0xff]  ;;  %v214_v48 = vadd.f32 %v240_v45, %v199_v46  ;;  %v197_v50 = vld [vmem:[#allocation2] sm:$0xff] }
 0x101   :  { %v218_v49 = vadd.f32 %v240_v45, %v203_v47  ;;  %v201_v51 = vld [vmem:[#allocation2 + $0x20] sm:$0xff]  ;;  %v212_v52 = vadd.f32 %v240_v45, %v197_v50  ;;  %v200_v54 = vld [vmem:[#allocation2 + $0x18] sm:$0xff] }
 0x102   :  { %v216_v53 = vadd.f32 %v240_v45, %v201_v51  ;;  %v204_v55 = vld [vmem:[#allocation2 + $0x38] sm:$0xff]  ;;  %222 = vst.msk [vmem:[%s425_s3 + $0x10] sm:$0xff] %vm19_vm0, %v214_v48  ;;  %v215_v56 = vadd.f32 %v240_v45, %v200_v54  ;;  %v198_v58 = vld [vmem:[#allocation2 + $0x8] sm:$0xff] }
 0x103   :  { %226 = vst.msk [vmem:[%s425_s3 + $0x30] sm:$0xff] %vm19_vm0, %v218_v49  ;;  %v219_v57 = vadd.f32 %v240_v45, %v204_v55  ;;  %v202_v59 = vld [vmem:[#allocation2 + $0x28] sm:$0xff]  ;;  %220 = vst.msk [vmem:[%s425_s3] sm:$0xff] %vm19_vm0, %v212_v52  ;;  %v213_v60 = vadd.f32 %v240_v45, %v198_v58 }
 0x104   :  { %224 = vst.msk [vmem:[%s425_s3 + $0x20] sm:$0xff] %vm19_vm0, %v216_v53  ;;  %v217_v61 = vadd.f32 %v240_v45, %v202_v59  ;;  %223 = vst.msk [vmem:[%s425_s3 + $0x18] sm:$0xff] %vm19_vm0, %v215_v56 }
 0x105   :  { %227 = vst.msk [vmem:[%s425_s3 + $0x38] sm:$0xff] %vm19_vm0, %v219_v57  ;;  %221 = vst.msk [vmem:[%s425_s3 + $0x8] sm:$0xff] %vm19_vm0, %v213_v60 }
 0x106   :  { %225 = vst.msk [vmem:[%s425_s3 + $0x28] sm:$0xff] %vm19_vm0, %v217_v61 }

// kernel: gpt_forward.18
= control target key start
LH: loop header
LB: loop body
LE: loop exit
PB: predicated region body
PF: predicated region fallthrough
CT: control target
= control target key end

     0   :  { %s1955_s12 = smov 0   ;;  %s1957_s13 = smov 0   ;;  %s2374_s0 = inlined_call_operand.vmem [shape: bf16[2,4,32,32], index: 0, kind: input, shape index: {}]   ;;  %s2375_s1 = inlined_call_operand.vmem [shape: bf16[2,4,32,32], index: 1, kind: input, shape index: {}]   ;;  %s2376_s2 = inlined_call_operand.vmem [shape: bf16[2,4,32,32], index: 2, kind: input, shape index: {}]   ;;  %s2377_s3 = inlined_call_operand.vmem [shape: bf16[2,4,32,32], index: 3, kind: output, shape index: {}]  }
   0x1   :  { %s1959_s14 = smov 0   ;;  %s1961_s15 = smov 0  }
   0x2   :  { %s1963_s16 = smov 0   ;;  %s1965_s17 = smov 0  }
   0x3   :  { %s1967_s18 = smov 0   ;;  %s1969_s19 = smov 0  }
   0x4   :  { %s1971_s20 = smov 0   ;;  %s1973_s21 = smov 0  }
   0x5   :  { %s1975_s22 = smov 0  }
   0x6 LB: > { %s25_s23 = sadd.s32 1, %s1915_s19  ;;  %s28_s24 = sadd.s32 1, %s1919_s20  ;;  %s1927_s22 = sphi %s1975_s22, %s13_s22   ;;  %s1923_s21 = sphi %s1973_s21, %s2396_s21   ;;  %s1919_s20 = sphi %s1971_s20, %s2395_s20   ;;  %s1915_s19 = sphi %s1969_s19, %s2394_s19   ;;  %s1911_s18 = sphi %s1967_s18, %s2393_s18   ;;  %s1907_s17 = sphi %s1965_s17, %s2392_s17   ;;  %s1903_s16 = sphi %s1963_s16, %s2391_s16   ;;  %s1899_s15 = sphi %s1961_s15, %s2390_s15   ;;  %s1895_s14 = sphi %s1959_s14, %s2389_s14   ;;  %s1891_s13 = sphi %s1957_s13, %s2388_s13   ;;  %s1887_s12 = sphi %s1955_s12, %s2387_s12  }
   0x7   : > { %p26_p0 = scmp.ge.s32.totalorder %s25_s23, 2  ;;  %p48_p1 = scmp.ne.s32.totalorder %s1899_s15, %s1895_s14 }
   0x8   : > { %p49_p2 = scmp.eq.s32.totalorder %s1927_s22, 0  ;;  %s32_s25 = sadd.s32 1, %s1923_s21 }
   0x9   : > { %s2398_s23 = smov (%p26_p0, %s25_s23), 0  ;;  %s2400_s24 = smov (!%p26_p0, %s28_s24), %s1919_s20 }
   0xa   : > { %p30_p3 = scmp.ge.s32.totalorder %s2400_s24, 2  ;;  %s1551_s26 = sadd.s32 4294967295, %s1927_s22  }
   0xb   : > { %p2023_p4 = por %p49_p2, %p48_p1  ;;  %s65_s28 = ssub.s32 %s1915_s19, %s2398_s23 }
   0xc   : > { %s2402_s24 = smov (%p30_p3, %s2400_s24), 0  ;;  %s2404_s25 = smov (!%p30_p3, %s32_s25), %s1923_s21 }
   0xd   : > { %2381 = sst [smem:[#allocation9_spill]] %s2402_s24  ;;  %p76_p5 = scmp.ne.s32.totalorder %s1891_s13, %s1887_s12 }
   0xe   : > { %p34_p6 = scmp.ge.s32.totalorder %s2404_s25, 2  ;;  %p136_p7 = scmp.eq.s32.totalorder %s1551_s26, 7 }
   0xf   : > { %s37_s29 = ssub.s32 %s1919_s20, %s2402_s24  ;;  %p2036_p8 = por %p76_p5, %p49_p2 }
  0x10   : > { %s2406_s25 = smov (%p34_p6, %s2404_s25), 0  ;;  %s41_s4 = sadd.s32 1, %s1899_s15 }
  0x11   : > { %2383 = sst [smem:[#allocation10_spill]] %s2406_s25  ;;  %p2046_p9 = por %p136_p7, %p48_p1 }
  0x12   : > { %s36_s6 = ssub.s32 %s1923_s21, %s2406_s25  ;;  %s69_s7 = sadd.s32 1, %s1891_s13 }
  0x13   : > { %s38_s8 = sor.u32 %s37_s29, %s36_s6  ;;  %s66_s9 = sor.u32 %s65_s28, %s36_s6 }
  0x14   : > { %p39_p10 = scmp.eq.s32.totalorder %s38_s8, 0  ;;  %p67_p11 = scmp.eq.s32.totalorder %s66_s9, 0 }
  0x15   : > { %p1554_p12 = scmp.ge.s32.totalorder %s1927_s22, 8 }
  0x16   : > { %s2054_s10 = scalar_select %p39_p10, %s1899_s15, %s41_s4  }
  0x17   : > { %s2057_s11 = scalar_select %p67_p11, %s1891_s13, %s69_s7  }
  0x18   : > { %158 = sbr.rel (%p1554_p12) target bundleno = 58 (0x3a), region = 16 }
  0x1f   : > { %161 = sbr.rel (!%p2023_p4) target bundleno = 40 (0x28), region = 20  ;;  %s163_s26 = sand.u32 (%p2023_p4), 1, %s1899_s15  }
  0x20   : > { %s1556_s25 = sshll.u32 (%p2023_p4), %s1919_s20, 1  ;;  %s1555_s24 = sshll.u32 (%p2023_p4), %s163_s26, 5 }
  0x21   : > { %s1557_s29 = sshll.u32 (%p2023_p4), %s1923_s21, 4  ;;  %s165_s9 = scalar_lea.vmem (%p2023_p4), [#allocation5], %s1555_s24 }
  0x22   : > { %s168_s28 = sadd.s32 (%p2023_p4), %s1557_s29, %s1556_s25 }
  0x23   : > { %s1558_s6 = sshll.u32 (%p2023_p4), %s168_s28, 2 }
  0x24   : > { %s170_s7 = scalar_lea.vmem (%p2023_p4), %s2374_s0, %s1558_s6 }
  0x25   : > { %v186_v0 = vld [vmem:[%s170_s7] sm:$0xff] (%p2023_p4)   ;;  %v190_v1 = vld [vmem:[%s170_s7 + $0x10] sm:$0xff] (%p2023_p4)  }
  0x26   : > { %v194_v2 = vld [vmem:[%s170_s7 + $0x20] sm:$0xff]   ;;  %187 = vst [vmem:[%s165_s9] sm:$0xff] %v186_v0   ;;  %191 = vst [vmem:[%s165_s9 + $0x8] sm:$0xff] %v190_v1   ;;  %v198_v3 = vld [vmem:[%s170_s7 + $0x30] sm:$0xff]  }
  0x27   : > { %195 = vst [vmem:[%s165_s9 + $0x10] sm:$0xff] %v194_v2   ;;  %199 = vst [vmem:[%s165_s9 + $0x18] sm:$0xff] %v198_v3  }
  0x28 PF: > { %240 = sbr.rel (!%p2036_p8) target bundleno = 49 (0x31), region = 61  ;;  %s242_s25 = sand.u32 (%p2036_p8), 1, %s1891_s13  }
  0x29   : > { %s1560_s27 = sshll.u32 (%p2036_p8), %s1915_s19, 1  ;;  %s1559_s26 = sshll.u32 (%p2036_p8), %s242_s25, 5 }
  0x2a   : > { %s1561_s29 = sshll.u32 (%p2036_p8), %s1923_s21, 4  ;;  %s244_s7 = scalar_lea.vmem (%p2036_p8), [#allocation6], %s1559_s26 }
  0x2b   : > { %s247_s28 = sadd.s32 (%p2036_p8), %s1561_s29, %s1560_s27 }
  0x2c   : > { %s1562_s6 = sshll.u32 (%p2036_p8), %s247_s28, 2 }
  0x2d   : > { %s249_s4 = scalar_lea.vmem (%p2036_p8), %s2375_s1, %s1562_s6 }
  0x2e   : > { %v265_v4 = vld [vmem:[%s249_s4] sm:$0xff] (%p2036_p8)   ;;  %v269_v5 = vld [vmem:[%s249_s4 + $0x10] sm:$0xff] (%p2036_p8)  }
  0x2f   : > { %v273_v6 = vld [vmem:[%s249_s4 + $0x20] sm:$0xff]   ;;  %266 = vst [vmem:[%s244_s7] sm:$0xff] %v265_v4   ;;  %270 = vst [vmem:[%s244_s7 + $0x8] sm:$0xff] %v269_v5   ;;  %v277_v7 = vld [vmem:[%s249_s4 + $0x30] sm:$0xff]  }
  0x30   : > { %274 = vst [vmem:[%s244_s7 + $0x10] sm:$0xff] %v273_v6   ;;  %278 = vst [vmem:[%s244_s7 + $0x18] sm:$0xff] %v277_v7  }
  0x31 PF: > { %319 = sbr.rel (!%p2036_p8) target bundleno = 58 (0x3a), region = 102  ;;  %s321_s9 = sand.u32 (%p2036_p8), 1, %s1891_s13  }
  0x32   : > { %s1564_s25 = sshll.u32 (%p2036_p8), %s1915_s19, 1  ;;  %s1563_s27 = sshll.u32 (%p2036_p8), %s321_s9, 5 }
  0x33   : > { %s1565_s29 = sshll.u32 (%p2036_p8), %s1923_s21, 4  ;;  %s323_s4 = scalar_lea.vmem (%p2036_p8), [#allocation7], %s1563_s27 }
  0x34   : > { %s326_s28 = sadd.s32 (%p2036_p8), %s1565_s29, %s1564_s25 }
  0x35   : > { %s1566_s6 = sshll.u32 (%p2036_p8), %s326_s28, 2 }
  0x36   : > { %s328_s24 = scalar_lea.vmem (%p2036_p8), %s2376_s2, %s1566_s6 }
  0x37   : > { %v344_v8 = vld [vmem:[%s328_s24] sm:$0xff] (%p2036_p8)   ;;  %v348_v9 = vld [vmem:[%s328_s24 + $0x10] sm:$0xff] (%p2036_p8)  }
  0x38   : > { %v352_v10 = vld [vmem:[%s328_s24 + $0x20] sm:$0xff]   ;;  %345 = vst [vmem:[%s323_s4] sm:$0xff] %v344_v8   ;;  %349 = vst [vmem:[%s323_s4 + $0x8] sm:$0xff] %v348_v9   ;;  %v356_v11 = vld [vmem:[%s328_s24 + $0x30] sm:$0xff]  }
  0x39   : > { %353 = vst [vmem:[%s323_s4 + $0x10] sm:$0xff] %v352_v10   ;;  %357 = vst [vmem:[%s323_s4 + $0x18] sm:$0xff] %v356_v11  }
  0x3a PF: > { %p1567_p13 = scmp.ge.s32.totalorder %s1927_s22, 1  ;;  %p397_p0 = scmp.lt.s32.totalorder %s1927_s22, 9 }
  0x3c   : > { %p398_p1 = pnand %p1567_p13, %p397_p0 }
  0x3d   : > { %s404_s30 = sand.u32 (!%p398_p1), 1, %s1895_s14   ;;  %s411_s7 = sand.u32 (!%p398_p1), 1, %s1887_s12  }
  0x3e   : > { %401 = sbr.rel (%p398_p1) target bundleno = 1006 (0x3ee), region = 143  ;;  %s1568_s9 = sshll.u32 (!%p398_p1), %s404_s30, 5 }
  0x3f   : > { %s1569_s25 = sshll.u32 (!%p398_p1), %s411_s7, 5  ;;  %s2088_s27 = scalar_lea.vmem (!%p398_p1), [#allocation5], %s1568_s9 }
  0x40   : > { %s2090_s29 = scalar_lea.vmem (!%p398_p1), [#allocation6], %s1569_s25  ;;  %s2092_s28 = scalar_lea.vmem (!%p398_p1), [#allocation7], %s1569_s25 }
  0x41   : > { %s2094_s6 = scalar_lea.vmem (!%p398_p1), [#allocation8], %s1568_s9  ;;  %p1572_p2 = scmp.ne.s32.totalorder (!%p398_p1), %s1903_s16, 0 }
  0x45   : > { %456 = sbr.rel (%p1572_p2) target bundleno = 82 (0x52), region = 159  ;;  %vm457_vm0 = vcmask (!%p1572_p2), 7168   ;;  %vm474_vm1 = vcmask (!%p1572_p2), 261120   ;;  %v1929_v12 = vmov (!%p1572_p2), -1e+30   ;;  %v1930_v13 = vmov (!%p1572_p2), 0.0  }
  0x46   : > { %458 = vst.msk [vmem:[#allocation2] sm:$0xff] (!%p1572_p2), %vm457_vm0, %v1929_v12  ;;  %459 = vst.msk [vmem:[#allocation2 + $0x8] sm:$0xff] (!%p1572_p2), %vm457_vm0, %v1929_v12 }
  0x47   : > { %460 = vst.msk [vmem:[#allocation2 + $0x10] sm:$0xff] (!%p1572_p2), %vm457_vm0, %v1929_v12  ;;  %461 = vst.msk [vmem:[#allocation2 + $0x18] sm:$0xff] (!%p1572_p2), %vm457_vm0, %v1929_v12 }
  0x48   : > { %462 = vst.msk [vmem:[#allocation2 + $0x20] sm:$0xff] (!%p1572_p2), %vm457_vm0, %v1929_v12  ;;  %463 = vst.msk [vmem:[#allocation2 + $0x28] sm:$0xff] (!%p1572_p2), %vm457_vm0, %v1929_v12 }
  0x49   : > { %464 = vst.msk [vmem:[#allocation2 + $0x30] sm:$0xff] (!%p1572_p2), %vm457_vm0, %v1929_v12  ;;  %465 = vst.msk [vmem:[#allocation2 + $0x38] sm:$0xff] (!%p1572_p2), %vm457_vm0, %v1929_v12 }
  0x4a   : > { %466 = vst.msk [vmem:[#allocation3] sm:$0xff] (!%p1572_p2), %vm457_vm0, %v1930_v13  ;;  %467 = vst.msk [vmem:[#allocation3 + $0x8] sm:$0xff] (!%p1572_p2), %vm457_vm0, %v1930_v13 }
  0x4b   : > { %468 = vst.msk [vmem:[#allocation3 + $0x10] sm:$0xff] (!%p1572_p2), %vm457_vm0, %v1930_v13  ;;  %469 = vst.msk [vmem:[#allocation3 + $0x18] sm:$0xff] (!%p1572_p2), %vm457_vm0, %v1930_v13 }
  0x4c   : > { %470 = vst.msk [vmem:[#allocation3 + $0x20] sm:$0xff] %vm457_vm0, %v1930_v13  ;;  %471 = vst.msk [vmem:[#allocation3 + $0x28] sm:$0xff] %vm457_vm0, %v1930_v13 }
  0x4d   : > { %472 = vst.msk [vmem:[#allocation3 + $0x30] sm:$0xff] %vm457_vm0, %v1930_v13  ;;  %473 = vst.msk [vmem:[#allocation3 + $0x38] sm:$0xff] %vm457_vm0, %v1930_v13 }
  0x4e   : > { %475 = vst.msk [vmem:[#allocation4] sm:$0xff] %vm474_vm1, %v1930_v13  ;;  %476 = vst.msk [vmem:[#allocation4 + $0x8] sm:$0xff] %vm474_vm1, %v1930_v13 }
  0x4f   : > { %477 = vst.msk [vmem:[#allocation4 + $0x10] sm:$0xff] %vm474_vm1, %v1930_v13  ;;  %478 = vst.msk [vmem:[#allocation4 + $0x18] sm:$0xff] %vm474_vm1, %v1930_v13 }
  0x50   : > { %479 = vst.msk [vmem:[#allocation4 + $0x20] sm:$0xff] %vm474_vm1, %v1930_v13  ;;  %480 = vst.msk [vmem:[#allocation4 + $0x28] sm:$0xff] %vm474_vm1, %v1930_v13 }
  0x51   : > { %481 = vst.msk [vmem:[#allocation4 + $0x30] sm:$0xff] %vm474_vm1, %v1930_v13  ;;  %482 = vst.msk [vmem:[#allocation4 + $0x38] sm:$0xff] %vm474_vm1, %v1930_v13 }
  0x52 PF: > { %s1573_s12 = sshll.u32 %s1903_s16, 4  ;;  %s1574_s14 = sshll.u32 %s1907_s17, 4 }
  0x53   : > { %s485_s8 = sadd.s32 15, %s1574_s14 }
  0x54   : > { %p1575_p3 = scmp.gt.s32.totalorder %s1573_s12, %s485_s8 }
  0x55   : > { %v1779_v14 = vld [vmem:[%s2090_s29] sm:$0xff] (!%p1575_p3)   ;;  %v1931_v15 = vmov (!%p1575_p3), 0.0   ;;  %vm524_vm2 = vcmask (!%p1575_p3), 261120   ;;  %v1780_v16 = vld [vmem:[%s2090_s29 + $0x8] sm:$0xff] (!%p1575_p3)   ;;  %vm1932_vm3 = vmmov (!%p1575_p3), 0   ;;  %v1783_v20 = vld [vmem:[%s2090_s29 + $0x10] sm:$0xff] (!%p1575_p3)   ;;  %v743_v27 = vlaneseq (!%p1575_p3) }
  0x56   : > { %489 = sbr.rel (%p1575_p3) target bundleno = 839 (0x347), region = 163  ;;  %1635 = vmatprep.subr.bf16.mxu0 (!%p1575_p3), %v1931_v15  ;;  %1641 = vmatprep.subr.bf16.mxu1 (!%p1575_p3), %v1931_v15  ;;  %v529_v17 = vsel (!%p1575_p3), %vm524_vm2, %v1779_v14, 0  ;;  %v586_v18 = vsel (!%p1575_p3), %vm524_vm2, %v1780_v16, 0  ;;  %v1781_v19 = vld [vmem:[%s2088_s27] sm:$0xff] (!%p1575_p3)   ;;  %v1784_v21 = vld [vmem:[%s2090_s29 + $0x18] sm:$0xff] (!%p1575_p3)   ;;  %v1782_v22 = vld [vmem:[%s2088_s27 + $0x8] sm:$0xff] (!%p1575_p3)   ;;  %v746_v30 = vstv (!%p1575_p3), %s1574_s14 }
  0x57   : > { %1636 = vmatpush3.bf16.xpose.msra.mxu0 (!%p1575_p3), %v529_v17  ;;  %1637 = vmatprep.mubr.msk.bf16.mxu0 (!%p1575_p3), %vm1932_vm3, %v1931_v15  ;;  %v643_v23 = vsel (!%p1575_p3), %vm524_vm2, %v1783_v20, 0  ;;  %v700_v24 = vsel (!%p1575_p3), %vm524_vm2, %v1784_v21, 0  ;;  %v1785_v25 = vld [vmem:[%s2088_s27 + $0x10] sm:$0xff] (!%p1575_p3)   ;;  %v1786_v26 = vld [vmem:[%s2088_s27 + $0x18] sm:$0xff] (!%p1575_p3)   ;;  %v744_v28 = vshrl.u32 (!%p1575_p3), %v743_v27, 7  ;;  %v750_v29 = vand.u32 (!%p1575_p3), 127, %v743_v27 }
  0x58   : > { %1642 = vmatpush3.bf16.xpose.msra.mxu1 (!%p1575_p3), %v586_v18  ;;  %1643 = vmatprep.mubr.msk.bf16.mxu1 (!%p1575_p3), %vm1932_vm3, %v1931_v15  ;;  %v751_v31 = vstv (!%p1575_p3), %s1573_s12  ;;  %vm771_vm5 = vcmask (!%p1575_p3), 130048   ;;  %v1933_v4 = vmov (!%p1575_p3), 0   ;;  %v763_v5 = vld [vmem:[#allocation2] sm:$0xff] (!%p1575_p3)  ;;  %v765_v6 = vld [vmem:[#allocation2 + $0x10] sm:$0xff] (!%p1575_p3)  ;;  %vm940_vm7 = vcmask (!%p1575_p3), 7168   ;;  %v764_v11 = vld [vmem:[#allocation2 + $0x8] sm:$0xff] (!%p1575_p3) }
  0x59   : > { %1647 = vmatprep.subr.bf16.mxu0 (!%p1575_p3), %v1931_v15  ;;  %1653 = vmatprep.subr.bf16.mxu1 (!%p1575_p3), %v1931_v15  ;;  %v745_v32 = vadd.s32 (!%p1575_p3), 8, %v744_v28  ;;  %v747_v33 = vadd.s32 (!%p1575_p3), %v746_v30, %v744_v28  ;;  %v752_v34 = vadd.s32 (!%p1575_p3), %v751_v31, %v750_v29  ;;  %v766_v13 = vld [vmem:[#allocation2 + $0x18] sm:$0xff] (!%p1575_p3)  ;;  %v767_v20 = vld [vmem:[#allocation2 + $0x20] sm:$0xff] (!%p1575_p3)  ;;  %v2209_v27 = vld [vmem:[#allocation2 + $0x30] sm:$0xff] (!%p1575_p3) }
  0x5a   : > { %1778 = vset.pattern.permute.xlu1 (!%p1575_p3), %v1933_v4  ;;  %1777 = vset.pattern.permute.xlu0 (!%p1575_p3), %v1933_v4 }
  0x5b   : > { %v748_v35 = vadd.s32 (!%p1575_p3), %v746_v30, %v745_v32  ;;  %vm753_vm4 = vcmp.le.s32.totalorder (!%p1575_p3), %v752_v34, %v747_v33  ;;  %v2212_v30 = vld [vmem:[#allocation2 + $0x38] sm:$0xff] (!%p1575_p3) }
  0x5d   : > { %vm754_vm6 = vcmp.le.s32.totalorder %v752_v34, %v748_v35 }
  0x5e   : > { %1638 = vmatmul.mubr.msk.bf16.vlgmr.msra.gmra.mrb[0].mxu0 %vm524_vm2, %v1781_v19 }
  0x5f   : > { %1644 = vmatmul.mubr.msk.bf16.vlgmr.msra.gmra.mrb[0].mxu1 %vm524_vm2, %v1782_v22  ;;  %1648 = vmatpush3.bf16.xpose.msra.mxu0 %v643_v23  ;;  %v768_v22 = vld [vmem:[#allocation2 + $0x28] sm:$0xff] }
  0x60   : > { %1654 = vmatpush3.bf16.xpose.msra.mxu1 %v700_v24  ;;  %1649 = vmatprep.mubr.msk.bf16.mxu0 %vm1932_vm3, %v1931_v15 }
  0x61   : > { %1655 = vmatprep.mubr.msk.bf16.mxu1 %vm1932_vm3, %v1931_v15  ;;  %1659 = vmatprep.subr.bf16.mxu0 %v1931_v15 }
  0x62   : > { %1665 = vmatprep.subr.bf16.mxu1 %v1931_v15 }
  0x66   : > { %1650 = vmatmul.mubr.msk.bf16.vlgmr.msra.gmra.mrb[4].mxu0 %vm524_vm2, %v1785_v25 }
  0x67   : > { %1656 = vmatmul.mubr.msk.bf16.vlgmr.msra.gmra.mrb[4].mxu1 %vm524_vm2, %v1786_v26  ;;  %1661 = vmatprep.mubr.msk.bf16.mxu0 %vm1932_vm3, %v1931_v15 }
  0x68   : > { %1667 = vmatprep.mubr.msk.bf16.mxu1 %vm1932_vm3, %v1931_v15 }
 0x131   : > { %v565_v36 = vpop.f32.mrb[0].mxu0 }
 0x132   : > { %v2166_v37 = vsel %vm753_vm4, %v565_v36, -1e+30  ;;  %v622_v38 = vpop.f32.mrb[0].mxu1  ;;  %v1639_v39 = vpop.f32.mrb[1].mxu0 }
 0x133   : > { %v2169_v40 = vsel %vm753_vm4, %v622_v38, -1e+30  ;;  %v1645_v41 = vpop.f32.mrb[1].mxu1  ;;  %v568_v42 = vpop.f32.mrb[2].mxu0  ;;  %v772_v43 = vsel %vm771_vm5, %v2166_v37, -inf }
 0x134   : > { %v2174_v44 = vsel %vm754_vm6, %v568_v42, -1e+30  ;;  %v625_v45 = vpop.f32.mrb[2].mxu1  ;;  %v778_v46 = vsel %vm771_vm5, %v2169_v40, -inf  ;;  %773 = vmax.xlane.f32.xlu0 %v772_v43  ;;  %v1640_v47 = vpop.f32.mrb[3].mxu0 }
 0x135   : > { %v2179_v48 = vsel %vm754_vm6, %v625_v45, -1e+30  ;;  %779 = vmax.xlane.f32.xlu1 %v778_v46  ;;  %v1646_v49 = vpop.f32.mrb[3].mxu1  ;;  %v775_v50 = vsel %vm771_vm5, %v2174_v44, -inf  ;;  %v1787_v45 = vld [vmem:[%s2092_s28] sm:$0xff]  }
 0x136   : > { %v781_v51 = vsel %vm771_vm5, %v2179_v48, -inf  ;;  %1660 = vmatpush3.bf16.msra.mxu0 %v1787_v45 }
 0x137   : > { %1671 = vmatprep.subr.bf16.mxu0 %v1931_v15 }
 0x138   : > { %776 = vmax.xlane.f32.xlu0 %v775_v50  ;;  %v1788_v50 = vld [vmem:[%s2092_s28 + $0x8] sm:$0xff]  }
 0x139   : > { %782 = vmax.xlane.f32.xlu1 %v781_v51  ;;  %v679_v52 = vpop.f32.mrb[4].mxu0  ;;  %1666 = vmatpush3.bf16.msra.mxu1 %v1788_v50 }
 0x13a   : > { %v2186_v53 = vsel %vm753_vm4, %v679_v52, -1e+30  ;;  %v1651_v54 = vpop.f32.mrb[5].mxu0  ;;  %v736_v55 = vpop.f32.mrb[4].mxu1  ;;  %1677 = vmatprep.subr.bf16.mxu1 %v1931_v15 }
 0x13b   : > { %v682_v56 = vpop.f32.mrb[6].mxu0  ;;  %v2189_v57 = vsel %vm753_vm4, %v736_v55, -1e+30  ;;  %v1657_v58 = vpop.f32.mrb[5].mxu1  ;;  %v784_v59 = vsel %vm771_vm5, %v2186_v53, -inf }
 0x13c   : > { %v2194_v60 = vsel %vm754_vm6, %v682_v56, -1e+30  ;;  %v1652_v61 = vpop.f32.mrb[7].mxu0  ;;  %v739_v62 = vpop.f32.mrb[6].mxu1  ;;  %785 = vmax.xlane.f32.xlu0 %v784_v59  ;;  %v790_v2 = vsel %vm771_vm5, %v2189_v57, -inf }
 0x13d   : > { %v787_v63 = vsel %vm771_vm5, %v2194_v60, -inf  ;;  %v2199_v0 = vsel %vm754_vm6, %v739_v62, -1e+30  ;;  %v1658_v1 = vpop.f32.mrb[7].mxu1 }
 0x13e   : > { %788 = vmax.xlane.f32.xlu1 %v787_v63  ;;  %v793_v3 = vsel %vm771_vm5, %v2199_v0, -inf }
 0x140   : > { %791 = vmax.xlane.f32.xlu0 %v790_v2 }
 0x142   : > { %794 = vmax.xlane.f32.xlu1 %v793_v3 }
 0x1c1   : > { %v774_v7 = vpop.xlane.xlu0 %773 }
 0x1c2   : > { %v780_v8 = vpop.xlane.xlu1 %779  ;;  %v796_v9 = vmax.f32 %v763_v5, %v774_v7 }
 0x1c3   : > { %v798_v10 = vmax.f32 %v765_v6, %v780_v8 }
 0x1c4   : > { %v804_v12 = vsub.f32 %v763_v5, %v796_v9  ;;  %1225 = vst.msk [vmem:[#allocation2] sm:$0xff] %vm940_vm7, %v796_v9  ;;  %830 = vperm.xlu0 %1777, %v796_v9  }
 0x1c5   : > { %1227 = vst.msk [vmem:[#allocation2 + $0x10] sm:$0xff] %vm940_vm7, %v798_v10  ;;  %840 = vperm.xlu1 %1778, %v798_v10   ;;  %v777_v14 = vpop.xlane.xlu0 %776  ;;  %v806_v31 = vsub.f32 %v765_v6, %v798_v10 }
 0x1c6   : > { %v812_v16 = vmul.f32 1.442695, %v804_v12  ;;  %v783_v17 = vpop.xlane.xlu1 %782  ;;  %v797_v18 = vmax.f32 %v764_v11, %v777_v14 }
 0x1c7   : > { %v799_v19 = vmax.f32 %v766_v13, %v783_v17  ;;  %v816_v41 = vmul.f32 1.442695, %v806_v31 }
 0x1c8   : > { %1791 = vpow2.f32 %v812_v16  ;;  %1226 = vst.msk [vmem:[#allocation2 + $0x8] sm:$0xff] %vm940_vm7, %v797_v18  ;;  %v805_v42 = vsub.f32 %v764_v11, %v797_v18  ;;  %v1789_v16 = vld [vmem:[%s2092_s28 + $0x10] sm:$0xff]  }
 0x1c9   : > { %v807_v21 = vsub.f32 %v766_v13, %v799_v19  ;;  %1228 = vst.msk [vmem:[#allocation2 + $0x18] sm:$0xff] %vm940_vm7, %v799_v19  ;;  %835 = vperm.xlu1 %1778, %v797_v18   ;;  %v786_v23 = vpop.xlane.xlu0 %785 }
 0x1ca   : > { %v800_v24 = vmax.f32 %v767_v20, %v786_v23  ;;  %v814_v46 = vmul.f32 1.442695, %v805_v42 }
 0x1cb   : > { %v818_v25 = vmul.f32 1.442695, %v807_v21  ;;  %v789_v26 = vpop.xlane.xlu1 %788 }
 0x1cc   : > { %v801_v28 = vmax.f32 %v768_v22, %v789_v26  ;;  %1229 = vst.msk [vmem:[#allocation2 + $0x20] sm:$0xff] %vm940_vm7, %v800_v24  ;;  %v808_v47 = vsub.f32 %v767_v20, %v800_v24 }
 0x1cd   : > { %1793 = vpow2.f32 %v818_v25  ;;  %845 = vperm.xlu1 %1778, %v799_v19   ;;  %v792_v29 = vpop.xlane.xlu0 %791 }
 0x1ce   : > { %v809_v32 = vsub.f32 %v768_v22, %v801_v28  ;;  %1230 = vst.msk [vmem:[#allocation2 + $0x28] sm:$0xff] %vm940_vm7, %v801_v28  ;;  %v2216_v33 = vmax.f32 %v2209_v27, %v792_v29  ;;  %v820_v51 = vmul.f32 1.442695, %v808_v47  ;;  %v1790_v22 = vld [vmem:[%s2092_s28 + $0x18] sm:$0xff]  }
 0x1cf   : > { %v795_v34 = vpop.xlane.xlu1 %794 }
 0x1d0   : > { %v822_v35 = vmul.f32 1.442695, %v809_v32  ;;  %v810_v36 = vsub.f32 %v2209_v27, %v2216_v33  ;;  %1231 = vst.msk [vmem:[#allocation2 + $0x30] sm:$0xff] %vm940_vm7, %v2216_v33  ;;  %v2223_v38 = vmax.f32 %v2212_v30, %v795_v34 }
 0x1d1   : > { %850 = vperm.xlu1 %1778, %v800_v24  }
 0x1d2   : > { %v2225_v39 = vpop.eup %1791  ;;  %1795 = vpow2.f32 %v822_v35  ;;  %v811_v43 = vsub.f32 %v2212_v30, %v2223_v38  ;;  %1232 = vst.msk [vmem:[#allocation2 + $0x38] sm:$0xff] %vm940_vm7, %v2223_v38  ;;  %v824_v45 = vmul.f32 1.442695, %v810_v36 }
 0x1d3   : > { %959 = vperm.xlu0 %1777, %v2225_v39   ;;  %1797 = vpow2.f32 %v816_v41 }
 0x1d4   : > { %1799 = vpow2.f32 %v814_v46 }
 0x1d5   : > { %860 = vperm.xlu1 %1778, %v2216_v33   ;;  %1801 = vpow2.f32 %v820_v51 }
 0x1d7   : > { %v2234_v49 = vpop.eup %1793 }
 0x1d8   : > { %974 = vperm.xlu0 %1777, %v2234_v49  }
 0x1d9   : > { %855 = vperm.xlu1 %1778, %v801_v28  }
 0x1dc   : > { %v2239_v52 = vpop.eup %1795 }
 0x1dd   : > { %865 = vperm.xlu1 %1778, %v2223_v38   ;;  %984 = vperm.xlu0 %1777, %v2239_v52   ;;  %v2244_v54 = vpop.eup %1797 }
 0x1de   : > { %v2247_v55 = vpop.eup %1799 }
 0x1df   : > { %v2250_v56 = vpop.eup %1801 }
 0x1e1   : > { %969 = vperm.xlu1 %1778, %v2244_v54  }
 0x1e5   : > { %964 = vperm.xlu1 %1778, %v2247_v55  }
 0x1e9   : > { %979 = vperm.xlu1 %1778, %v2250_v56  }
 0x243   : > { %v831_v58 = vpop.permute.xlu0 %830 }
 0x244   : > { %v868_v59 = vsub.f32 %v2166_v37, %v831_v58  ;;  %v841_v61 = vpop.permute.xlu1 %840  ;;  %v892_v58 = vld [vmem:[#allocation3] sm:$0xff] }
 0x245   : > { %v870_v62 = vsub.f32 %v2169_v40, %v841_v61  ;;  %v894_v61 = vld [vmem:[#allocation3 + $0x10] sm:$0xff] }
 0x246   : > { %v876_v63 = vmul.f32 1.442695, %v868_v59  ;;  %v902_v27 = vmul.f32 %v2244_v54, %v894_v61  ;;  %v896_v54 = vld [vmem:[#allocation3 + $0x20] sm:$0xff] }
 0x247   : > { %v880_v1 = vmul.f32 1.442695, %v870_v62  ;;  %v900_v62 = vmul.f32 %v2225_v39, %v892_v58 }
 0x248   : > { %1803 = vpow2.f32 %v876_v63  ;;  %v836_v2 = vpop.permute.xlu1 %835 }
 0x249   : > { %1805 = vpow2.f32 %v880_v1  ;;  %v869_v3 = vsub.f32 %v2174_v44, %v836_v2  ;;  %v893_v1 = vld [vmem:[#allocation3 + $0x8] sm:$0xff] }
 0x24b   : > { %v878_v4 = vmul.f32 1.442695, %v869_v3  ;;  %v901_v3 = vmul.f32 %v2247_v55, %v893_v1 }
 0x24c   : > { %v846_v5 = vpop.permute.xlu1 %845 }
 0x24d   : > { %1807 = vpow2.f32 %v878_v4  ;;  %v871_v6 = vsub.f32 %v2179_v48, %v846_v5  ;;  %v895_v5 = vld [vmem:[#allocation3 + $0x18] sm:$0xff] }
 0x24e   : > { %v903_v39 = vmul.f32 %v2234_v49, %v895_v5 }
 0x24f   : > { %v882_v7 = vmul.f32 1.442695, %v871_v6 }
 0x250   : > { %v851_v8 = vpop.permute.xlu1 %850 }
 0x251   : > { %1809 = vpow2.f32 %v882_v7  ;;  %v872_v37 = vsub.f32 %v2186_v53, %v851_v8 }
 0x252   : > { %v1804_v9 = vpop.eup %1803  ;;  %v960_v51 = vpop.permute.xlu0 %959 }
 0x253   : > { %v1806_v40 = vpop.eup %1805  ;;  %v884_v10 = vmul.f32 1.442695, %v872_v37  ;;  %v908_v11 = vsel %vm771_vm5, %v1804_v9, 0.0  ;;  %v904_v37 = vmul.f32 %v2250_v56, %v896_v54 }
 0x254   : > { %v861_v12 = vpop.permute.xlu1 %860  ;;  %909 = vadd.xlane.f32.xlu1 %v908_v11  ;;  %v914_v44 = vsel %vm771_vm5, %v1806_v40, 0.0 }
 0x255   : > { %1811 = vpow2.f32 %v884_v10  ;;  %v874_v13 = vsub.f32 %v2189_v57, %v861_v12  ;;  %915 = vadd.xlane.f32.xlu0 %v914_v44  ;;  %v897_v12 = vld [vmem:[#allocation3 + $0x28] sm:$0xff] }
 0x256   : > { %v905_v49 = vmul.f32 %v2239_v52, %v897_v12 }
 0x257   : > { %v1808_v48 = vpop.eup %1807  ;;  %v888_v14 = vmul.f32 1.442695, %v874_v13  ;;  %v975_v38 = vpop.permute.xlu0 %974 }
 0x258   : > { %v856_v17 = vpop.permute.xlu1 %855  ;;  %v911_v53 = vsel %vm771_vm5, %v1808_v48, 0.0  ;;  %v1005_v18 = vpack.c.bf16 %v1808_v48, %v1804_v9  ;;  %v899_v48 = vld [vmem:[#allocation3 + $0x38] sm:$0xff] }
 0x259   : > { %1813 = vpow2.f32 %v888_v14  ;;  %v873_v19 = vsub.f32 %v2194_v60, %v856_v17  ;;  %912 = vadd.xlane.f32.xlu0 %v911_v53  ;;  %v949_v53 = vld [vmem:[#allocation4] sm:$0xff] }
 0x25a   : > { %1662 = vmatmul.mubr.msk.bf16.vlgmr.msra.gmra.mrb[8].mxu0 %vm771_vm5, %v1005_v18  ;;  %v950_v18 = vld [vmem:[#allocation4 + $0x8] sm:$0xff] }
 0x25b   : > { %v1810_v20 = vpop.eup %1809  ;;  %v886_v21 = vmul.f32 1.442695, %v873_v19  ;;  %1672 = vmatpush3.bf16.msra.mxu0 %v1789_v16  ;;  %1673 = vmatprep.mubr.msk.bf16.mxu0 %vm1932_vm3, %v1931_v15  ;;  %v997_v19 = vmul.f32 %v960_v51, %v949_v53 }
 0x25c   : > { %v866_v57 = vpop.permute.xlu1 %865  ;;  %v917_v23 = vsel %vm771_vm5, %v1810_v20, 0.0  ;;  %v1006_v24 = vpack.c.bf16 %v1810_v20, %v1806_v40  ;;  %v2287_v59 = vpop.permute.xlu0 %984  ;;  %v898_v40 = vld [vmem:[#allocation3 + $0x30] sm:$0xff] }
 0x25d   : > { %1815 = vpow2.f32 %v886_v21  ;;  %v875_v25 = vsub.f32 %v2199_v0, %v866_v57  ;;  %918 = vadd.xlane.f32.xlu1 %v917_v23  ;;  %v951_v20 = vld [vmem:[#allocation4 + $0x10] sm:$0xff] }
 0x25e   : > { %1668 = vmatmul.mubr.msk.bf16.vlgmr.msra.gmra.mrb[8].mxu1 %vm771_vm5, %v1006_v24  ;;  %v952_v24 = vld [vmem:[#allocation4 + $0x18] sm:$0xff] }
 0x25f   : > { %v1812_v60 = vpop.eup %1811  ;;  %v890_v26 = vmul.f32 1.442695, %v875_v25  ;;  %1678 = vmatpush3.bf16.msra.mxu1 %v1790_v22  ;;  %1679 = vmatprep.mubr.msk.bf16.mxu1 %vm1932_vm3, %v1931_v15  ;;  %v826_v15 = vmul.f32 1.442695, %v811_v43 }
 0x260   : > { %v920_v28 = vsel %vm771_vm5, %v1812_v60, 0.0  ;;  %v970_v50 = vpop.permute.xlu1 %969 }
 0x261   : > { %1817 = vpow2.f32 %v890_v26  ;;  %921 = vadd.xlane.f32.xlu0 %v920_v28  ;;  %v999_v25 = vmul.f32 %v970_v50, %v951_v20 }
 0x262   : > { %1819 = vpow2.f32 %v826_v15  ;;  %v953_v15 = vld [vmem:[#allocation4 + $0x20] sm:$0xff] }
 0x263   : > { %v1814_v29 = vpop.eup %1813  ;;  %1821 = vpow2.f32 %v824_v45  ;;  %v955_v45 = vld [vmem:[#allocation4 + $0x30] sm:$0xff] }
 0x264   : > { %v926_v31 = vsel %vm771_vm5, %v1814_v29, 0.0  ;;  %v965_v30 = vpop.permute.xlu1 %964 }
 0x265   : > { %927 = vadd.xlane.f32.xlu0 %v926_v31  ;;  %v998_v22 = vmul.f32 %v965_v30, %v950_v18 }
 0x267   : > { %v1816_v32 = vpop.eup %1815 }
 0x268   : > { %v923_v0 = vsel %vm771_vm5, %v1816_v32, 0.0  ;;  %v1007_v34 = vpack.c.bf16 %v1816_v32, %v1812_v60  ;;  %v2285_v43 = vpop.permute.xlu1 %979 }
 0x269   : > { %924 = vadd.xlane.f32.xlu1 %v923_v0 }
 0x26a   : > { %1674 = vmatmul.mubr.msk.bf16.vlgmr.msra.gmra.mrb[12].mxu0 %vm771_vm5, %v1007_v34 }
 0x26b   : > { %v1818_v35 = vpop.eup %1817 }
 0x26c   : > { %v929_v41 = vsel %vm771_vm5, %v1818_v35, 0.0  ;;  %v1008_v42 = vpack.c.bf16 %v1818_v35, %v1814_v29  ;;  %v1820_v46 = vpop.eup %1819  ;;  %v1000_v29 = vmul.f32 %v975_v38, %v952_v24  ;;  %v956_v38 = vld [vmem:[#allocation4 + $0x38] sm:$0xff] }
 0x26d   : > { %930 = vadd.xlane.f32.xlu1 %v929_v41  ;;  %v1822_v47 = vpop.eup %1821  ;;  %v907_v16 = vmul.f32 %v1820_v46, %v899_v48  ;;  %v954_v41 = vld [vmem:[#allocation4 + $0x28] sm:$0xff] }
 0x26e   : > { %1680 = vmatmul.mubr.msk.bf16.vlgmr.msra.gmra.mrb[12].mxu1 %vm771_vm5, %v1008_v42  ;;  %v906_v55 = vmul.f32 %v1822_v47, %v898_v40  ;;  %v1001_v42 = vmul.f32 %v2285_v43, %v953_v15  ;;  %v1002_v50 = vmul.f32 %v2287_v59, %v954_v41 }
 0x27b   : > { %994 = vperm.xlu0 %1777, %v1820_v46  }
 0x27e   : > { %989 = vperm.xlu1 %1778, %v1822_v47  }
 0x2e1   : > { %v910_v33 = vpop.xlane.xlu1 %909 }
 0x2e2   : > { %v916_v36 = vpop.xlane.xlu0 %915  ;;  %v932_v63 = vadd.f32 %v910_v33, %v900_v62 }
 0x2e3   : > { %v934_v2 = vadd.f32 %v916_v36, %v902_v27 }
 0x2e4   : > { %941 = vst.msk [vmem:[#allocation3] sm:$0xff] %vm940_vm7, %v932_v63 }
 0x2e5   : > { %943 = vst.msk [vmem:[#allocation3 + $0x10] sm:$0xff] %vm940_vm7, %v934_v2 }
 0x2e6   : > { %v913_v4 = vpop.xlane.xlu0 %912 }
 0x2e7   : > { %v933_v6 = vadd.f32 %v913_v4, %v901_v3 }
 0x2e9   : > { %942 = vst.msk [vmem:[#allocation3 + $0x8] sm:$0xff] %vm940_vm7, %v933_v6 }
 0x2ea   : > { %v919_v7 = vpop.xlane.xlu1 %918 }
 0x2eb   : > { %v935_v8 = vadd.f32 %v919_v7, %v903_v39 }
 0x2ed   : > { %944 = vst.msk [vmem:[#allocation3 + $0x18] sm:$0xff] %vm940_vm7, %v935_v8 }
 0x2ee   : > { %v922_v9 = vpop.xlane.xlu0 %921 }
 0x2ef   : > { %v936_v10 = vadd.f32 %v922_v9, %v904_v37 }
 0x2f1   : > { %945 = vst.msk [vmem:[#allocation3 + $0x20] sm:$0xff] %vm940_vm7, %v936_v10 }
 0x2f2   : > { %v928_v11 = vpop.xlane.xlu0 %927 }
 0x2f3   : > { %v938_v44 = vadd.f32 %v928_v11, %v906_v55 }
 0x2f5   : > { %947 = vst.msk [vmem:[#allocation3 + $0x30] sm:$0xff] %vm940_vm7, %v938_v44 }
 0x2f6   : > { %v925_v13 = vpop.xlane.xlu1 %924 }
 0x2f7   : > { %v937_v14 = vadd.f32 %v925_v13, %v905_v49 }
 0x2f9   : > { %946 = vst.msk [vmem:[#allocation3 + $0x28] sm:$0xff] %vm940_vm7, %v937_v14 }
 0x2fa   : > { %v931_v56 = vpop.xlane.xlu1 %930  ;;  %v995_v58 = vpop.permute.xlu0 %994 }
 0x2fb   : > { %v939_v17 = vadd.f32 %v931_v56, %v907_v16  ;;  %v1004_v63 = vmul.f32 %v995_v58, %v956_v38 }
 0x2fd   : > { %948 = vst.msk [vmem:[#allocation3 + $0x38] sm:$0xff] %vm940_vm7, %v939_v17 }
 0x2fe   : > { %v990_v46 = vpop.permute.xlu1 %989 }
 0x2ff   : > { %v1003_v62 = vmul.f32 %v990_v46, %v955_v45 }
 0x32d   : > { %v1052_v21 = vpop.f32.mrb[8].mxu0 }
 0x32e   : > { %v1209_v57 = vadd.f32 %v1052_v21, %v997_v19  ;;  %v1663_v23 = vpop.f32.mrb[9].mxu0 }
 0x32f   : > { %v1055_v52 = vpop.f32.mrb[10].mxu0 }
 0x330   : > { %1217 = vst.msk [vmem:[#allocation4] sm:$0xff] %vm524_vm2, %v1209_v57  ;;  %v1210_v60 = vadd.f32 %v1055_v52, %v998_v22  ;;  %v1664_v26 = vpop.f32.mrb[11].mxu0 }
 0x331   : > { %v1102_v28 = vpop.f32.mrb[8].mxu1 }
 0x332   : > { %1218 = vst.msk [vmem:[#allocation4 + $0x8] sm:$0xff] %vm524_vm2, %v1210_v60  ;;  %v1211_v31 = vadd.f32 %v1102_v28, %v999_v25  ;;  %v1669_v32 = vpop.f32.mrb[9].mxu1 }
 0x333   : > { %v1105_v0 = vpop.f32.mrb[10].mxu1 }
 0x334   : > { %1219 = vst.msk [vmem:[#allocation4 + $0x10] sm:$0xff] %vm524_vm2, %v1211_v31  ;;  %v1212_v34 = vadd.f32 %v1105_v0, %v1000_v29  ;;  %v1670_v35 = vpop.f32.mrb[11].mxu1 }
 0x336   : > { %1220 = vst.msk [vmem:[#allocation4 + $0x18] sm:$0xff] %vm524_vm2, %v1212_v34 }
 0x33d   : > { %v1152_v47 = vpop.f32.mrb[12].mxu0 }
 0x33e   : > { %v1213_v51 = vadd.f32 %v1152_v47, %v1001_v42  ;;  %v1675_v30 = vpop.f32.mrb[13].mxu0 }
 0x33f   : > { %v1155_v61 = vpop.f32.mrb[14].mxu0 }
 0x340   : > { %1221 = vst.msk [vmem:[#allocation4 + $0x20] sm:$0xff] %vm524_vm2, %v1213_v51  ;;  %v1214_v27 = vadd.f32 %v1155_v61, %v1002_v50  ;;  %v1676_v33 = vpop.f32.mrb[15].mxu0 }
 0x341   : > { %v1202_v36 = vpop.f32.mrb[12].mxu1 }
 0x342   : > { %1222 = vst.msk [vmem:[#allocation4 + $0x28] sm:$0xff] %vm524_vm2, %v1214_v27  ;;  %v1215_v43 = vadd.f32 %v1202_v36, %v1003_v62  ;;  %v1681_v1 = vpop.f32.mrb[13].mxu1 }
 0x343   : > { %v1205_v2 = vpop.f32.mrb[14].mxu1 }
 0x344   : > { %1223 = vst.msk [vmem:[#allocation4 + $0x30] sm:$0xff] %vm524_vm2, %v1215_v43  ;;  %v1216_v59 = vadd.f32 %v1205_v2, %v1004_v63  ;;  %v1682_v3 = vpop.f32.mrb[15].mxu1 }
 0x346   : > { %1224 = vst.msk [vmem:[#allocation4 + $0x38] sm:$0xff] %vm524_vm2, %v1216_v59 }
 0x347 PF: > { %p1596_p4 = scmp.ne.s32.totalorder %s1903_s16, 1 }
 0x348   : > { %v1239_v4 = vld [vmem:[#allocation3 + $0x10] sm:$0xff] (!%p1596_p4)  ;;  %v1237_v5 = vld [vmem:[#allocation3] sm:$0xff] (!%p1596_p4)  ;;  %v1240_v6 = vld [vmem:[#allocation3 + $0x18] sm:$0xff] (!%p1596_p4)  ;;  %v1934_v39 = vmov (!%p1596_p4), 0   ;;  %vm1341_vm8 = vcmask (!%p1596_p4), 257024  }
 0x349   : > { %1236 = sbr.rel (%p1596_p4) target bundleno = 998 (0x3e6), region = 167  ;;  %1824 = vset.pattern.permute.xlu1 (!%p1596_p4), %v1934_v39  ;;  %1823 = vset.pattern.permute.xlu0 (!%p1596_p4), %v1934_v39  ;;  %1825 = vrcp.f32 (!%p1596_p4), %v1239_v4  ;;  %v1238_v7 = vld [vmem:[#allocation3 + $0x8] sm:$0xff] (!%p1596_p4)  ;;  %v1241_v8 = vld [vmem:[#allocation3 + $0x20] sm:$0xff] (!%p1596_p4)  ;;  %v1244_v37 = vld [vmem:[#allocation3 + $0x38] sm:$0xff] (!%p1596_p4) }
 0x34a   : > { %1827 = vrcp.f32 (!%p1596_p4), %v1237_v5  ;;  %v1242_v54 = vld [vmem:[#allocation3 + $0x28] sm:$0xff] (!%p1596_p4)  ;;  %v1243_v9 = vld [vmem:[#allocation3 + $0x30] sm:$0xff] (!%p1596_p4)  ;;  %v1253_v14 = vld [vmem:[#allocation4] sm:$0xff] (!%p1596_p4) }
 0x34b   : > { %1829 = vrcp.f32 (!%p1596_p4), %v1240_v6  ;;  %v1255_v48 = vld [vmem:[#allocation4 + $0x10] sm:$0xff] (!%p1596_p4)  ;;  %v1256_v18 = vld [vmem:[#allocation4 + $0x18] sm:$0xff] (!%p1596_p4)  ;;  %v1254_v20 = vld [vmem:[#allocation4 + $0x8] sm:$0xff] (!%p1596_p4) }
 0x34c   : > { %1831 = vrcp.f32 (!%p1596_p4), %v1238_v7  ;;  %v1258_v52 = vld [vmem:[#allocation4 + $0x28] sm:$0xff] (!%p1596_p4)  ;;  %v1257_v60 = vld [vmem:[#allocation4 + $0x20] sm:$0xff] (!%p1596_p4)  ;;  %v1259_v35 = vld [vmem:[#allocation4 + $0x30] sm:$0xff] (!%p1596_p4) }
 0x34d   : > { %1833 = vrcp.f32 (!%p1596_p4), %v1242_v54  ;;  %v1260_v0 = vld [vmem:[#allocation4 + $0x38] sm:$0xff] (!%p1596_p4) }
 0x34e   : > { %1835 = vrcp.f32 (!%p1596_p4), %v1241_v8 }
 0x34f   : > { %1837 = vrcp.f32 (!%p1596_p4), %v1244_v37 }
 0x350   : > { %1839 = vrcp.f32 %v1243_v9 }
 0x353   : > { %v1826_v40 = vpop.eup %1825 }
 0x354   : > { %v1828_v10 = vpop.eup %1827  ;;  %1273 = vperm.xlu1 %1824, %v1826_v40  }
 0x355   : > { %v1830_v55 = vpop.eup %1829  ;;  %1263 = vperm.xlu0 %1823, %v1828_v10  }
 0x356   : > { %v1832_v11 = vpop.eup %1831 }
 0x357   : > { %v1834_v12 = vpop.eup %1833 }
 0x358   : > { %1278 = vperm.xlu1 %1824, %v1830_v55   ;;  %v1836_v44 = vpop.eup %1835 }
 0x359   : > { %1268 = vperm.xlu0 %1823, %v1832_v11   ;;  %v1838_v49 = vpop.eup %1837 }
 0x35a   : > { %v1840_v13 = vpop.eup %1839 }
 0x35c   : > { %1288 = vperm.xlu1 %1824, %v1834_v12  }
 0x35d   : > { %1283 = vperm.xlu0 %1823, %v1836_v44  }
 0x360   : > { %1298 = vperm.xlu1 %1824, %v1838_v49  }
 0x361   : > { %1293 = vperm.xlu0 %1823, %v1840_v13  }
 0x3d3   : > { %v1274_v16 = vpop.permute.xlu1 %1273 }
 0x3d4   : > { %v1303_v56 = vmul.f32 %v1274_v16, %v1255_v48  ;;  %v1264_v17 = vpop.permute.xlu0 %1263 }
 0x3d5   : > { %v1301_v53 = vmul.f32 %v1264_v17, %v1253_v14 }
 0x3d6   : > { %v1613_v19 = vpack.c.bf16 %v1303_v56, %v1303_v56 }
 0x3d7   : > { %v1611_v21 = vpack.c.bf16 %v1301_v53, %v1301_v53  ;;  %v1279_v22 = vpop.permute.xlu1 %1278 }
 0x3d8   : > { %1344 = vst.msk [vmem:[%s2094_s6 + $0x8] sm:$0xf] %vm1341_vm8, %v1613_v19  ;;  %v1304_v57 = vmul.f32 %v1279_v22, %v1256_v18  ;;  %v1269_v23 = vpop.permute.xlu0 %1268 }
 0x3d9   : > { %1342 = vst.msk [vmem:[%s2094_s6] sm:$0xf] %vm1341_vm8, %v1611_v21  ;;  %v1302_v24 = vmul.f32 %v1269_v23, %v1254_v20 }
 0x3da   : > { %v1614_v25 = vpack.c.bf16 %v1304_v57, %v1304_v57 }
 0x3db   : > { %v1612_v26 = vpack.c.bf16 %v1302_v24, %v1302_v24  ;;  %v1289_v28 = vpop.permute.xlu1 %1288 }
 0x3dc   : > { %1345 = vst.msk [vmem:[%s2094_s6 + $0xc] sm:$0xf] %vm1341_vm8, %v1614_v25  ;;  %v1306_v29 = vmul.f32 %v1289_v28, %v1258_v52  ;;  %v1284_v31 = vpop.permute.xlu0 %1283 }
 0x3dd   : > { %1343 = vst.msk [vmem:[%s2094_s6 + $0x4] sm:$0xf] %vm1341_vm8, %v1612_v26  ;;  %v1305_v32 = vmul.f32 %v1284_v31, %v1257_v60 }
 0x3de   : > { %v1616_v34 = vpack.c.bf16 %v1306_v29, %v1306_v29 }
 0x3df   : > { %v1615_v15 = vpack.c.bf16 %v1305_v32, %v1305_v32  ;;  %v1299_v41 = vpop.permute.xlu1 %1298 }
 0x3e0   : > { %1347 = vst.msk [vmem:[%s2094_s6 + $0x14] sm:$0xf] %vm1341_vm8, %v1616_v34  ;;  %v1308_v42 = vmul.f32 %v1299_v41, %v1260_v0  ;;  %v1294_v45 = vpop.permute.xlu0 %1293 }
 0x3e1   : > { %1346 = vst.msk [vmem:[%s2094_s6 + $0x10] sm:$0xf] %vm1341_vm8, %v1615_v15  ;;  %v1307_v46 = vmul.f32 %v1294_v45, %v1259_v35 }
 0x3e2   : > { %v1618_v47 = vpack.c.bf16 %v1308_v42, %v1308_v42 }
 0x3e3   : > { %v1617_v50 = vpack.c.bf16 %v1307_v46, %v1307_v46 }
 0x3e4   : > { %1349 = vst.msk [vmem:[%s2094_s6 + $0x1c] sm:$0xf] %vm1341_vm8, %v1618_v47 }
 0x3e5   : > { %1348 = vst.msk [vmem:[%s2094_s6 + $0x18] sm:$0xf] %vm1341_vm8, %v1617_v50 }
 0x3e6 PF: > { %1356 = sbr.rel (!%p2046_p9) target bundleno = 1006 (0x3ee), region = 171  ;;  %s1606_s16 = sshll.u32 (%p2046_p9), %s1907_s17, 1  ;;  %v1377_v51 = vld [vmem:[%s2094_s6] sm:$0xff] (%p2046_p9)   ;;  %v1381_v30 = vld [vmem:[%s2094_s6 + $0x8] sm:$0xff] (%p2046_p9)  }
 0x3e7   : > { %s1607_s26 = sshll.u32 (%p2046_p9), %s1911_s18, 4 }
 0x3e8   : > { %s1359_s24 = sadd.s32 (%p2046_p9), %s1607_s26, %s1606_s16  ;;  %v1385_v38 = vld [vmem:[%s2094_s6 + $0x10] sm:$0xff] (%p2046_p9)  }
 0x3e9   : > { %s1608_s4 = sshll.u32 (%p2046_p9), %s1359_s24, 2 }
 0x3ea   : > { %s1361_s9 = scalar_lea.vmem (%p2046_p9), %s2377_s3, %s1608_s4 }
 0x3eb   : > { %1378 = vst [vmem:[%s1361_s9] sm:$0xff] (%p2046_p9), %v1377_v51   ;;  %1382 = vst [vmem:[%s1361_s9 + $0x10] sm:$0xff] (%p2046_p9), %v1381_v30  }
 0x3ec   : > { %v1389_v58 = vld [vmem:[%s2094_s6 + $0x18] sm:$0xff] (%p2046_p9)   ;;  %1386 = vst [vmem:[%s1361_s9 + $0x20] sm:$0xff] (%p2046_p9), %v1385_v38  }
 0x3ed   : > { %1390 = vst [vmem:[%s1361_s9 + $0x30] sm:$0xff] %v1389_v58  }
 0x3ee PF: > { %s13_s22 = sadd.s32 1, %s1927_s22   ;;  %s2385_s5 = sld [smem:[#allocation9_spill]] }
 0x3ef   : > { %p10_p5 = scmp.ge.s32.totalorder %s13_s22, 10   ;;  %s2386_s25 = sld [smem:[#allocation10_spill]] }
 0x3f0   : > { %s2387_s12 = smov %s1891_s13  ;;  %s2388_s13 = smov %s2057_s11 }
 0x3f1   : > { %s2389_s14 = smov %s1899_s15  ;;  %s2390_s15 = smov %s2054_s10 }
 0x3f2   : > { %s2391_s16 = smov %s1915_s19  ;;  %s2392_s17 = smov %s1919_s20 }
 0x3f3   : > { %s2393_s18 = smov %s1923_s21  ;;  %s2394_s19 = smov %s2398_s23 }
 0x3f4   : > { %s2395_s20 = smov %s2385_s5  ;;  %12 = sbr.rel (!%p10_p5) target bundleno = 6 (0x6), region = 259 }
 0x3f5   : > { %s2396_s21 = smov %s2386_s25 }

// kernel: gpt_forward.22
= control target key start
LH: loop header
LB: loop body
LE: loop exit
PB: predicated region body
PF: predicated region fallthrough
CT: control target
= control target key end

     0   :  { %s917_s1 = inlined_call_operand.vmem [shape: bf16[512,128], index: 1, kind: input, shape index: {}]   ;;  %s918_s0 = inlined_call_operand.vmem [shape: f32[64,512], index: 0, kind: input, shape index: {}]   ;;  %s919_s2 = inlined_call_operand.vmem [shape: f32[1,128], index: 2, kind: input, shape index: {}]   ;;  %s920_s3 = inlined_call_operand.vmem [shape: f32[64,128], index: 3, kind: output, shape index: {}]  }
   0x1   :  { %v636_v0 = vld [vmem:[%s917_s1 + $0x40] sm:$0xff]   ;;  %v640_v4 = vld [vmem:[%s917_s1 + $0x48] sm:$0xff]   ;;  %v644_v8 = vld [vmem:[%s917_s1 + $0x50] sm:$0xff]  }
   0x2   :  { %v637_v1 = vld [vmem:[%s917_s1 + $0xc0] sm:$0xff]   ;;  %556 = vmatprep.subr.bf16.mxu0 %v636_v0  ;;  %v641_v5 = vld [vmem:[%s917_s1 + $0xc8] sm:$0xff]   ;;  %v645_v9 = vld [vmem:[%s917_s1 + $0xd0] sm:$0xff]  }
   0x3   :  { %v638_v2 = vld [vmem:[%s917_s1] sm:$0xff]   ;;  %596 = vmatprep.subr.bf16.mxu1 %v637_v1  ;;  %v642_v6 = vld [vmem:[%s917_s1 + $0x8] sm:$0xff]   ;;  %v646_v10 = vld [vmem:[%s917_s1 + $0x10] sm:$0xff]  }
   0x4   :  { %v639_v3 = vld [vmem:[%s917_s1 + $0x80] sm:$0xff]   ;;  %557 = vmatpush3.bf16.msra.mxu0 %v638_v2  ;;  %v643_v7 = vld [vmem:[%s917_s1 + $0x88] sm:$0xff]   ;;  %v647_v11 = vld [vmem:[%s917_s1 + $0x90] sm:$0xff]  }
   0x5   :  { %597 = vmatpush3.bf16.msra.mxu1 %v639_v3  ;;  %558 = vmatprep.subr.bf16.mxu0 %v640_v4  ;;  %v648_v12 = vld [vmem:[%s917_s1 + $0x58] sm:$0xff]   ;;  %v652_v16 = vld [vmem:[%s917_s1 + $0x60] sm:$0xff]   ;;  %v656_v20 = vld [vmem:[%s917_s1 + $0x68] sm:$0xff]  }
   0x6   :  { %598 = vmatprep.subr.bf16.mxu1 %v641_v5  ;;  %v649_v13 = vld [vmem:[%s917_s1 + $0xd8] sm:$0xff]   ;;  %v653_v17 = vld [vmem:[%s917_s1 + $0xe0] sm:$0xff]   ;;  %v657_v21 = vld [vmem:[%s917_s1 + $0xe8] sm:$0xff]  }
   0x7   :  { %v650_v14 = vld [vmem:[%s917_s1 + $0x18] sm:$0xff]   ;;  %v654_v18 = vld [vmem:[%s917_s1 + $0x20] sm:$0xff]   ;;  %v658_v22 = vld [vmem:[%s917_s1 + $0x28] sm:$0xff]  }
   0x8   :  { %559 = vmatpush3.bf16.msra.mxu0 %v642_v6  ;;  %v651_v15 = vld [vmem:[%s917_s1 + $0x98] sm:$0xff]   ;;  %v655_v19 = vld [vmem:[%s917_s1 + $0xa0] sm:$0xff]   ;;  %v659_v23 = vld [vmem:[%s917_s1 + $0xa8] sm:$0xff]  }
   0x9   :  { %599 = vmatpush3.bf16.msra.mxu1 %v643_v7  ;;  %560 = vmatprep.subr.bf16.mxu0 %v644_v8  ;;  %v660_v24 = vld [vmem:[%s917_s1 + $0x70] sm:$0xff]   ;;  %v664_v28 = vld [vmem:[%s917_s1 + $0x78] sm:$0xff]   ;;  %v36_v32 = vld [vmem:[%s918_s0 + $0x8] sm:$0xff] }
   0xa   :  { %600 = vmatprep.subr.bf16.mxu1 %v645_v9  ;;  %v661_v25 = vld [vmem:[%s917_s1 + $0xf0] sm:$0xff]   ;;  %v665_v29 = vld [vmem:[%s917_s1 + $0xf8] sm:$0xff]   ;;  %v40_v33 = vld [vmem:[%s918_s0 + $0x28] sm:$0xff] }
   0xb   :  { %v662_v26 = vld [vmem:[%s917_s1 + $0x30] sm:$0xff]   ;;  %v666_v30 = vld [vmem:[%s917_s1 + $0x38] sm:$0xff]   ;;  %v68_v35 = vpack.c.bf16 %v40_v33, %v36_v32  ;;  %v35_v37 = vld [vmem:[%s918_s0] sm:$0xff] }
   0xc   :  { %561 = vmatpush3.bf16.msra.mxu0 %v646_v10  ;;  %v663_v27 = vld [vmem:[%s917_s1 + $0xb0] sm:$0xff]   ;;  %v667_v31 = vld [vmem:[%s917_s1 + $0xb8] sm:$0xff]   ;;  %v39_v38 = vld [vmem:[%s918_s0 + $0x20] sm:$0xff] }
   0xd   :  { %601 = vmatpush3.bf16.msra.mxu1 %v647_v11  ;;  %562 = vmatprep.subr.bf16.mxu0 %v648_v12  ;;  %v38_v34 = vld [vmem:[%s918_s0 + $0x18] sm:$0xff]  ;;  %v67_v40 = vpack.c.bf16 %v39_v38, %v35_v37  ;;  %v37_v41 = vld [vmem:[%s918_s0 + $0x10] sm:$0xff]  ;;  %v44_v43 = vld [vmem:[%s918_s0 + $0x48] sm:$0xff] }
   0xe   :  { %602 = vmatprep.subr.bf16.mxu1 %v649_v13  ;;  %v42_v36 = vld [vmem:[%s918_s0 + $0x38] sm:$0xff]  ;;  %v41_v42 = vld [vmem:[%s918_s0 + $0x30] sm:$0xff]  ;;  %371 = vmatprep.mubr.bf16.mxu0 %v68_v35  ;;  %v48_v45 = vld [vmem:[%s918_s0 + $0x68] sm:$0xff] }
   0xf   :  { %v70_v39 = vpack.c.bf16 %v42_v36, %v38_v34  ;;  %v69_v44 = vpack.c.bf16 %v41_v42, %v37_v41  ;;  %v46_v46 = vld [vmem:[%s918_s0 + $0x58] sm:$0xff]  ;;  %v72_v48 = vpack.c.bf16 %v48_v45, %v44_v43  ;;  %v43_v50 = vld [vmem:[%s918_s0 + $0x40] sm:$0xff]  ;;  %v45_v52 = vld [vmem:[%s918_s0 + $0x50] sm:$0xff] }
  0x10   :  { %563 = vmatpush3.bf16.msra.mxu0 %v650_v14  ;;  %v50_v47 = vld [vmem:[%s918_s0 + $0x78] sm:$0xff]  ;;  %v47_v51 = vld [vmem:[%s918_s0 + $0x60] sm:$0xff]  ;;  %v49_v53 = vld [vmem:[%s918_s0 + $0x70] sm:$0xff] }
  0x11   :  { %603 = vmatpush3.bf16.msra.mxu1 %v651_v15  ;;  %564 = vmatprep.subr.bf16.mxu0 %v652_v16  ;;  %v74_v49 = vpack.c.bf16 %v50_v47, %v46_v46  ;;  %v52_v54 = vld [vmem:[%s918_s0 + $0x88] sm:$0xff]  ;;  %v54_v56 = vld [vmem:[%s918_s0 + $0x98] sm:$0xff]  ;;  %v71_v58 = vpack.c.bf16 %v47_v51, %v43_v50  ;;  %v73_v59 = vpack.c.bf16 %v49_v53, %v45_v52  ;;  %v51_v62 = vld [vmem:[%s918_s0 + $0x80] sm:$0xff] }
  0x12   :  { %604 = vmatprep.subr.bf16.mxu1 %v653_v17  ;;  %436 = vmatprep.mubr.bf16.mxu1 %v70_v39  ;;  %v56_v55 = vld [vmem:[%s918_s0 + $0xa8] sm:$0xff]  ;;  %v58_v57 = vld [vmem:[%s918_s0 + $0xb8] sm:$0xff]  ;;  %v55_v63 = vld [vmem:[%s918_s0 + $0xa0] sm:$0xff] }
  0x13   :  { %v76_v60 = vpack.c.bf16 %v56_v55, %v52_v54  ;;  %v78_v61 = vpack.c.bf16 %v58_v57, %v54_v56  ;;  %v53_v0 = vld [vmem:[%s918_s0 + $0x90] sm:$0xff]  ;;  %v60_v2 = vld [vmem:[%s918_s0 + $0xc8] sm:$0xff]  ;;  %v62_v4 = vld [vmem:[%s918_s0 + $0xd8] sm:$0xff]  ;;  %v75_v6 = vpack.c.bf16 %v55_v63, %v51_v62 }
  0x14   :  { %565 = vmatpush3.bf16.msra.mxu0 %v654_v18  ;;  %v57_v1 = vld [vmem:[%s918_s0 + $0xb0] sm:$0xff]  ;;  %v64_v3 = vld [vmem:[%s918_s0 + $0xe8] sm:$0xff]  ;;  %v66_v5 = vld [vmem:[%s918_s0 + $0xf8] sm:$0xff] }
  0x15   :  { %605 = vmatpush3.bf16.msra.mxu1 %v655_v19  ;;  %566 = vmatprep.subr.bf16.mxu0 %v656_v20  ;;  %v77_v7 = vpack.c.bf16 %v57_v1, %v53_v0  ;;  %v80_v8 = vpack.c.bf16 %v64_v3, %v60_v2  ;;  %v82_v9 = vpack.c.bf16 %v66_v5, %v62_v4  ;;  %v59_v10 = vld [vmem:[%s918_s0 + $0xc0] sm:$0xff]  ;;  %v61_v12 = vld [vmem:[%s918_s0 + $0xd0] sm:$0xff] }
  0x16   :  { %606 = vmatprep.subr.bf16.mxu1 %v657_v21  ;;  %v63_v11 = vld [vmem:[%s918_s0 + $0xe0] sm:$0xff]  ;;  %v65_v13 = vld [vmem:[%s918_s0 + $0xf0] sm:$0xff] }
  0x17   :  { %v79_v14 = vpack.c.bf16 %v63_v11, %v59_v10  ;;  %v81_v15 = vpack.c.bf16 %v65_v13, %v61_v12 }
  0x18   :  { %567 = vmatpush3.bf16.msra.mxu0 %v658_v22 }
  0x19   :  { %607 = vmatpush3.bf16.msra.mxu1 %v659_v23  ;;  %568 = vmatprep.subr.bf16.mxu0 %v660_v24 }
  0x1a   :  { %608 = vmatprep.subr.bf16.mxu1 %v661_v25  ;;  %v883_v25 = vld [vmem:[%s919_s2] ss:$0 sm:$0xff] }
  0x1c   :  { %569 = vmatpush3.bf16.msra.mxu0 %v662_v26 }
  0x1d   :  { %609 = vmatpush3.bf16.msra.mxu1 %v663_v27  ;;  %570 = vmatprep.subr.bf16.mxu0 %v664_v28 }
  0x1e   :  { %610 = vmatprep.subr.bf16.mxu1 %v665_v29 }
  0x20   :  { %571 = vmatpush3.bf16.msra.mxu0 %v666_v30 }
  0x21   :  { %611 = vmatpush3.bf16.msra.mxu1 %v667_v31 }
  0x23   :  { %372 = vmatmul.mubr.bf16.vlgmr.msra.gmra.mrb[0].mxu0 %v67_v40 }
  0x24   :  { %437 = vmatmul.mubr.bf16.vlgmr.msra.gmra.mrb[0].mxu1 %v69_v44  ;;  %379 = vmatprep.mubr.bf16.mxu0 %v72_v48 }
  0x25   :  { %444 = vmatprep.mubr.bf16.mxu1 %v74_v49 }
  0x2b   :  { %380 = vmatmul.mubr.bf16.gmra.mrb[4].mxu0 %v71_v58 }
  0x2c   :  { %445 = vmatmul.mubr.bf16.gmra.mrb[4].mxu1 %v73_v59  ;;  %387 = vmatprep.mubr.bf16.mxu0 %v76_v60 }
  0x2d   :  { %452 = vmatprep.mubr.bf16.mxu1 %v78_v61 }
  0x33   :  { %388 = vmatmul.mubr.bf16.gmra.mrb[8].mxu0 %v75_v6 }
  0x34   :  { %453 = vmatmul.mubr.bf16.gmra.mrb[8].mxu1 %v77_v7  ;;  %395 = vmatprep.mubr.bf16.mxu0 %v80_v8 }
  0x35   :  { %460 = vmatprep.mubr.bf16.mxu1 %v82_v9 }
  0x3b   :  { %396 = vmatmul.mubr.bf16.gmra.mrb[12].mxu0 %v79_v14 }
  0x3c   :  { %461 = vmatmul.mubr.bf16.gmra.mrb[12].mxu1 %v81_v15 }
  0xf6   :  { %v572_v16 = vpop.f32.mrb[0].mxu0 }
  0xf7   :  { %v612_v17 = vpop.f32.mrb[0].mxu1  ;;  %v573_v18 = vpop.f32.mrb[1].mxu0 }
  0xf8   :  { %v574_v19 = vadd.f32 %v573_v18, %v572_v16  ;;  %v613_v20 = vpop.f32.mrb[1].mxu1  ;;  %v575_v21 = vpop.f32.mrb[2].mxu0 }
  0xf9   :  { %v614_v22 = vadd.f32 %v613_v20, %v612_v17  ;;  %v615_v23 = vpop.f32.mrb[2].mxu1  ;;  %v576_v24 = vpop.f32.mrb[3].mxu0 }
  0xfa   :  { %v577_v26 = vadd.f32 %v576_v24, %v575_v21  ;;  %v616_v27 = vpop.f32.mrb[3].mxu1 }
  0xfb   :  { %v439_v28 = vadd.f32 %v614_v22, %v574_v19  ;;  %v617_v29 = vadd.f32 %v616_v27, %v615_v23 }
  0xfd   :  { %v503_v30 = vadd.f32 %v883_v25, %v439_v28  ;;  %v442_v31 = vadd.f32 %v617_v29, %v577_v26 }
  0xfe   :  { %v578_v32 = vpop.f32.mrb[4].mxu0 }
  0xff   :  { %511 = vst [vmem:[%s920_s3] sm:$0xff] %v503_v30  ;;  %v504_v33 = vadd.f32 %v883_v25, %v442_v31  ;;  %v618_v34 = vpop.f32.mrb[4].mxu1  ;;  %v579_v35 = vpop.f32.mrb[5].mxu0 }
 0x100   :  { %v580_v36 = vadd.f32 %v579_v35, %v578_v32  ;;  %v619_v37 = vpop.f32.mrb[5].mxu1  ;;  %v581_v38 = vpop.f32.mrb[6].mxu0 }
 0x101   :  { %512 = vst [vmem:[%s920_s3 + $0x8] sm:$0xff] %v504_v33  ;;  %v620_v39 = vadd.f32 %v619_v37, %v618_v34  ;;  %v621_v40 = vpop.f32.mrb[6].mxu1  ;;  %v582_v41 = vpop.f32.mrb[7].mxu0 }
 0x102   :  { %v583_v42 = vadd.f32 %v582_v41, %v581_v38  ;;  %v622_v43 = vpop.f32.mrb[7].mxu1 }
 0x103   :  { %v447_v44 = vadd.f32 %v620_v39, %v580_v36  ;;  %v623_v45 = vadd.f32 %v622_v43, %v621_v40 }
 0x105   :  { %v505_v46 = vadd.f32 %v883_v25, %v447_v44  ;;  %v450_v47 = vadd.f32 %v623_v45, %v583_v42 }
 0x106   :  { %v584_v48 = vpop.f32.mrb[8].mxu0 }
 0x107   :  { %513 = vst [vmem:[%s920_s3 + $0x10] sm:$0xff] %v505_v46  ;;  %v506_v49 = vadd.f32 %v883_v25, %v450_v47  ;;  %v624_v50 = vpop.f32.mrb[8].mxu1  ;;  %v585_v51 = vpop.f32.mrb[9].mxu0 }
 0x108   :  { %v586_v52 = vadd.f32 %v585_v51, %v584_v48  ;;  %v625_v53 = vpop.f32.mrb[9].mxu1  ;;  %v587_v54 = vpop.f32.mrb[10].mxu0 }
 0x109   :  { %514 = vst [vmem:[%s920_s3 + $0x18] sm:$0xff] %v506_v49  ;;  %v626_v55 = vadd.f32 %v625_v53, %v624_v50  ;;  %v627_v56 = vpop.f32.mrb[10].mxu1  ;;  %v588_v57 = vpop.f32.mrb[11].mxu0 }
 0x10a   :  { %v589_v58 = vadd.f32 %v588_v57, %v587_v54  ;;  %v628_v59 = vpop.f32.mrb[11].mxu1 }
 0x10b   :  { %v455_v60 = vadd.f32 %v626_v55, %v586_v52  ;;  %v629_v61 = vadd.f32 %v628_v59, %v627_v56 }
 0x10d   :  { %v507_v62 = vadd.f32 %v883_v25, %v455_v60  ;;  %v458_v63 = vadd.f32 %v629_v61, %v589_v58 }
 0x10e   :  { %v590_v0 = vpop.f32.mrb[12].mxu0 }
 0x10f   :  { %515 = vst [vmem:[%s920_s3 + $0x20] sm:$0xff] %v507_v62  ;;  %v508_v1 = vadd.f32 %v883_v25, %v458_v63  ;;  %v630_v2 = vpop.f32.mrb[12].mxu1  ;;  %v591_v3 = vpop.f32.mrb[13].mxu0 }
 0x110   :  { %v592_v4 = vadd.f32 %v591_v3, %v590_v0  ;;  %v631_v5 = vpop.f32.mrb[13].mxu1  ;;  %v593_v6 = vpop.f32.mrb[14].mxu0 }
 0x111   :  { %516 = vst [vmem:[%s920_s3 + $0x28] sm:$0xff] %v508_v1  ;;  %v632_v7 = vadd.f32 %v631_v5, %v630_v2  ;;  %v633_v8 = vpop.f32.mrb[14].mxu1  ;;  %v594_v9 = vpop.f32.mrb[15].mxu0 }
 0x112   :  { %v595_v10 = vadd.f32 %v594_v9, %v593_v6  ;;  %v634_v11 = vpop.f32.mrb[15].mxu1 }
 0x113   :  { %v463_v12 = vadd.f32 %v632_v7, %v592_v4  ;;  %v635_v13 = vadd.f32 %v634_v11, %v633_v8 }
 0x115   :  { %v509_v14 = vadd.f32 %v883_v25, %v463_v12  ;;  %v466_v15 = vadd.f32 %v635_v13, %v595_v10 }
 0x117   :  { %517 = vst [vmem:[%s920_s3 + $0x30] sm:$0xff] %v509_v14  ;;  %v510_v16 = vadd.f32 %v883_v25, %v466_v15 }
 0x119   :  { %518 = vst [vmem:[%s920_s3 + $0x38] sm:$0xff] %v510_v16 }

</bundles_post_ra>
